<compile_context>
chip_gen: v6e
topology: v6e:2x2x1
jax: 0.10.0
libtpu: 0.0.40
codegen_flags: <defaults>
</compile_context>

<pallas_src>
import functools
import math

import numpy as np
import jax
import jax.numpy as jnp
from jax.experimental import pallas as pl
from jax.experimental.pallas import tpu as pltpu

# ----------------------------- configuration -------------------------------
NC = 4                         # number of classes (small synthetic config)
NO = NC + 5
ANCHORS_PX = np.array(         # pixel-space anchors, (nl, na, 2)
    [[[10., 13.], [16., 30.], [33., 23.]],
     [[30., 61.], [62., 45.], [59., 119.]],
     [[116., 90.], [156., 198.], [373., 326.]]], dtype=np.float32)
NA = ANCHORS_PX.shape[1]
NL = ANCHORS_PX.shape[0]
STRIDES = [8.0, 16.0, 32.0]    # as computed in Model.__init__ (256 / feat_h)
# anchor_grid[i] == (anchors/stride)[i] * stride[i] == pixel anchors

# backbone: (c_in, c_out, k, s) — five stride-2 convs; P3/P4/P5 = layers 2/3/4
BACKBONE_CFG = [(3, 8, 3, 2), (8, 16, 3, 2), (16, 16, 3, 2),
                (16, 32, 3, 2), (32, 32, 3, 2)]
DETECT_FROM = [2, 3, 4]
DETECT_CH = [BACKBONE_CFG[i][1] for i in DETECT_FROM]

NPAD_CONV = 128                # lane-dense conv output columns
NPAD_DET = 128                 # lane-dense detect output columns (>= NA*NO)
CMAX_DET = max(DETECT_CH)      # common detect input-channel count


def _round_up(x, m):
    return (x + m - 1) // m * m


def _cdiv(a, b):
    return -(-a // b)


def _is_v7x():
    try:
        return "v7" in jax.devices()[0].device_kind.lower()
    except Exception:
        return False


_IS_V7X = _is_v7x()


def _pick_m_tiling(M):
    """Row tiling for the conv matmuls.

    One block per layer when it fits (a grid step costs ~0.35us which exceeds
    the matmul at these sizes); split into >=2 blocks only on v7x (megacore)
    or when the row count exceeds 1024.
    """
    nblk = _cdiv(M, 1024)
    if _IS_V7X and M >= 256:
        nblk = max(2, nblk)
    if nblk <= 1:
        return M, M
    tm = _round_up(_cdiv(M, nblk), 16)   # bf16 sublane multiple
    return _round_up(M, tm), tm


# ------------------------------ Pallas kernels ------------------------------
def _matmul_bias_act_kernel(x_ref, w_ref, b_ref, o_ref, *, act):
    # bf16 operands, f32 accumulate; bias + SiLU in f32; lane-dense store.
    acc = jnp.dot(x_ref[...], w_ref[...], preferred_element_type=jnp.float32)
    acc = acc + b_ref[...]
    if act:  # SiLU (Conv + folded-BN + SiLU)
        acc = acc * jax.nn.sigmoid(acc)
    o_ref[...] = acc.astype(o_ref.dtype)


def matmul_bias_act(x_bf16, w_pad, b_pad, n_out, act):
    """x: [M, K] bf16 @ w_pad: [K, 128] bf16 + b_pad: [1, 128] (opt. SiLU).

    Output is written lane-dense (128 cols) in-kernel; real n_out columns are
    sliced off here.  Returns bf16 [M, n_out].
    """
    M, K = x_bf16.shape
    NP = w_pad.shape[1]
    Mp, tm = _pick_m_tiling(M)
    if Mp != M:
        x_bf16 = jnp.pad(x_bf16, ((0, Mp - M), (0, 0)))
    out = pl.pallas_call(
        functools.partial(_matmul_bias_act_kernel, act=act),
        out_shape=jax.ShapeDtypeStruct((Mp, NP), jnp.bfloat16),
        grid_spec=pltpu.PrefetchScalarGridSpec(
            num_scalar_prefetch=0,
            grid=(Mp // tm,),
            in_specs=[
                pl.BlockSpec((tm, K), lambda i: (i, 0)),
                pl.BlockSpec((K, NP), lambda i: (0, 0)),
                pl.BlockSpec((1, NP), lambda i: (0, 0)),
            ],
            out_specs=pl.BlockSpec((tm, NP), lambda i: (i, 0)),
        ),
        compiler_params=pltpu.CompilerParams(
            dimension_semantics=("parallel",)),
    )(x_bf16, w_pad, b_pad)
    return out[:M, :n_out]


def _detect_kernel(lvl_ref, x_ref, w_ref, b_ref, m1_ref, m2_ref, g_ref,
                   raw_ref, dec_ref):
    """One row tile of one Detect level: 1x1 conv + bias + branchless decode.

    x_ref:   (TMr, CMAX)   bf16 — flattened (b, y, x) rows of this level
    w_ref:   (1, CMAX, NP) bf16 — this level's 1x1 conv weight
    b_ref:   (1, 1, NP)    f32  — conv bias row
    m1_ref:  (1, 1, NP)    f32  — per-lane linear coeff (2*stride | 1 | 0)
    m2_ref:  (1, 1, NP)    f32  — per-lane quadratic coeff (4*anchor | 0)
    g_ref:   (TMr, NP)     f32  — additive plane stride*(gx|gy - 0.5)
    raw_ref: (TMr, NP)     bf16 — raw conv logits (PyTorch `x[i]`)
    dec_ref: (TMr, NP)     f32  — decoded predictions (PyTorch `z[i]`)
    """
    acc = jnp.dot(x_ref[...], w_ref[0],
                  preferred_element_type=jnp.float32) + b_ref[0]
    raw_ref[...] = acc.astype(raw_ref.dtype)
    y = jax.nn.sigmoid(acc)
    # xy lanes: (2y - 0.5 + g)*stride == 2*stride*y + stride*(g - 0.5)
    # wh lanes: (2y)^2 * anchor      == 4*anchor*y*y
    # rest    : y
    dec_ref[...] = m1_ref[0] * y + m2_ref[0] * (y * y) + g_ref[...]


# -------------------- Detect decode constants (numpy, static) ---------------
def _level_decode_coeffs(level):
    stride = STRIDES[level]
    lane = np.arange(NPAD_DET)
    o = lane % NO
    a = np.minimum(lane // NO, NA - 1)
    valid = lane < NA * NO
    m1 = np.where(valid & (o < 2), 2.0 * stride,
                  np.where(valid & (o >= 4), 1.0, 0.0)).astype(np.float32)
    m2 = np.where(valid & (o == 2), 4.0 * ANCHORS_PX[level, a, 0],
                  np.where(valid & (o == 3), 4.0 * ANCHORS_PX[level, a, 1],
                           0.0)).astype(np.float32)
    return m1, m2


_M1_NP = np.stack([_level_decode_coeffs(i)[0] for i in range(NL)])[:, None, :]
_M2_NP = np.stack([_level_decode_coeffs(i)[1] for i in range(NL)])[:, None, :]


def _level_grid_plane(bsz, ny, nx, stride, rows_padded):
    """(rows_padded, 128) f32 additive plane: stride*(gx-0.5) on x lanes,
    stride*(gy-0.5) on y lanes, 0 elsewhere.  Rows are (b, y, x) row-major —
    must match the f.reshape(b*ny*nx, cin) flattening below."""
    m = bsz * ny * nx
    gy, gx = np.meshgrid(np.arange(ny, dtype=np.float32),
                         np.arange(nx, dtype=np.float32), indexing="ij")
    gx = np.tile(gx.reshape(-1), bsz)[:, None]
    gy = np.tile(gy.reshape(-1), bsz)[:, None]
    lane = np.arange(NPAD_DET)
    o = lane % NO
    valid = lane < NA * NO
    sel_x = ((o == 0) & valid).astype(np.float32)[None, :]
    sel_y = ((o == 1) & valid).astype(np.float32)[None, :]
    plane = np.zeros((rows_padded, NPAD_DET), np.float32)
    plane[:m] = sel_x * (stride * (gx - 0.5)) + sel_y * (stride * (gy - 0.5))
    return plane


# ------------------------------- JAX glue -----------------------------------
def im2col(x_nhwc, k, s, p):
    """Extract conv patches. Returns ([N*Ho*Wo, k*k*C], Ho, Wo)."""
    N, H, W, C = x_nhwc.shape
    xp = jnp.pad(x_nhwc, ((0, 0), (p, p), (p, p), (0, 0)))
    Ho = (H + 2 * p - k) // s + 1
    Wo = (W + 2 * p - k) // s + 1
    cols = []
    for ky in range(k):
        for kx in range(k):
            cols.append(xp[:, ky:ky + s * Ho:s, kx:kx + s * Wo:s, :])
    patches = jnp.concatenate(cols, axis=-1)          # (N, Ho, Wo, k*k*C)
    return patches.reshape(N * Ho * Wo, k * k * C), Ho, Wo


def conv_layer(x_nhwc, w_pad, b_pad, cout, k, s, act=True):
    # TODO(synk): fuse this im2col into the matmul kernel (halo'd strided
    # reads) to avoid materializing the 9x patch matrix in HBM at scale.
    patches, Ho, Wo = im2col(x_nhwc, k, s, k // 2)
    out = matmul_bias_act(patches, w_pad, b_pad, cout, act)
    return out.reshape(x_nhwc.shape[0], Ho, Wo, cout)


def init_params(key):
    # NOTE: if loading real PyTorch checkpoints, conv weights (cout,cin,kh,kw)
    # must be permuted to the (ky,kx,cin)->cout im2col layout used here.
    # All weights are pre-padded to 128 lane-dense columns and pre-cast to
    # bf16 ONCE here (no per-call astype/pad under jit).
    params = {"backbone": []}
    for (cin, cout, k, s) in BACKBONE_CFG:
        key, kw = jax.random.split(key)
        fan_in = cin * k * k
        w = jax.random.normal(kw, (k * k * cin, cout), jnp.float32) / math.sqrt(fan_in)
        w = jnp.pad(w, ((0, 0), (0, NPAD_CONV - cout))).astype(jnp.bfloat16)
        b = jnp.zeros((1, NPAD_CONV), jnp.float32)   # BN folded (identity at init)
        params["backbone"].append({"w": w, "b": b})
    dws, dbs = [], []
    for cin, s in zip(DETECT_CH, STRIDES):
        key, kw = jax.random.split(key)
        w = jax.random.normal(kw, (cin, NA * NO), jnp.float32) / math.sqrt(cin)
        w = jnp.pad(w, ((0, CMAX_DET - cin), (0, NPAD_DET - NA * NO)))
        dws.append(w.astype(jnp.bfloat16))
        # _initialize_biases(): obj / cls prior offsets
        b = jnp.zeros((NA, NO), jnp.float32)
        b = b.at[:, 4].add(math.log(8.0 / (640.0 / s) ** 2))
        b = b.at[:, 5:].add(math.log(0.6 / (NC - 0.99)))
        dbs.append(jnp.pad(b.reshape(-1), (0, NPAD_DET - NA * NO)))
    params["detect_w"] = jnp.stack(dws)               # (nl, CMAX, 128) bf16
    params["detect_b"] = jnp.stack(dbs)[:, None, :]   # (nl, 1, 128)    f32
    return params


def detect_forward(det_w, det_b, feats):
    """All Detect levels in ONE pallas_call, row-tiled over a concatenated
    (sum_rows, CMAX) slab; per-tile level id arrives via scalar prefetch."""
    nl = len(feats)
    shapes = [(int(f.shape[0]), int(f.shape[1]), int(f.shape[2]),
               int(f.shape[3])) for f in feats]
    ms = [b * ny * nx for (b, ny, nx, _) in shapes]
    TMr = min(512, _round_up(max(ms), 16))            # row tile (bf16 sublane)
    rs = [_round_up(m, TMr) for m in ms]              # per-level padded rows
    R = sum(rs)
    ntiles = R // TMr
    lvl_ids = jnp.asarray(np.repeat(np.arange(nl, dtype=np.int32),
                                    [r // TMr for r in rs]))

    xs, gs = [], []
    for i, (f, (b_, ny, nx, cin)) in enumerate(zip(feats, shapes)):
        flat = f.reshape(b_ * ny * nx, cin)
        xs.append(jnp.pad(flat, ((0, rs[i] - ms[i]), (0, CMAX_DET - cin))))
        gs.append(_level_grid_plane(b_, ny, nx, STRIDES[i], rs[i]))
    xcat = jnp.concatenate(xs, axis=0).astype(jnp.bfloat16)   # (R, CMAX) bf16
    gcat = jnp.asarray(np.concatenate(gs, axis=0))            # (R, 128)  f32
    m1 = jnp.asarray(_M1_NP)                                  # (nl, 1, 128)
    m2 = jnp.asarray(_M2_NP)                                  # (nl, 1, 128)

    raw, dec = pl.pallas_call(
        _detect_kernel,
        out_shape=(jax.ShapeDtypeStruct((R, NPAD_DET), jnp.bfloat16),
                   jax.ShapeDtypeStruct((R, NPAD_DET), jnp.float32)),
        grid_spec=pltpu.PrefetchScalarGridSpec(
            num_scalar_prefetch=1,
            grid=(ntiles,),
            in_specs=[
                pl.BlockSpec((TMr, CMAX_DET), lambda t, lv: (t, 0)),
                pl.BlockSpec((1, CMAX_DET, NPAD_DET),
                             lambda t, lv: (lv[t], 0, 0)),
                pl.BlockSpec((1, 1, NPAD_DET), lambda t, lv: (lv[t], 0, 0)),
                pl.BlockSpec((1, 1, NPAD_DET), lambda t, lv: (lv[t], 0, 0)),
                pl.BlockSpec((1, 1, NPAD_DET), lambda t, lv: (lv[t], 0, 0)),
                pl.BlockSpec((TMr, NPAD_DET), lambda t, lv: (t, 0)),
            ],
            out_specs=[
                pl.BlockSpec((TMr, NPAD_DET), lambda t, lv: (t, 0)),
                pl.BlockSpec((TMr, NPAD_DET), lambda t, lv: (t, 0)),
            ],
        ),
        compiler_params=pltpu.CompilerParams(
            dimension_semantics=("parallel",)),
    )(lvl_ids, xcat, det_w, det_b, m1, m2, gcat)

    z, x_out = [], []
    off = 0
    for i, (b_, ny, nx, _) in enumerate(shapes):
        m = ms[i]
        r = raw[off:off + m, :NA * NO].astype(jnp.float32)
        r = r.reshape(b_, ny, nx, NA, NO)
        x_out.append(jnp.transpose(r, (0, 3, 1, 2, 4)))    # (bs, na, ny, nx, no)
        d = dec[off:off + m, :NA * NO].reshape(b_, ny, nx, NA, NO)
        d = jnp.transpose(d, (0, 3, 1, 2, 4)).reshape(b_, NA * ny * nx, NO)
        z.append(d)
        off += rs[i]
    return jnp.concatenate(z, axis=1), x_out


def model_forward(params, x_nchw):
    """Inference forward. x_nchw: (N, 3, H, W)."""
    # bf16 once, before im2col (no cast of the 9x patch matrix).
    h = jnp.transpose(x_nchw, (0, 2, 3, 1)).astype(jnp.bfloat16)   # NCHW->NHWC
    feats = []
    for lp, (cin, cout, k, s) in zip(params["backbone"], BACKBONE_CFG):
        h = conv_layer(h, lp["w"], lp["b"], cout, k, s, act=True)
        feats.append(h)
    return detect_forward(params["detect_w"], params["detect_b"],
                          [feats[i] for i in DETECT_FROM])


# --------------------------------- main --------------------------------------
if __name__ == "__main__":
    key = jax.random.PRNGKey(0)
    k_x, k_p = jax.random.split(key)
    x = jax.random.normal(k_x, (2, 3, 64, 64), jnp.float32)   # NCHW input
    params = init_params(k_p)

    forward = jax.jit(model_forward)
    z, xs = forward(params, x)
    z = jax.block_until_ready(z)
    xs = jax.block_until_ready(xs)

    # shape checks: 3 levels at strides 8/16/32 -> 8x8, 4x4, 2x2 feature maps
    assert z.shape == (2, NA * (8 * 8 + 4 * 4 + 2 * 2), NO), z.shape
    assert xs[0].shape == (2, NA, 8, 8, NO)
    assert xs[1].shape == (2, NA, 4, 4, NO)
    assert xs[2].shape == (2, NA, 2, 2, NO)
    assert bool(jnp.all(jnp.isfinite(z)))
    print("KERNEL_OK")
</pallas_src>

<mosaic_0001>
module attributes {stable_mosaic.version = 11 : i64} {
  func.func @_matmul_bias_act_kernel(%arg0: i32, %arg1: memref<1024x27xbf16, #tpu.memory_space<vmem>>, %arg2: memref<27x128xbf16, #tpu.memory_space<vmem>>, %arg3: memref<1x128xf32, #tpu.memory_space<vmem>>, %arg4: memref<1024x128xbf16, #tpu.memory_space<vmem>>) attributes {dimension_semantics = [#tpu.dimension_semantics<parallel>], iteration_bounds = array<i64: 2>, scalar_prefetch = 0 : i64, scratch_operands = 0 : i64, tpu.core_type = #tpu.core_type<tc>, window_params = [{transform_indices = @transform_0, window_bounds = array<i64: 1024, 27>}, {pipeline_mode = #tpu.pipeline_mode<synchronous>, transform_indices = @transform_1, window_bounds = array<i64: 27, 128>}, {pipeline_mode = #tpu.pipeline_mode<synchronous>, transform_indices = @transform_2, window_bounds = array<i64: 1, 128>}, {transform_indices = @transform_3, window_bounds = array<i64: 1024, 128>}]} {
    %c0 = arith.constant 0 : index
    %c0_0 = arith.constant 0 : index
    %0 = vector.load %arg1[%c0, %c0_0] : memref<1024x27xbf16, #tpu.memory_space<vmem>>, vector<1024x27xbf16>
    %c0_1 = arith.constant 0 : index
    %c0_2 = arith.constant 0 : index
    %1 = vector.load %arg2[%c0_1, %c0_2] : memref<27x128xbf16, #tpu.memory_space<vmem>>, vector<27x128xbf16>
    %cst = arith.constant dense<0.000000e+00> : vector<1024x128xf32>
    %2 = tpu.matmul %0, %1, %cst {dimension_numbers = #tpu.dot_dimension_numbers<[1], [0], [0], [1], [0, 0, 1, 1], [], []>} : vector<1024x27xbf16>, vector<27x128xbf16>, vector<1024x128xf32> -> vector<1024x128xf32>
    %c0_3 = arith.constant 0 : index
    %c0_4 = arith.constant 0 : index
    %3 = vector.load %arg3[%c0_3, %c0_4] : memref<1x128xf32, #tpu.memory_space<vmem>>, vector<1x128xf32>
    %4 = vector.broadcast %3 : vector<1x128xf32> to vector<1024x128xf32>
    %5 = arith.addf %2, %4 : vector<1024x128xf32>
    %6 = arith.negf %5 : vector<1024x128xf32>
    %7 = math.exp %6 : vector<1024x128xf32>
    %cst_5 = arith.constant 1.000000e+00 : f32
    %8 = vector.broadcast %cst_5 : f32 to vector<1024x128xf32>
    %9 = arith.addf %8, %7 : vector<1024x128xf32>
    %10 = arith.divf %8, %9 : vector<1024x128xf32>
    %11 = arith.mulf %5, %10 : vector<1024x128xf32>
    %12 = arith.truncf %11 : vector<1024x128xf32> to vector<1024x128xbf16>
    %c0_6 = arith.constant 0 : index
    %c0_7 = arith.constant 0 : index
    %13 = vector.load %arg4[%c0_6, %c0_7] : memref<1024x128xbf16, #tpu.memory_space<vmem>>, vector<1024x128xbf16>
    tpu.vector_store %arg4[%c0_6, %c0_7], %12 {strides = array<i32>} : memref<1024x128xbf16, #tpu.memory_space<vmem>>, vector<1024x128xbf16>,
    return
  }
  func.func @transform_0(%arg0: i32) -> (i32, i32) {
    %c0_i32 = arith.constant 0 : i32
    %c0_i32_0 = arith.constant 0 : i32
    return %arg0, %c0_i32 : i32, i32
  }
  func.func @transform_1(%arg0: i32) -> (i32, i32) {
    %c0_i32 = arith.constant 0 : i32
    %c0_i32_0 = arith.constant 0 : i32
    %c0_i32_1 = arith.constant 0 : i32
    return %c0_i32, %c0_i32_0 : i32, i32
  }
  func.func @transform_2(%arg0: i32) -> (i32, i32) {
    %c0_i32 = arith.constant 0 : i32
    %c0_i32_0 = arith.constant 0 : i32
    %c0_i32_1 = arith.constant 0 : i32
    return %c0_i32, %c0_i32_0 : i32, i32
  }
  func.func @transform_3(%arg0: i32) -> (i32, i32) {
    %c0_i32 = arith.constant 0 : i32
    %c0_i32_0 = arith.constant 0 : i32
    return %arg0, %c0_i32 : i32, i32
  }
}

module attributes {stable_mosaic.version = 11 : i64} {
  func.func @_matmul_bias_act_kernel(%arg0: i32, %arg1: memref<512x72xbf16, #tpu.memory_space<vmem>>, %arg2: memref<72x128xbf16, #tpu.memory_space<vmem>>, %arg3: memref<1x128xf32, #tpu.memory_space<vmem>>, %arg4: memref<512x128xbf16, #tpu.memory_space<vmem>>) attributes {dimension_semantics = [#tpu.dimension_semantics<parallel>], iteration_bounds = array<i64: 1>, scalar_prefetch = 0 : i64, scratch_operands = 0 : i64, tpu.core_type = #tpu.core_type<tc>, window_params = [{transform_indices = @transform_0, window_bounds = array<i64: 512, 72>}, {pipeline_mode = #tpu.pipeline_mode<synchronous>, transform_indices = @transform_1, window_bounds = array<i64: 72, 128>}, {pipeline_mode = #tpu.pipeline_mode<synchronous>, transform_indices = @transform_2, window_bounds = array<i64: 1, 128>}, {transform_indices = @transform_3, window_bounds = array<i64: 512, 128>}]} {
    %c0 = arith.constant 0 : index
    %c0_0 = arith.constant 0 : index
    %0 = vector.load %arg1[%c0, %c0_0] : memref<512x72xbf16, #tpu.memory_space<vmem>>, vector<512x72xbf16>
    %c0_1 = arith.constant 0 : index
    %c0_2 = arith.constant 0 : index
    %1 = vector.load %arg2[%c0_1, %c0_2] : memref<72x128xbf16, #tpu.memory_space<vmem>>, vector<72x128xbf16>
    %cst = arith.constant dense<0.000000e+00> : vector<512x128xf32>
    %2 = tpu.matmul %0, %1, %cst {dimension_numbers = #tpu.dot_dimension_numbers<[1], [0], [0], [1], [0, 0, 1, 1], [], []>} : vector<512x72xbf16>, vector<72x128xbf16>, vector<512x128xf32> -> vector<512x128xf32>
    %c0_3 = arith.constant 0 : index
    %c0_4 = arith.constant 0 : index
    %3 = vector.load %arg3[%c0_3, %c0_4] : memref<1x128xf32, #tpu.memory_space<vmem>>, vector<1x128xf32>
    %4 = vector.broadcast %3 : vector<1x128xf32> to vector<512x128xf32>
    %5 = arith.addf %2, %4 : vector<512x128xf32>
    %6 = arith.negf %5 : vector<512x128xf32>
    %7 = math.exp %6 : vector<512x128xf32>
    %cst_5 = arith.constant 1.000000e+00 : f32
    %8 = vector.broadcast %cst_5 : f32 to vector<512x128xf32>
    %9 = arith.addf %8, %7 : vector<512x128xf32>
    %10 = arith.divf %8, %9 : vector<512x128xf32>
    %11 = arith.mulf %5, %10 : vector<512x128xf32>
    %12 = arith.truncf %11 : vector<512x128xf32> to vector<512x128xbf16>
    %c0_6 = arith.constant 0 : index
    %c0_7 = arith.constant 0 : index
    %13 = vector.load %arg4[%c0_6, %c0_7] : memref<512x128xbf16, #tpu.memory_space<vmem>>, vector<512x128xbf16>
    tpu.vector_store %arg4[%c0_6, %c0_7], %12 {strides = array<i32>} : memref<512x128xbf16, #tpu.memory_space<vmem>>, vector<512x128xbf16>,
    return
  }
  func.func @transform_0(%arg0: i32) -> (i32, i32) {
    %c0_i32 = arith.constant 0 : i32
    %c0_i32_0 = arith.constant 0 : i32
    return %arg0, %c0_i32 : i32, i32
  }
  func.func @transform_1(%arg0: i32) -> (i32, i32) {
    %c0_i32 = arith.constant 0 : i32
    %c0_i32_0 = arith.constant 0 : i32
    %c0_i32_1 = arith.constant 0 : i32
    return %c0_i32, %c0_i32_0 : i32, i32
  }
  func.func @transform_2(%arg0: i32) -> (i32, i32) {
    %c0_i32 = arith.constant 0 : i32
    %c0_i32_0 = arith.constant 0 : i32
    %c0_i32_1 = arith.constant 0 : i32
    return %c0_i32, %c0_i32_0 : i32, i32
  }
  func.func @transform_3(%arg0: i32) -> (i32, i32) {
    %c0_i32 = arith.constant 0 : i32
    %c0_i32_0 = arith.constant 0 : i32
    return %arg0, %c0_i32 : i32, i32
  }
}

module attributes {stable_mosaic.version = 11 : i64} {
  func.func @_matmul_bias_act_kernel(%arg0: i32, %arg1: memref<128x144xbf16, #tpu.memory_space<vmem>>, %arg2: memref<144x128xbf16, #tpu.memory_space<vmem>>, %arg3: memref<1x128xf32, #tpu.memory_space<vmem>>, %arg4: memref<128x128xbf16, #tpu.memory_space<vmem>>) attributes {dimension_semantics = [#tpu.dimension_semantics<parallel>], iteration_bounds = array<i64: 1>, scalar_prefetch = 0 : i64, scratch_operands = 0 : i64, tpu.core_type = #tpu.core_type<tc>, window_params = [{transform_indices = @transform_0, window_bounds = array<i64: 128, 144>}, {pipeline_mode = #tpu.pipeline_mode<synchronous>, transform_indices = @transform_1, window_bounds = array<i64: 144, 128>}, {pipeline_mode = #tpu.pipeline_mode<synchronous>, transform_indices = @transform_2, window_bounds = array<i64: 1, 128>}, {transform_indices = @transform_3, window_bounds = array<i64: 128, 128>}]} {
    %c0 = arith.constant 0 : index
    %c0_0 = arith.constant 0 : index
    %0 = vector.load %arg1[%c0, %c0_0] : memref<128x144xbf16, #tpu.memory_space<vmem>>, vector<128x144xbf16>
    %c0_1 = arith.constant 0 : index
    %c0_2 = arith.constant 0 : index
    %1 = vector.load %arg2[%c0_1, %c0_2] : memref<144x128xbf16, #tpu.memory_space<vmem>>, vector<144x128xbf16>
    %cst = arith.constant dense<0.000000e+00> : vector<128x128xf32>
    %2 = tpu.matmul %0, %1, %cst {dimension_numbers = #tpu.dot_dimension_numbers<[1], [0], [0], [1], [0, 0, 1, 1], [], []>} : vector<128x144xbf16>, vector<144x128xbf16>, vector<128x128xf32> -> vector<128x128xf32>
    %c0_3 = arith.constant 0 : index
    %c0_4 = arith.constant 0 : index
    %3 = vector.load %arg3[%c0_3, %c0_4] : memref<1x128xf32, #tpu.memory_space<vmem>>, vector<1x128xf32>
    %4 = vector.broadcast %3 : vector<1x128xf32> to vector<128x128xf32>
    %5 = arith.addf %2, %4 : vector<128x128xf32>
    %6 = arith.negf %5 : vector<128x128xf32>
    %7 = math.exp %6 : vector<128x128xf32>
    %cst_5 = arith.constant 1.000000e+00 : f32
    %8 = vector.broadcast %cst_5 : f32 to vector<128x128xf32>
    %9 = arith.addf %8, %7 : vector<128x128xf32>
    %10 = arith.divf %8, %9 : vector<128x128xf32>
    %11 = arith.mulf %5, %10 : vector<128x128xf32>
    %12 = arith.truncf %11 : vector<128x128xf32> to vector<128x128xbf16>
    %c0_6 = arith.constant 0 : index
    %c0_7 = arith.constant 0 : index
    %13 = vector.load %arg4[%c0_6, %c0_7] : memref<128x128xbf16, #tpu.memory_space<vmem>>, vector<128x128xbf16>
    tpu.vector_store %arg4[%c0_6, %c0_7], %12 {strides = array<i32>} : memref<128x128xbf16, #tpu.memory_space<vmem>>, vector<128x128xbf16>,
    return
  }
  func.func @transform_0(%arg0: i32) -> (i32, i32) {
    %c0_i32 = arith.constant 0 : i32
    %c0_i32_0 = arith.constant 0 : i32
    return %arg0, %c0_i32 : i32, i32
  }
  func.func @transform_1(%arg0: i32) -> (i32, i32) {
    %c0_i32 = arith.constant 0 : i32
    %c0_i32_0 = arith.constant 0 : i32
    %c0_i32_1 = arith.constant 0 : i32
    return %c0_i32, %c0_i32_0 : i32, i32
  }
  func.func @transform_2(%arg0: i32) -> (i32, i32) {
    %c0_i32 = arith.constant 0 : i32
    %c0_i32_0 = arith.constant 0 : i32
    %c0_i32_1 = arith.constant 0 : i32
    return %c0_i32, %c0_i32_0 : i32, i32
  }
  func.func @transform_3(%arg0: i32) -> (i32, i32) {
    %c0_i32 = arith.constant 0 : i32
    %c0_i32_0 = arith.constant 0 : i32
    return %arg0, %c0_i32 : i32, i32
  }
}

module attributes {stable_mosaic.version = 11 : i64} {
  func.func @_matmul_bias_act_kernel(%arg0: i32, %arg1: memref<32x144xbf16, #tpu.memory_space<vmem>>, %arg2: memref<144x128xbf16, #tpu.memory_space<vmem>>, %arg3: memref<1x128xf32, #tpu.memory_space<vmem>>, %arg4: memref<32x128xbf16, #tpu.memory_space<vmem>>) attributes {dimension_semantics = [#tpu.dimension_semantics<parallel>], iteration_bounds = array<i64: 1>, scalar_prefetch = 0 : i64, scratch_operands = 0 : i64, tpu.core_type = #tpu.core_type<tc>, window_params = [{transform_indices = @transform_0, window_bounds = array<i64: 32, 144>}, {pipeline_mode = #tpu.pipeline_mode<synchronous>, transform_indices = @transform_1, window_bounds = array<i64: 144, 128>}, {pipeline_mode = #tpu.pipeline_mode<synchronous>, transform_indices = @transform_2, window_bounds = array<i64: 1, 128>}, {transform_indices = @transform_3, window_bounds = array<i64: 32, 128>}]} {
    %c0 = arith.constant 0 : index
    %c0_0 = arith.constant 0 : index
    %0 = vector.load %arg1[%c0, %c0_0] : memref<32x144xbf16, #tpu.memory_space<vmem>>, vector<32x144xbf16>
    %c0_1 = arith.constant 0 : index
    %c0_2 = arith.constant 0 : index
    %1 = vector.load %arg2[%c0_1, %c0_2] : memref<144x128xbf16, #tpu.memory_space<vmem>>, vector<144x128xbf16>
    %cst = arith.constant dense<0.000000e+00> : vector<32x128xf32>
    %2 = tpu.matmul %0, %1, %cst {dimension_numbers = #tpu.dot_dimension_numbers<[1], [0], [0], [1], [0, 0, 1, 1], [], []>} : vector<32x144xbf16>, vector<144x128xbf16>, vector<32x128xf32> -> vector<32x128xf32>
    %c0_3 = arith.constant 0 : index
    %c0_4 = arith.constant 0 : index
    %3 = vector.load %arg3[%c0_3, %c0_4] : memref<1x128xf32, #tpu.memory_space<vmem>>, vector<1x128xf32>
    %4 = vector.broadcast %3 : vector<1x128xf32> to vector<32x128xf32>
    %5 = arith.addf %2, %4 : vector<32x128xf32>
    %6 = arith.negf %5 : vector<32x128xf32>
    %7 = math.exp %6 : vector<32x128xf32>
    %cst_5 = arith.constant 1.000000e+00 : f32
    %8 = vector.broadcast %cst_5 : f32 to vector<32x128xf32>
    %9 = arith.addf %8, %7 : vector<32x128xf32>
    %10 = arith.divf %8, %9 : vector<32x128xf32>
    %11 = arith.mulf %5, %10 : vector<32x128xf32>
    %12 = arith.truncf %11 : vector<32x128xf32> to vector<32x128xbf16>
    %c0_6 = arith.constant 0 : index
    %c0_7 = arith.constant 0 : index
    %13 = vector.load %arg4[%c0_6, %c0_7] : memref<32x128xbf16, #tpu.memory_space<vmem>>, vector<32x128xbf16>
    tpu.vector_store %arg4[%c0_6, %c0_7], %12 {strides = array<i32>} : memref<32x128xbf16, #tpu.memory_space<vmem>>, vector<32x128xbf16>,
    return
  }
  func.func @transform_0(%arg0: i32) -> (i32, i32) {
    %c0_i32 = arith.constant 0 : i32
    %c0_i32_0 = arith.constant 0 : i32
    return %arg0, %c0_i32 : i32, i32
  }
  func.func @transform_1(%arg0: i32) -> (i32, i32) {
    %c0_i32 = arith.constant 0 : i32
    %c0_i32_0 = arith.constant 0 : i32
    %c0_i32_1 = arith.constant 0 : i32
    return %c0_i32, %c0_i32_0 : i32, i32
  }
  func.func @transform_2(%arg0: i32) -> (i32, i32) {
    %c0_i32 = arith.constant 0 : i32
    %c0_i32_0 = arith.constant 0 : i32
    %c0_i32_1 = arith.constant 0 : i32
    return %c0_i32, %c0_i32_0 : i32, i32
  }
  func.func @transform_3(%arg0: i32) -> (i32, i32) {
    %c0_i32 = arith.constant 0 : i32
    %c0_i32_0 = arith.constant 0 : i32
    return %arg0, %c0_i32 : i32, i32
  }
}

module attributes {stable_mosaic.version = 11 : i64} {
  func.func @_matmul_bias_act_kernel(%arg0: i32, %arg1: memref<8x288xbf16, #tpu.memory_space<vmem>>, %arg2: memref<288x128xbf16, #tpu.memory_space<vmem>>, %arg3: memref<1x128xf32, #tpu.memory_space<vmem>>, %arg4: memref<8x128xbf16, #tpu.memory_space<vmem>>) attributes {dimension_semantics = [#tpu.dimension_semantics<parallel>], iteration_bounds = array<i64: 1>, scalar_prefetch = 0 : i64, scratch_operands = 0 : i64, tpu.core_type = #tpu.core_type<tc>, window_params = [{transform_indices = @transform_0, window_bounds = array<i64: 8, 288>}, {pipeline_mode = #tpu.pipeline_mode<synchronous>, transform_indices = @transform_1, window_bounds = array<i64: 288, 128>}, {pipeline_mode = #tpu.pipeline_mode<synchronous>, transform_indices = @transform_2, window_bounds = array<i64: 1, 128>}, {transform_indices = @transform_3, window_bounds = array<i64: 8, 128>}]} {
    %c0 = arith.constant 0 : index
    %c0_0 = arith.constant 0 : index
    %0 = vector.load %arg1[%c0, %c0_0] : memref<8x288xbf16, #tpu.memory_space<vmem>>, vector<8x288xbf16>
    %c0_1 = arith.constant 0 : index
    %c0_2 = arith.constant 0 : index
    %1 = vector.load %arg2[%c0_1, %c0_2] : memref<288x128xbf16, #tpu.memory_space<vmem>>, vector<288x128xbf16>
    %cst = arith.constant dense<0.000000e+00> : vector<8x128xf32>
    %2 = tpu.matmul %0, %1, %cst {dimension_numbers = #tpu.dot_dimension_numbers<[1], [0], [0], [1], [0, 0, 1, 1], [], []>} : vector<8x288xbf16>, vector<288x128xbf16>, vector<8x128xf32> -> vector<8x128xf32>
    %c0_3 = arith.constant 0 : index
    %c0_4 = arith.constant 0 : index
    %3 = vector.load %arg3[%c0_3, %c0_4] : memref<1x128xf32, #tpu.memory_space<vmem>>, vector<1x128xf32>
    %4 = vector.broadcast %3 : vector<1x128xf32> to vector<8x128xf32>
    %5 = arith.addf %2, %4 : vector<8x128xf32>
    %6 = arith.negf %5 : vector<8x128xf32>
    %7 = math.exp %6 : vector<8x128xf32>
    %cst_5 = arith.constant 1.000000e+00 : f32
    %8 = vector.broadcast %cst_5 : f32 to vector<8x128xf32>
    %9 = arith.addf %8, %7 : vector<8x128xf32>
    %10 = arith.divf %8, %9 : vector<8x128xf32>
    %11 = arith.mulf %5, %10 : vector<8x128xf32>
    %12 = arith.truncf %11 : vector<8x128xf32> to vector<8x128xbf16>
    %c0_6 = arith.constant 0 : index
    %c0_7 = arith.constant 0 : index
    %13 = vector.load %arg4[%c0_6, %c0_7] : memref<8x128xbf16, #tpu.memory_space<vmem>>, vector<8x128xbf16>
    tpu.vector_store %arg4[%c0_6, %c0_7], %12 {strides = array<i32>} : memref<8x128xbf16, #tpu.memory_space<vmem>>, vector<8x128xbf16>,
    return
  }
  func.func @transform_0(%arg0: i32) -> (i32, i32) {
    %c0_i32 = arith.constant 0 : i32
    %c0_i32_0 = arith.constant 0 : i32
    return %arg0, %c0_i32 : i32, i32
  }
  func.func @transform_1(%arg0: i32) -> (i32, i32) {
    %c0_i32 = arith.constant 0 : i32
    %c0_i32_0 = arith.constant 0 : i32
    %c0_i32_1 = arith.constant 0 : i32
    return %c0_i32, %c0_i32_0 : i32, i32
  }
  func.func @transform_2(%arg0: i32) -> (i32, i32) {
    %c0_i32 = arith.constant 0 : i32
    %c0_i32_0 = arith.constant 0 : i32
    %c0_i32_1 = arith.constant 0 : i32
    return %c0_i32, %c0_i32_0 : i32, i32
  }
  func.func @transform_3(%arg0: i32) -> (i32, i32) {
    %c0_i32 = arith.constant 0 : i32
    %c0_i32_0 = arith.constant 0 : i32
    return %arg0, %c0_i32 : i32, i32
  }
}

module attributes {stable_mosaic.version = 11 : i64} {
  func.func @_detect_kernel(%arg0: i32, %arg1: memref<3xi32, #tpu.memory_space<smem>>, %arg2: memref<128x32xbf16, #tpu.memory_space<vmem>>, %arg3: memref<1x32x128xbf16, #tpu.memory_space<vmem>>, %arg4: memref<1x1x128xf32, #tpu.memory_space<vmem>>, %arg5: memref<1x1x128xf32, #tpu.memory_space<vmem>>, %arg6: memref<1x1x128xf32, #tpu.memory_space<vmem>>, %arg7: memref<128x128xf32, #tpu.memory_space<vmem>>, %arg8: memref<128x128xbf16, #tpu.memory_space<vmem>>, %arg9: memref<128x128xf32, #tpu.memory_space<vmem>>) attributes {dimension_semantics = [#tpu.dimension_semantics<parallel>], iteration_bounds = array<i64: 3>, scalar_prefetch = 1 : i64, scratch_operands = 0 : i64, tpu.core_type = #tpu.core_type<tc>, window_params = [{transform_indices = @transform_0, window_bounds = array<i64: 128, 32>}, {transform_indices = @transform_1, window_bounds = array<i64: 1, 32, 128>}, {transform_indices = @transform_2, window_bounds = array<i64: 1, 1, 128>}, {transform_indices = @transform_3, window_bounds = array<i64: 1, 1, 128>}, {transform_indices = @transform_4, window_bounds = array<i64: 1, 1, 128>}, {transform_indices = @transform_5, window_bounds = array<i64: 128, 128>}, {transform_indices = @transform_6, window_bounds = array<i64: 128, 128>}, {transform_indices = @transform_7, window_bounds = array<i64: 128, 128>}]} {
    %c0 = arith.constant 0 : index
    %c0_0 = arith.constant 0 : index
    %0 = vector.load %arg2[%c0, %c0_0] : memref<128x32xbf16, #tpu.memory_space<vmem>>, vector<128x32xbf16>
    %c0_1 = arith.constant 0 : index
    %c0_2 = arith.constant 0 : index
    %c0_3 = arith.constant 0 : index
    %1 = vector.load %arg3[%c0_1, %c0_2, %c0_3] : memref<1x32x128xbf16, #tpu.memory_space<vmem>>, vector<1x32x128xbf16>
    %2 = vector.shape_cast %1 : vector<1x32x128xbf16> to vector<32x128xbf16>
    %cst = arith.constant dense<0.000000e+00> : vector<128x128xf32>
    %3 = tpu.matmul %0, %2, %cst {dimension_numbers = #tpu.dot_dimension_numbers<[1], [0], [0], [1], [0, 0, 1, 1], [], []>} : vector<128x32xbf16>, vector<32x128xbf16>, vector<128x128xf32> -> vector<128x128xf32>
    %c0_4 = arith.constant 0 : index
    %c0_5 = arith.constant 0 : index
    %c0_6 = arith.constant 0 : index
    %4 = vector.load %arg4[%c0_4, %c0_5, %c0_6] : memref<1x1x128xf32, #tpu.memory_space<vmem>>, vector<1x1x128xf32>
    %5 = vector.shape_cast %4 : vector<1x1x128xf32> to vector<1x128xf32>
    %6 = vector.broadcast %5 : vector<1x128xf32> to vector<128x128xf32>
    %7 = arith.addf %3, %6 : vector<128x128xf32>
    %8 = arith.truncf %7 : vector<128x128xf32> to vector<128x128xbf16>
    %c0_7 = arith.constant 0 : index
    %c0_8 = arith.constant 0 : index
    %9 = vector.load %arg8[%c0_7, %c0_8] : memref<128x128xbf16, #tpu.memory_space<vmem>>, vector<128x128xbf16>
    tpu.vector_store %arg8[%c0_7, %c0_8], %8 {strides = array<i32>} : memref<128x128xbf16, #tpu.memory_space<vmem>>, vector<128x128xbf16>,
    %10 = arith.negf %7 : vector<128x128xf32>
    %11 = math.exp %10 : vector<128x128xf32>
    %cst_9 = arith.constant 1.000000e+00 : f32
    %12 = vector.broadcast %cst_9 : f32 to vector<128x128xf32>
    %13 = arith.addf %12, %11 : vector<128x128xf32>
    %14 = arith.divf %12, %13 : vector<128x128xf32>
    %c0_10 = arith.constant 0 : index
    %c0_11 = arith.constant 0 : index
    %c0_12 = arith.constant 0 : index
    %15 = vector.load %arg5[%c0_10, %c0_11, %c0_12] : memref<1x1x128xf32, #tpu.memory_space<vmem>>, vector<1x1x128xf32>
    %16 = vector.shape_cast %15 : vector<1x1x128xf32> to vector<1x128xf32>
    %17 = vector.broadcast %16 : vector<1x128xf32> to vector<128x128xf32>
    %18 = arith.mulf %17, %14 : vector<128x128xf32>
    %c0_13 = arith.constant 0 : index
    %c0_14 = arith.constant 0 : index
    %c0_15 = arith.constant 0 : index
    %19 = vector.load %arg6[%c0_13, %c0_14, %c0_15] : memref<1x1x128xf32, #tpu.memory_space<vmem>>, vector<1x1x128xf32>
    %20 = vector.shape_cast %19 : vector<1x1x128xf32> to vector<1x128xf32>
    %21 = arith.mulf %14, %14 : vector<128x128xf32>
    %22 = vector.broadcast %20 : vector<1x128xf32> to vector<128x128xf32>
    %23 = arith.mulf %22, %21 : vector<128x128xf32>
    %24 = arith.addf %18, %23 : vector<128x128xf32>
    %c0_16 = arith.constant 0 : index
    %c0_17 = arith.constant 0 : index
    %25 = vector.load %arg7[%c0_16, %c0_17] : memref<128x128xf32, #tpu.memory_space<vmem>>, vector<128x128xf32>
    %26 = arith.addf %24, %25 : vector<128x128xf32>
    %c0_18 = arith.constant 0 : index
    %c0_19 = arith.constant 0 : index
    %27 = vector.load %arg9[%c0_18, %c0_19] : memref<128x128xf32, #tpu.memory_space<vmem>>, vector<128x128xf32>
    tpu.vector_store %arg9[%c0_18, %c0_19], %26 {strides = array<i32>} : memref<128x128xf32, #tpu.memory_space<vmem>>, vector<128x128xf32>,
    return
  }
  func.func @transform_0(%arg0: i32, %arg1: memref<3xi32, #tpu.memory_space<smem>>) -> (i32, i32) {
    %c0_i32 = arith.constant 0 : i32
    %c0_i32_0 = arith.constant 0 : i32
    return %arg0, %c0_i32 : i32, i32
  }
  func.func @transform_1(%arg0: i32, %arg1: memref<3xi32, #tpu.memory_space<smem>>) -> (i32, i32, i32) {
    %0 = arith.index_cast %arg0 : i32 to index
    %1 = memref.load %arg1[%0] : memref<3xi32, #tpu.memory_space<smem>>
    %c0_i32 = arith.constant 0 : i32
    %c0_i32_0 = arith.constant 0 : i32
    %c0_i32_1 = arith.constant 0 : i32
    return %1, %c0_i32, %c0_i32_0 : i32, i32, i32
  }
  func.func @transform_2(%arg0: i32, %arg1: memref<3xi32, #tpu.memory_space<smem>>) -> (i32, i32, i32) {
    %0 = arith.index_cast %arg0 : i32 to index
    %1 = memref.load %arg1[%0] : memref<3xi32, #tpu.memory_space<smem>>
    %c0_i32 = arith.constant 0 : i32
    %c0_i32_0 = arith.constant 0 : i32
    %c0_i32_1 = arith.constant 0 : i32
    return %1, %c0_i32, %c0_i32_0 : i32, i32, i32
  }
  func.func @transform_3(%arg0: i32, %arg1: memref<3xi32, #tpu.memory_space<smem>>) -> (i32, i32, i32) {
    %0 = arith.index_cast %arg0 : i32 to index
    %1 = memref.load %arg1[%0] : memref<3xi32, #tpu.memory_space<smem>>
    %c0_i32 = arith.constant 0 : i32
    %c0_i32_0 = arith.constant 0 : i32
    %c0_i32_1 = arith.constant 0 : i32
    return %1, %c0_i32, %c0_i32_0 : i32, i32, i32
  }
  func.func @transform_4(%arg0: i32, %arg1: memref<3xi32, #tpu.memory_space<smem>>) -> (i32, i32, i32) {
    %0 = arith.index_cast %arg0 : i32 to index
    %1 = memref.load %arg1[%0] : memref<3xi32, #tpu.memory_space<smem>>
    %c0_i32 = arith.constant 0 : i32
    %c0_i32_0 = arith.constant 0 : i32
    %c0_i32_1 = arith.constant 0 : i32
    return %1, %c0_i32, %c0_i32_0 : i32, i32, i32
  }
  func.func @transform_5(%arg0: i32, %arg1: memref<3xi32, #tpu.memory_space<smem>>) -> (i32, i32) {
    %c0_i32 = arith.constant 0 : i32
    %c0_i32_0 = arith.constant 0 : i32
    return %arg0, %c0_i32 : i32, i32
  }
  func.func @transform_6(%arg0: i32, %arg1: memref<3xi32, #tpu.memory_space<smem>>) -> (i32, i32) {
    %c0_i32 = arith.constant 0 : i32
    %c0_i32_0 = arith.constant 0 : i32
    return %arg0, %c0_i32 : i32, i32
  }
  func.func @transform_7(%arg0: i32, %arg1: memref<3xi32, #tpu.memory_space<smem>>) -> (i32, i32) {
    %c0_i32 = arith.constant 0 : i32
    %c0_i32_0 = arith.constant 0 : i32
    return %arg0, %c0_i32 : i32, i32
  }
}

</mosaic_0001>

<bundles_post_ra>
// kernel: model_forward.6
= control target key start
LH: loop header
LB: loop body
LE: loop exit
PB: predicated region body
PF: predicated region fallthrough
CT: control target
= control target key end

     0   :  { %s4711_s12 = smov 0   ;;  %s5635_s0 = inlined_call_operand.vmem [shape: bf16[2048,27], index: 0, kind: input, shape index: {}]   ;;  %s5636_s1 = inlined_call_operand.vmem [shape: bf16[27,128], index: 1, kind: input, shape index: {}]   ;;  %s5637_s2 = inlined_call_operand.vmem [shape: f32[1,128], index: 2, kind: input, shape index: {}]   ;;  %s5638_s3 = inlined_call_operand.vmem [shape: bf16[2048,128], index: 3, kind: output, shape index: {}]  }
   0x1 LB: > { %s2982_s13 = sadd.s32 4294967295, %s4688_s12   ;;  %p2986_p0 = scmp.ge.s32.totalorder %s4688_s12, 1  ;;  %s4688_s12 = sphi %s4711_s12, %s13_s12  }
   0x2   : > { %p138_p1 = scmp.lt.s32.totalorder %s4688_s12, 3 }
   0x4   : > { %p139_p2 = pnand %p2986_p0, %p138_p1 }
   0x5   : > { %s2987_s16 = sshll.u32 (!%p139_p2), %s2982_s13, 7 }
   0x6   : > { %142 = sbr.rel (%p139_p2) target bundleno = 495 (0x1ef), region = 32  ;;  %p163_p3 = scmp.lt.s32.totalorder (!%p139_p2), %s2987_s16, 255 }
   0xb   : > { %v4102_v0 = vld [vmem:[%s5636_s1 + $0x8] sm:$0x3f]   ;;  %vm838_vm0 = vcmask 1044480   ;;  %vm839_vm1 = vcmask 1045504   ;;  %v4690_v1 = vmov 65535   ;;  %v4103_v5 = vld [vmem:[%s5636_s1] sm:$0xff]  }
   0xc   : > { %v840_v2 = vsel %vm838_vm0, 4294967295, %v4690_v1  ;;  %s5640_s16 = smov (!%p163_p3, %s2987_s16), 255  ;;  %vm645_vm2 = vcmask 220160  }
   0xd   : > { %v841_v3 = vsel %vm839_vm1, %v840_v2, 0  ;;  %s2988_s19 = sshll.u32 %s5640_s16, 2 }
   0xe   : > { %v843_v4 = vand.u32 %v4102_v0, %v841_v3  ;;  %s4733_s22 = scalar_lea.vmem %s5635_s0, %s2988_s19  ;;  %s4989_s27 = scalar_lea.vmem %s5638_s3, %s2988_s19 }
   0xf   : > { %v4104_v6 = vld [vmem:[%s4733_s22] sm:$0xff]   ;;  %v4106_v8 = vld [vmem:[%s4733_s22 + $0x8] sm:$0xff]   ;;  %v4108_v10 = vld [vmem:[%s4733_s22 + $0x10] sm:$0xff]  }
  0x10   : > { %3957 = vmatprep.subr.bf16.mxu0 %v843_v4  ;;  %4089 = vmatprep.subr.bf16.mxu1 %v843_v4  ;;  %v4105_v7 = vld [vmem:[%s4733_s22 + $0x100] sm:$0xff]   ;;  %v4107_v9 = vld [vmem:[%s4733_s22 + $0x108] sm:$0xff]   ;;  %v4109_v11 = vld [vmem:[%s4733_s22 + $0x110] sm:$0xff]  }
  0x11   : > { %3958 = vmatpush3.bf16.msra.mxu0 %v843_v4  ;;  %4091 = vmatpush3.bf16.msra.mxu1 %v843_v4  ;;  %v4110_v12 = vld [vmem:[%s4733_s22 + $0x18] sm:$0xff]   ;;  %v4112_v14 = vld [vmem:[%s4733_s22 + $0x20] sm:$0xff]   ;;  %v4114_v16 = vld [vmem:[%s4733_s22 + $0x28] sm:$0xff]  }
  0x12   : > { %3959 = vmatprep.subr.bf16.mxu0 %v4103_v5  ;;  %4090 = vmatprep.subr.bf16.mxu1 %v4103_v5  ;;  %v4111_v13 = vld [vmem:[%s4733_s22 + $0x118] sm:$0xff]   ;;  %v4113_v15 = vld [vmem:[%s4733_s22 + $0x120] sm:$0xff]   ;;  %v4115_v17 = vld [vmem:[%s4733_s22 + $0x128] sm:$0xff]  }
  0x13   : > { %3961 = vmatprep.mubr.msk.bf16.mxu0 %vm645_vm2, %v4104_v6  ;;  %4025 = vmatprep.mubr.msk.bf16.mxu1 %vm645_vm2, %v4105_v7  ;;  %v4116_v18 = vld [vmem:[%s4733_s22 + $0x30] sm:$0xff]   ;;  %v4118_v20 = vld [vmem:[%s4733_s22 + $0x38] sm:$0xff]   ;;  %v4120_v22 = vld [vmem:[%s4733_s22 + $0x40] sm:$0xff]  }
  0x14   : > { %v4117_v19 = vld [vmem:[%s4733_s22 + $0x130] sm:$0xff]   ;;  %v4119_v21 = vld [vmem:[%s4733_s22 + $0x138] sm:$0xff]   ;;  %v4121_v23 = vld [vmem:[%s4733_s22 + $0x140] sm:$0xff]  }
  0x15   : > { %3960 = vmatpush3.bf16.msra.mxu0 %v4103_v5  ;;  %4092 = vmatpush3.bf16.msra.mxu1 %v4103_v5  ;;  %v4122_v24 = vld [vmem:[%s4733_s22 + $0x48] sm:$0xff]   ;;  %v4124_v26 = vld [vmem:[%s4733_s22 + $0x50] sm:$0xff]   ;;  %v4126_v28 = vld [vmem:[%s4733_s22 + $0x58] sm:$0xff]  }
  0x16   : > { %v4123_v25 = vld [vmem:[%s4733_s22 + $0x148] sm:$0xff]   ;;  %v4125_v27 = vld [vmem:[%s4733_s22 + $0x150] sm:$0xff]   ;;  %v4127_v29 = vld [vmem:[%s4733_s22 + $0x158] sm:$0xff]  }
  0x17   : > { %v4128_v30 = vld [vmem:[%s4733_s22 + $0x60] sm:$0xff]   ;;  %v4130_v32 = vld [vmem:[%s4733_s22 + $0x68] sm:$0xff]   ;;  %v4132_v34 = vld [vmem:[%s4733_s22 + $0x70] sm:$0xff]  }
  0x18   : > { %3962 = vmatmul.mubr.msk.bf16.vlgmr.msra.gmra.mxu0 %vm645_vm2, %v4106_v8  ;;  %4026 = vmatmul.mubr.msk.bf16.vlgmr.msra.gmra.mxu1 %vm645_vm2, %v4107_v9  ;;  %v4129_v31 = vld [vmem:[%s4733_s22 + $0x160] sm:$0xff]   ;;  %v4131_v33 = vld [vmem:[%s4733_s22 + $0x168] sm:$0xff]   ;;  %v4133_v35 = vld [vmem:[%s4733_s22 + $0x170] sm:$0xff]  }
  0x19   : > { %3965 = vmatprep.mubr.msk.bf16.mxu0 %vm645_vm2, %v4108_v10  ;;  %4029 = vmatprep.mubr.msk.bf16.mxu1 %vm645_vm2, %v4109_v11  ;;  %v4134_v36 = vld [vmem:[%s4733_s22 + $0x78] sm:$0xff]   ;;  %v4136_v38 = vld [vmem:[%s4733_s22 + $0x80] sm:$0xff]   ;;  %v4138_v40 = vld [vmem:[%s4733_s22 + $0x88] sm:$0xff]  }
  0x1a   : > { %v4135_v37 = vld [vmem:[%s4733_s22 + $0x178] sm:$0xff]   ;;  %v4137_v39 = vld [vmem:[%s4733_s22 + $0x180] sm:$0xff]   ;;  %v4139_v41 = vld [vmem:[%s4733_s22 + $0x188] sm:$0xff]  }
  0x1b   : > { %v4140_v42 = vld [vmem:[%s4733_s22 + $0x90] sm:$0xff]   ;;  %v4142_v44 = vld [vmem:[%s4733_s22 + $0x98] sm:$0xff]   ;;  %v4144_v46 = vld [vmem:[%s4733_s22 + $0xa0] sm:$0xff]  }
  0x1c   : > { %v4141_v43 = vld [vmem:[%s4733_s22 + $0x190] sm:$0xff]   ;;  %v4143_v45 = vld [vmem:[%s4733_s22 + $0x198] sm:$0xff]   ;;  %v4145_v47 = vld [vmem:[%s4733_s22 + $0x1a0] sm:$0xff]  }
  0x1d   : > { %v4146_v48 = vld [vmem:[%s4733_s22 + $0xa8] sm:$0xff]   ;;  %v4148_v50 = vld [vmem:[%s4733_s22 + $0xb0] sm:$0xff]   ;;  %v4150_v52 = vld [vmem:[%s4733_s22 + $0xb8] sm:$0xff]  }
  0x1e   : > { %v4147_v49 = vld [vmem:[%s4733_s22 + $0x1a8] sm:$0xff]   ;;  %v4149_v51 = vld [vmem:[%s4733_s22 + $0x1b0] sm:$0xff]   ;;  %v4151_v53 = vld [vmem:[%s4733_s22 + $0x1b8] sm:$0xff]  }
  0x1f   : > { %v4152_v54 = vld [vmem:[%s4733_s22 + $0xc0] sm:$0xff]   ;;  %v4154_v56 = vld [vmem:[%s4733_s22 + $0xc8] sm:$0xff]   ;;  %v4156_v58 = vld [vmem:[%s4733_s22 + $0xd0] sm:$0xff]  }
  0x20   : > { %3966 = vmatmul.mubr.msk.bf16.gmra.mxu0 %vm645_vm2, %v4110_v12  ;;  %4030 = vmatmul.mubr.msk.bf16.gmra.mxu1 %vm645_vm2, %v4111_v13  ;;  %v4153_v55 = vld [vmem:[%s4733_s22 + $0x1c0] sm:$0xff]   ;;  %v4155_v57 = vld [vmem:[%s4733_s22 + $0x1c8] sm:$0xff]   ;;  %v4157_v59 = vld [vmem:[%s4733_s22 + $0x1d0] sm:$0xff]  }
  0x21   : > { %3969 = vmatprep.mubr.msk.bf16.mxu0 %vm645_vm2, %v4112_v14  ;;  %4033 = vmatprep.mubr.msk.bf16.mxu1 %vm645_vm2, %v4113_v15  ;;  %v4158_v60 = vld [vmem:[%s4733_s22 + $0xd8] sm:$0xff]   ;;  %v4160_v62 = vld [vmem:[%s4733_s22 + $0xe0] sm:$0xff]   ;;  %v4162_v0 = vld [vmem:[%s4733_s22 + $0xe8] sm:$0xff]  }
  0x22   : > { %v4159_v61 = vld [vmem:[%s4733_s22 + $0x1d8] sm:$0xff]   ;;  %v4161_v63 = vld [vmem:[%s4733_s22 + $0x1e0] sm:$0xff]   ;;  %v4163_v1 = vld [vmem:[%s4733_s22 + $0x1e8] sm:$0xff]  }
  0x23   : > { %v4164_v2 = vld [vmem:[%s4733_s22 + $0xf0] sm:$0xff]   ;;  %v4166_v4 = vld [vmem:[%s4733_s22 + $0xf8] sm:$0xff]   ;;  %v4866_v6 = vld [vmem:[%s5637_s2] ss:$0 sm:$0xff] }
  0x24   : > { %v4165_v3 = vld [vmem:[%s4733_s22 + $0x1f0] sm:$0xff]   ;;  %v4167_v5 = vld [vmem:[%s4733_s22 + $0x1f8] sm:$0xff]  }
  0x28   : > { %3970 = vmatmul.mubr.msk.bf16.gmra.mxu0 %vm645_vm2, %v4114_v16  ;;  %4034 = vmatmul.mubr.msk.bf16.gmra.mxu1 %vm645_vm2, %v4115_v17 }
  0x29   : > { %3973 = vmatprep.mubr.msk.bf16.mxu0 %vm645_vm2, %v4116_v18  ;;  %4037 = vmatprep.mubr.msk.bf16.mxu1 %vm645_vm2, %v4117_v19 }
  0x30   : > { %3974 = vmatmul.mubr.msk.bf16.gmra.mxu0 %vm645_vm2, %v4118_v20  ;;  %4038 = vmatmul.mubr.msk.bf16.gmra.mxu1 %vm645_vm2, %v4119_v21 }
  0x31   : > { %3977 = vmatprep.mubr.msk.bf16.mxu0 %vm645_vm2, %v4120_v22  ;;  %4041 = vmatprep.mubr.msk.bf16.mxu1 %vm645_vm2, %v4121_v23 }
  0x38   : > { %3978 = vmatmul.mubr.msk.bf16.gmra.mxu0 %vm645_vm2, %v4122_v24  ;;  %4042 = vmatmul.mubr.msk.bf16.gmra.mxu1 %vm645_vm2, %v4123_v25 }
  0x39   : > { %3981 = vmatprep.mubr.msk.bf16.mxu0 %vm645_vm2, %v4124_v26  ;;  %4045 = vmatprep.mubr.msk.bf16.mxu1 %vm645_vm2, %v4125_v27 }
  0x40   : > { %3982 = vmatmul.mubr.msk.bf16.gmra.mxu0 %vm645_vm2, %v4126_v28  ;;  %4046 = vmatmul.mubr.msk.bf16.gmra.mxu1 %vm645_vm2, %v4127_v29 }
  0x41   : > { %3985 = vmatprep.mubr.msk.bf16.mxu0 %vm645_vm2, %v4128_v30  ;;  %4049 = vmatprep.mubr.msk.bf16.mxu1 %vm645_vm2, %v4129_v31 }
  0x48   : > { %3986 = vmatmul.mubr.msk.bf16.gmra.mxu0 %vm645_vm2, %v4130_v32  ;;  %4050 = vmatmul.mubr.msk.bf16.gmra.mxu1 %vm645_vm2, %v4131_v33 }
  0x49   : > { %3989 = vmatprep.mubr.msk.bf16.mxu0 %vm645_vm2, %v4132_v34  ;;  %4053 = vmatprep.mubr.msk.bf16.mxu1 %vm645_vm2, %v4133_v35 }
  0x50   : > { %3990 = vmatmul.mubr.msk.bf16.gmra.mxu0 %vm645_vm2, %v4134_v36  ;;  %4054 = vmatmul.mubr.msk.bf16.gmra.mxu1 %vm645_vm2, %v4135_v37 }
  0x51   : > { %3993 = vmatprep.mubr.msk.bf16.mxu0 %vm645_vm2, %v4136_v38  ;;  %4057 = vmatprep.mubr.msk.bf16.mxu1 %vm645_vm2, %v4137_v39 }
  0x58   : > { %3994 = vmatmul.mubr.msk.bf16.gmra.mxu0 %vm645_vm2, %v4138_v40  ;;  %4058 = vmatmul.mubr.msk.bf16.gmra.mxu1 %vm645_vm2, %v4139_v41 }
  0x59   : > { %3997 = vmatprep.mubr.msk.bf16.mxu0 %vm645_vm2, %v4140_v42  ;;  %4061 = vmatprep.mubr.msk.bf16.mxu1 %vm645_vm2, %v4141_v43 }
  0x60   : > { %3998 = vmatmul.mubr.msk.bf16.gmra.mxu0 %vm645_vm2, %v4142_v44  ;;  %4062 = vmatmul.mubr.msk.bf16.gmra.mxu1 %vm645_vm2, %v4143_v45 }
  0x61   : > { %4001 = vmatprep.mubr.msk.bf16.mxu0 %vm645_vm2, %v4144_v46  ;;  %4065 = vmatprep.mubr.msk.bf16.mxu1 %vm645_vm2, %v4145_v47 }
  0x68   : > { %4002 = vmatmul.mubr.msk.bf16.gmra.mxu0 %vm645_vm2, %v4146_v48  ;;  %4066 = vmatmul.mubr.msk.bf16.gmra.mxu1 %vm645_vm2, %v4147_v49 }
  0x69   : > { %4005 = vmatprep.mubr.msk.bf16.mxu0 %vm645_vm2, %v4148_v50  ;;  %4069 = vmatprep.mubr.msk.bf16.mxu1 %vm645_vm2, %v4149_v51 }
  0x70   : > { %4006 = vmatmul.mubr.msk.bf16.gmra.mxu0 %vm645_vm2, %v4150_v52  ;;  %4070 = vmatmul.mubr.msk.bf16.gmra.mxu1 %vm645_vm2, %v4151_v53 }
  0x71   : > { %4009 = vmatprep.mubr.msk.bf16.mxu0 %vm645_vm2, %v4152_v54  ;;  %4073 = vmatprep.mubr.msk.bf16.mxu1 %vm645_vm2, %v4153_v55 }
  0x78   : > { %4010 = vmatmul.mubr.msk.bf16.gmra.mxu0 %vm645_vm2, %v4154_v56  ;;  %4074 = vmatmul.mubr.msk.bf16.gmra.mxu1 %vm645_vm2, %v4155_v57 }
  0x79   : > { %4013 = vmatprep.mubr.msk.bf16.mxu0 %vm645_vm2, %v4156_v58  ;;  %4077 = vmatprep.mubr.msk.bf16.mxu1 %vm645_vm2, %v4157_v59 }
  0x80   : > { %4014 = vmatmul.mubr.msk.bf16.gmra.mxu0 %vm645_vm2, %v4158_v60  ;;  %4078 = vmatmul.mubr.msk.bf16.gmra.mxu1 %vm645_vm2, %v4159_v61 }
  0x81   : > { %4017 = vmatprep.mubr.msk.bf16.mxu0 %vm645_vm2, %v4160_v62  ;;  %4081 = vmatprep.mubr.msk.bf16.mxu1 %vm645_vm2, %v4161_v63 }
  0x88   : > { %4018 = vmatmul.mubr.msk.bf16.gmra.mxu0 %vm645_vm2, %v4162_v0  ;;  %4082 = vmatmul.mubr.msk.bf16.gmra.mxu1 %vm645_vm2, %v4163_v1 }
  0x89   : > { %4021 = vmatprep.mubr.msk.bf16.mxu0 %vm645_vm2, %v4164_v2  ;;  %4085 = vmatprep.mubr.msk.bf16.mxu1 %vm645_vm2, %v4165_v3 }
  0x90   : > { %4022 = vmatmul.mubr.msk.bf16.gmra.mxu0 %vm645_vm2, %v4166_v4  ;;  %4086 = vmatmul.mubr.msk.bf16.gmra.mxu1 %vm645_vm2, %v4167_v5 }
  0xd8   : > { %v3963_v7 = vpop.f32.mrf.mxu0  ;;  %v4027_v8 = vpop.f32.mrf.mxu1 }
  0xd9   : > { %v4869_v9 = vadd.f32 %v3963_v7, %v4866_v6  ;;  %v4872_v10 = vadd.f32 %v4027_v8, %v4866_v6 }
  0xda   : > { %v879_v11 = vpop.f32.mrf.mxu0  ;;  %v1135_v12 = vpop.f32.mrf.mxu1 }
  0xdb   : > { %v3124_v13 = vmul.f32 -1.442695, %v4869_v9  ;;  %v3188_v14 = vmul.f32 -1.442695, %v4872_v10  ;;  %v4877_v15 = vadd.f32 %v4866_v6, %v879_v11  ;;  %v4880_v16 = vadd.f32 %v4866_v6, %v1135_v12 }
  0xdc   : > { %v3964_v17 = vpop.f32.mrf.mxu0  ;;  %v4028_v18 = vpop.f32.mrf.mxu1 }
  0xdd   : > { %4168 = vpow2.f32 %v3124_v13  ;;  %v3122_v19 = vmul.f32 -1.442695, %v4877_v15  ;;  %v3186_v20 = vmul.f32 -1.442695, %v4880_v16  ;;  %v4885_v21 = vadd.f32 %v3964_v17, %v4866_v6 }
  0xde   : > { %4170 = vpow2.f32 %v3188_v14  ;;  %v4888_v22 = vadd.f32 %v4028_v18, %v4866_v6  ;;  %v882_v23 = vpop.f32.mrf.mxu0  ;;  %v1138_v24 = vpop.f32.mrf.mxu1 }
  0xdf   : > { %4172 = vpow2.f32 %v3122_v19  ;;  %v3125_v25 = vmul.f32 -1.442695, %v4885_v21  ;;  %v4892_v26 = vadd.f32 %v4866_v6, %v882_v23  ;;  %v4895_v27 = vadd.f32 %v4866_v6, %v1138_v24 }
  0xe0   : > { %4174 = vpow2.f32 %v3186_v20  ;;  %v3189_v28 = vmul.f32 -1.442695, %v4888_v22  ;;  %v3967_v29 = vpop.f32.mrf.mxu0  ;;  %v4031_v30 = vpop.f32.mrf.mxu1 }
  0xe1   : > { %4176 = vpow2.f32 %v3125_v25  ;;  %v3123_v31 = vmul.f32 -1.442695, %v4892_v26  ;;  %v3187_v32 = vmul.f32 -1.442695, %v4895_v27  ;;  %v4901_v33 = vadd.f32 %v3967_v29, %v4866_v6 }
  0xe2   : > { %4178 = vpow2.f32 %v3189_v28  ;;  %v4904_v34 = vadd.f32 %v4031_v30, %v4866_v6  ;;  %v895_v35 = vpop.f32.mrf.mxu0  ;;  %v1151_v36 = vpop.f32.mrf.mxu1 }
  0xe3   : > { %4180 = vpow2.f32 %v3123_v31  ;;  %v3128_v37 = vmul.f32 -1.442695, %v4901_v33  ;;  %v4908_v38 = vadd.f32 %v4866_v6, %v895_v35  ;;  %v4911_v39 = vadd.f32 %v4866_v6, %v1151_v36 }
  0xe4   : > { %4182 = vpow2.f32 %v3187_v32  ;;  %v3192_v40 = vmul.f32 -1.442695, %v4904_v34  ;;  %v3968_v41 = vpop.f32.mrf.mxu0  ;;  %v4032_v42 = vpop.f32.mrf.mxu1 }
  0xe5   : > { %4184 = vpow2.f32 %v3128_v37  ;;  %v3126_v43 = vmul.f32 -1.442695, %v4908_v38  ;;  %v3190_v44 = vmul.f32 -1.442695, %v4911_v39  ;;  %v4917_v45 = vadd.f32 %v3968_v41, %v4866_v6 }
  0xe6   : > { %4186 = vpow2.f32 %v3192_v40  ;;  %v4920_v46 = vadd.f32 %v4032_v42, %v4866_v6  ;;  %v898_v47 = vpop.f32.mrf.mxu0  ;;  %v1154_v48 = vpop.f32.mrf.mxu1 }
  0xe7   : > { %4188 = vpow2.f32 %v3126_v43  ;;  %v3129_v49 = vmul.f32 -1.442695, %v4917_v45  ;;  %v4924_v50 = vadd.f32 %v4866_v6, %v898_v47  ;;  %v4927_v51 = vadd.f32 %v4866_v6, %v1154_v48 }
  0xe8   : > { %4190 = vpow2.f32 %v3190_v44  ;;  %v3193_v52 = vmul.f32 -1.442695, %v4920_v46  ;;  %v3971_v53 = vpop.f32.mrf.mxu0  ;;  %v4035_v54 = vpop.f32.mrf.mxu1 }
  0xe9   : > { %4192 = vpow2.f32 %v3129_v49  ;;  %v3127_v55 = vmul.f32 -1.442695, %v4924_v50  ;;  %v3191_v56 = vmul.f32 -1.442695, %v4927_v51  ;;  %v4933_v23 = vadd.f32 %v3971_v53, %v4866_v6 }
  0xea   : > { %v4169_v57 = vpop.eup %4168  ;;  %4194 = vpow2.f32 %v3193_v52  ;;  %v911_v58 = vpop.f32.mrf.mxu0  ;;  %v4936_v35 = vadd.f32 %v4035_v54, %v4866_v6 }
  0xeb   : > { %v1167_v59 = vpop.f32.mrf.mxu1  ;;  %v4171_v60 = vpop.eup %4170  ;;  %v1776_v61 = vadd.f32 1.0, %v4169_v57  ;;  %4196 = vpow2.f32 %v3127_v55  ;;  %v3132_v41 = vmul.f32 -1.442695, %v4933_v23  ;;  %v4940_v42 = vadd.f32 %v4866_v6, %v911_v58 }
  0xec   : > { %v4173_v62 = vpop.eup %4172  ;;  %v1840_v63 = vadd.f32 1.0, %v4171_v60  ;;  %4198 = vpow2.f32 %v3191_v56  ;;  %v3972_v0 = vpop.f32.mrf.mxu0  ;;  %v4943_v47 = vadd.f32 %v4866_v6, %v1167_v59 }
  0xed   : > { %v4175_v1 = vpop.eup %4174  ;;  %4200 = vrcp.f32 %v1776_v61  ;;  %v1774_v2 = vadd.f32 1.0, %v4173_v62  ;;  %v4036_v3 = vpop.f32.mrf.mxu1  ;;  %v4946_v48 = vadd.f32 %v3972_v0, %v4866_v6 }
  0xee   : > { %v4177_v4 = vpop.eup %4176  ;;  %4202 = vrcp.f32 %v1840_v63  ;;  %v1838_v5 = vadd.f32 1.0, %v4175_v1  ;;  %v914_v13 = vpop.f32.mrf.mxu0  ;;  %v4949_v53 = vadd.f32 %v4036_v3, %v4866_v6  ;;  %v3196_v63 = vmul.f32 -1.442695, %v4936_v35 }
  0xef   : > { %v4179_v7 = vpop.eup %4178  ;;  %4204 = vrcp.f32 %v1774_v2  ;;  %v1777_v8 = vadd.f32 1.0, %v4177_v4  ;;  %v1170_v18 = vpop.f32.mrf.mxu1  ;;  %v4952_v54 = vadd.f32 %v4866_v6, %v914_v13  ;;  %v3130_v2 = vmul.f32 -1.442695, %v4940_v42 }
  0xf0   : > { %v4181_v11 = vpop.eup %4180  ;;  %4206 = vrcp.f32 %v1838_v5  ;;  %v1841_v12 = vadd.f32 1.0, %v4179_v7  ;;  %v3975_v30 = vpop.f32.mrf.mxu0  ;;  %v4955_v58 = vadd.f32 %v4866_v6, %v1170_v18  ;;  %v3194_v4 = vmul.f32 -1.442695, %v4943_v47 }
  0xf1   : > { %v4183_v14 = vpop.eup %4182  ;;  %4208 = vrcp.f32 %v1777_v8  ;;  %v1775_v17 = vadd.f32 1.0, %v4181_v11  ;;  %v4039_v36 = vpop.f32.mrf.mxu1  ;;  %v4958_v59 = vadd.f32 %v3975_v30, %v4866_v6  ;;  %v3133_v5 = vmul.f32 -1.442695, %v4946_v48 }
  0xf2   : > { %v4185_v19 = vpop.eup %4184  ;;  %4210 = vrcp.f32 %v1841_v12  ;;  %v1839_v20 = vadd.f32 1.0, %v4183_v14  ;;  %v927_v55 = vpop.f32.mrf.mxu0  ;;  %v4962_v0 = vadd.f32 %v4039_v36, %v4866_v6  ;;  %v3197_v7 = vmul.f32 -1.442695, %v4949_v53 }
  0xf3   : > { %v4187_v24 = vpop.eup %4186  ;;  %4212 = vrcp.f32 %v1775_v17  ;;  %v1780_v25 = vadd.f32 1.0, %v4185_v19  ;;  %v1183_v60 = vpop.f32.mrf.mxu1  ;;  %v3131_v12 = vmul.f32 -1.442695, %v4952_v54  ;;  %v3195_v13 = vmul.f32 -1.442695, %v4955_v58 }
  0xf4   : > { %v4189_v28 = vpop.eup %4188  ;;  %4214 = vrcp.f32 %v1839_v20  ;;  %v1844_v29 = vadd.f32 1.0, %v4187_v24  ;;  %v3976_v8 = vpop.f32.mrf.mxu0  ;;  %v3136_v14 = vmul.f32 -1.442695, %v4958_v59  ;;  %v3200_v19 = vmul.f32 -1.442695, %v4962_v0 }
  0xf5   : > { %v4191_v31 = vpop.eup %4190  ;;  %4216 = vrcp.f32 %v1780_v25  ;;  %v1778_v32 = vadd.f32 1.0, %v4189_v28  ;;  %v4040_v17 = vpop.f32.mrf.mxu1  ;;  %v4973_v20 = vadd.f32 %v4866_v6, %v927_v55  ;;  %v4976_v24 = vadd.f32 %v4866_v6, %v1183_v60 }
  0xf6   : > { %v4193_v37 = vpop.eup %4192  ;;  %4218 = vrcp.f32 %v1844_v29  ;;  %v1842_v40 = vadd.f32 1.0, %v4191_v31  ;;  %v4981_v30 = vadd.f32 %v3976_v8, %v4866_v6 }
  0xf7   : > { %v4195_v43 = vpop.eup %4194  ;;  %4220 = vrcp.f32 %v1778_v32  ;;  %v1781_v44 = vadd.f32 1.0, %v4193_v37 }
  0xf8   : > { %v4197_v49 = vpop.eup %4196  ;;  %4222 = vrcp.f32 %v1842_v40  ;;  %v1845_v52 = vadd.f32 1.0, %v4195_v43  ;;  %v1186_v43 = vpop.f32.mrf.mxu1 }
  0xf9   : > { %v4199_v56 = vpop.eup %4198  ;;  %4224 = vrcp.f32 %v1781_v44  ;;  %v1779_v57 = vadd.f32 1.0, %v4197_v49 }
  0xfa   : > { %v4201_v61 = vpop.eup %4200  ;;  %4226 = vrcp.f32 %v1845_v52  ;;  %v1843_v62 = vadd.f32 1.0, %v4199_v56 }
  0xfb   : > { %v4203_v1 = vpop.eup %4202  ;;  %4228 = vrcp.f32 %v1779_v57  ;;  %v2160_v28 = vmul.f32 %v4201_v61, %v4869_v9  ;;  %v4993_v9 = vadd.f32 %v4040_v17, %v4866_v6 }
  0xfc   : > { %v4205_v3 = vpop.eup %4204  ;;  %4230 = vrcp.f32 %v1843_v62  ;;  %v2224_v32 = vmul.f32 %v4203_v1, %v4872_v10  ;;  %v5013_v1 = vpop.f32.mrf.mxu1 }
  0xfd   : > { %v4207_v11 = vpop.eup %4206  ;;  %4232 = vpow2.f32 %v3132_v41  ;;  %v2158_v40 = vmul.f32 %v4205_v3, %v4877_v15  ;;  %v3134_v15 = vmul.f32 -1.442695, %v4973_v20  ;;  %v3201_v3 = vmul.f32 -1.442695, %v4993_v9 }
  0xfe   : > { %v4209_v18 = vpop.eup %4208  ;;  %4234 = vpow2.f32 %v3196_v63  ;;  %v2222_v49 = vmul.f32 %v4207_v11, %v4880_v16  ;;  %v3198_v16 = vmul.f32 -1.442695, %v4976_v24  ;;  %v3137_v63 = vmul.f32 -1.442695, %v4981_v30 }
  0xff   : > { %v4211_v25 = vpop.eup %4210  ;;  %v2161_v29 = vmul.f32 %v4209_v18, %v4885_v21  ;;  %4236 = vpow2.f32 %v3130_v2  ;;  %v930_v21 = vpop.f32.mrf.mxu0 }
 0x100   : > { %v4213_v31 = vpop.eup %4212  ;;  %v2225_v36 = vmul.f32 %v4211_v25, %v4888_v22  ;;  %4238 = vpow2.f32 %v3194_v4  ;;  %v5002_v57 = vadd.f32 %v4866_v6, %v930_v21  ;;  %v1199_v25 = vpop.f32.mrf.mxu1 }
 0x101   : > { %v4215_v37 = vpop.eup %4214  ;;  %v3516_v41 = vpack.c.bf16 %v2161_v29, %v2160_v28  ;;  %v2159_v10 = vmul.f32 %v4213_v31, %v4892_v26  ;;  %4240 = vpow2.f32 %v3133_v5  ;;  %v5009_v61 = vpop.f32.mrf.mxu0 }
 0x102   : > { %v4217_v44 = vpop.eup %4216  ;;  %v3676_v52 = vpack.c.bf16 %v2225_v36, %v2224_v32  ;;  %v2223_v22 = vmul.f32 %v4215_v37, %v4895_v27  ;;  %4242 = vpow2.f32 %v3197_v7  ;;  %v5007_v27 = vadd.f32 %v4866_v6, %v1186_v43 }
 0x103   : > { %v4219_v55 = vpop.eup %4218  ;;  %3828 = vst [vmem:[%s4989_s27 + $0x8] sm:$0xff] %v3516_v41   ;;  %v3511_v56 = vpack.c.bf16 %v2159_v10, %v2158_v40  ;;  %4244 = vpow2.f32 %v3131_v12  ;;  %v2164_v5 = vmul.f32 %v4217_v44, %v4901_v33  ;;  %v3135_v8 = vmul.f32 -1.442695, %v5002_v57  ;;  %v5023_v17 = vpop.f32.mrf.mxu0 }
 0x104   : > { %v4221_v26 = vpop.eup %4220  ;;  %3860 = vst [vmem:[%s4989_s27 + $0x108] sm:$0xff] %v3676_v52   ;;  %v3671_v60 = vpack.c.bf16 %v2223_v22, %v2222_v49  ;;  %4246 = vpow2.f32 %v3195_v13  ;;  %v2228_v12 = vmul.f32 %v4219_v55, %v4904_v34  ;;  %v4044_v41 = vpop.f32.mrf.mxu1 }
 0x105   : > { %v4223_v62 = vpop.eup %4222  ;;  %3512 = vst [vmem:[%s4989_s27] sm:$0xff] %v3511_v56   ;;  %4248 = vpow2.f32 %v3136_v14  ;;  %v3199_v14 = vmul.f32 -1.442695, %v5007_v27  ;;  %v3980_v37 = vpop.f32.mrf.mxu0 }
 0x106   : > { %v4225_v2 = vpop.eup %4224  ;;  %3859 = vst [vmem:[%s4989_s27 + $0x100] sm:$0xff] %v3671_v60   ;;  %4250 = vpow2.f32 %v3200_v19  ;;  %v2162_v19 = vmul.f32 %v4221_v26, %v4908_v38  ;;  %v2226_v34 = vmul.f32 %v4223_v62, %v4911_v39 }
 0x107   : > { %v4227_v4 = vpop.eup %4226  ;;  %v2165_v7 = vmul.f32 %v4225_v2, %v4917_v45  ;;  %4252 = vpow2.f32 %v3134_v15  ;;  %v946_v22 = vpop.f32.mrf.mxu0 }
 0x108   : > { %v4229_v11 = vpop.eup %4228  ;;  %v2229_v13 = vmul.f32 %v4227_v4, %v4920_v46  ;;  %4254 = vpow2.f32 %v3198_v16  ;;  %v1202_v15 = vpop.f32.mrf.mxu1  ;;  %v5035_v16 = vadd.f32 %v5009_v61, %v4866_v6 }
 0x109   : > { %v4231_v18 = vpop.eup %4230  ;;  %v3526_v33 = vpack.c.bf16 %v2165_v7, %v2164_v5  ;;  %v2163_v45 = vmul.f32 %v4229_v11, %v4924_v50  ;;  %4256 = vpow2.f32 %v3137_v63  ;;  %v3983_v4 = vpop.f32.mrf.mxu0 }
 0x10a   : > { %v4233_v28 = vpop.eup %4232  ;;  %v3686_v46 = vpack.c.bf16 %v2229_v13, %v2228_v12  ;;  %v2227_v29 = vmul.f32 %v4231_v18, %v4927_v51  ;;  %4258 = vpow2.f32 %v3201_v3  ;;  %v4047_v11 = vpop.f32.mrf.mxu1  ;;  %v3140_v61 = vmul.f32 -1.442695, %v5035_v16 }
 0x10b   : > { %v4235_v31 = vpop.eup %4234  ;;  %3830 = vst [vmem:[%s4989_s27 + $0x18] sm:$0xff] %v3526_v33   ;;  %v3521_v32 = vpack.c.bf16 %v2163_v45, %v2162_v19  ;;  %v1784_v36 = vadd.f32 1.0, %v4233_v28  ;;  %4260 = vpow2.f32 %v3135_v8  ;;  %v5039_v8 = vadd.f32 %v5013_v1, %v4866_v6 }
 0x10c   : > { %v4237_v38 = vpop.eup %4236  ;;  %3862 = vst [vmem:[%s4989_s27 + $0x118] sm:$0xff] %v3686_v46   ;;  %v3681_v21 = vpack.c.bf16 %v2227_v29, %v2226_v34  ;;  %v1848_v50 = vadd.f32 1.0, %v4235_v31  ;;  %4262 = vpow2.f32 %v3199_v14  ;;  %v5044_v14 = vadd.f32 %v4866_v6, %v5023_v17  ;;  %v959_v17 = vpop.f32.mrf.mxu0 }
 0x10d   : > { %v4239_v40 = vpop.eup %4238  ;;  %3829 = vst [vmem:[%s4989_s27 + $0x10] sm:$0xff] %v3521_v32   ;;  %4264 = vrcp.f32 %v1784_v36  ;;  %v1782_v39 = vadd.f32 1.0, %v4237_v38  ;;  %v5047_v33 = vadd.f32 %v4866_v6, %v1199_v25  ;;  %v5050_v45 = vadd.f32 %v3980_v37, %v4866_v6  ;;  %v1215_v36 = vpop.f32.mrf.mxu1 }
 0x10e   : > { %v4241_v10 = vpop.eup %4240  ;;  %3861 = vst [vmem:[%s4989_s27 + $0x110] sm:$0xff] %v3681_v21   ;;  %4266 = vrcp.f32 %v1848_v50  ;;  %v1846_v51 = vadd.f32 1.0, %v4239_v40  ;;  %v5053_v34 = vadd.f32 %v4044_v41, %v4866_v6  ;;  %v5056_v46 = vadd.f32 %v4866_v6, %v946_v22 }
 0x10f   : > { %v4243_v43 = vpop.eup %4242  ;;  %4268 = vrcp.f32 %v1782_v39  ;;  %v1785_v44 = vadd.f32 1.0, %v4241_v10  ;;  %v5059_v32 = vadd.f32 %v4866_v6, %v1202_v15  ;;  %v5062_v25 = vadd.f32 %v3983_v4, %v4866_v6 }
 0x110   : > { %v4245_v49 = vpop.eup %4244  ;;  %4270 = vrcp.f32 %v1846_v51  ;;  %v1849_v52 = vadd.f32 1.0, %v4243_v43  ;;  %v3204_v50 = vmul.f32 -1.442695, %v5039_v8  ;;  %v5066_v37 = vadd.f32 %v4047_v11, %v4866_v6 }
 0x111   : > { %v4247_v55 = vpop.eup %4246  ;;  %4272 = vrcp.f32 %v1785_v44  ;;  %v1783_v56 = vadd.f32 1.0, %v4245_v49  ;;  %v3138_v39 = vmul.f32 -1.442695, %v5044_v14  ;;  %v3202_v10 = vmul.f32 -1.442695, %v5047_v33  ;;  %v3984_v44 = vpop.f32.mrf.mxu0 }
 0x112   : > { %v4249_v26 = vpop.eup %4248  ;;  %4274 = vrcp.f32 %v1849_v52  ;;  %v1847_v60 = vadd.f32 1.0, %v4247_v55  ;;  %v3141_v51 = vmul.f32 -1.442695, %v5050_v45  ;;  %v3205_v43 = vmul.f32 -1.442695, %v5053_v34 }
 0x113   : > { %v4251_v62 = vpop.eup %4250  ;;  %4276 = vrcp.f32 %v1783_v56  ;;  %v1788_v63 = vadd.f32 1.0, %v4249_v26  ;;  %v3139_v52 = vmul.f32 -1.442695, %v5056_v46  ;;  %v3203_v22 = vmul.f32 -1.442695, %v5059_v32  ;;  %v4048_v56 = vpop.f32.mrf.mxu1 }
 0x114   : > { %v4253_v2 = vpop.eup %4252  ;;  %4278 = vrcp.f32 %v1847_v60  ;;  %v1852_v3 = vadd.f32 1.0, %v4251_v62  ;;  %v3144_v55 = vmul.f32 -1.442695, %v5062_v25  ;;  %v3208_v26 = vmul.f32 -1.442695, %v5066_v37 }
 0x115   : > { %v4255_v5 = vpop.eup %4254  ;;  %4280 = vrcp.f32 %v1788_v63  ;;  %v1786_v7 = vadd.f32 1.0, %v4253_v2  ;;  %v5077_v60 = vadd.f32 %v4866_v6, %v959_v17  ;;  %v5080_v62 = vadd.f32 %v4866_v6, %v1215_v36 }
 0x116   : > { %v4257_v12 = vpop.eup %4256  ;;  %4282 = vrcp.f32 %v1852_v3  ;;  %v1850_v13 = vadd.f32 1.0, %v4255_v5  ;;  %v5085_v4 = vadd.f32 %v3984_v44, %v4866_v6 }
 0x117   : > { %v4259_v18 = vpop.eup %4258  ;;  %4284 = vrcp.f32 %v1786_v7  ;;  %v1789_v19 = vadd.f32 1.0, %v4257_v12  ;;  %v5090_v12 = vadd.f32 %v4048_v56, %v4866_v6 }
 0x118   : > { %v4261_v1 = vpop.eup %4260  ;;  %4286 = vrcp.f32 %v1850_v13  ;;  %v1853_v28 = vadd.f32 1.0, %v4259_v18  ;;  %v962_v13 = vpop.f32.mrf.mxu0 }
 0x119   : > { %v4263_v29 = vpop.eup %4262  ;;  %4288 = vrcp.f32 %v1789_v19  ;;  %v1787_v31 = vadd.f32 1.0, %v4261_v1  ;;  %v1218_v19 = vpop.f32.mrf.mxu1 }
 0x11a   : > { %v4265_v38 = vpop.eup %4264  ;;  %4290 = vrcp.f32 %v1853_v28  ;;  %v1851_v21 = vadd.f32 1.0, %v4263_v29 }
 0x11b   : > { %v4267_v40 = vpop.eup %4266  ;;  %4292 = vrcp.f32 %v1787_v31  ;;  %v2168_v2 = vmul.f32 %v4265_v38, %v4933_v23  ;;  %v5099_v31 = vadd.f32 %v4866_v6, %v962_v13  ;;  %v5106_v38 = vpop.f32.mrf.mxu0 }
 0x11c   : > { %v4269_v41 = vpop.eup %4268  ;;  %4294 = vrcp.f32 %v1851_v21  ;;  %v2232_v7 = vmul.f32 %v4267_v40, %v4936_v35  ;;  %v5110_v40 = vpop.f32.mrf.mxu1 }
 0x11d   : > { %v4271_v49 = vpop.eup %4270  ;;  %4296 = vpow2.f32 %v3140_v61  ;;  %v2166_v23 = vmul.f32 %v4269_v41, %v4940_v42  ;;  %v3142_v42 = vmul.f32 -1.442695, %v5077_v60  ;;  %v3209_v41 = vmul.f32 -1.442695, %v5090_v12  ;;  %v5120_v56 = vpop.f32.mrf.mxu0 }
 0x11e   : > { %v4273_v15 = vpop.eup %4272  ;;  %4298 = vpow2.f32 %v3204_v50  ;;  %v2230_v35 = vmul.f32 %v4271_v49, %v4943_v47  ;;  %v3206_v47 = vmul.f32 -1.442695, %v5080_v62  ;;  %v3145_v50 = vmul.f32 -1.442695, %v5085_v4 }
 0x11f   : > { %v4275_v63 = vpop.eup %4274  ;;  %v2169_v3 = vmul.f32 %v4273_v15, %v4946_v48  ;;  %4300 = vpow2.f32 %v3138_v39  ;;  %v3143_v44 = vmul.f32 -1.442695, %v5099_v31 }
 0x120   : > { %v4277_v5 = vpop.eup %4276  ;;  %v2233_v11 = vmul.f32 %v4275_v63, %v4949_v53  ;;  %4302 = vpow2.f32 %v3202_v10  ;;  %v1231_v63 = vpop.f32.mrf.mxu1 }
 0x121   : > { %v4279_v61 = vpop.eup %4278  ;;  %v3536_v18 = vpack.c.bf16 %v2169_v3, %v2168_v2  ;;  %v2167_v48 = vmul.f32 %v4277_v5, %v4952_v54  ;;  %4304 = vpow2.f32 %v3141_v51 }
 0x122   : > { %v4281_v1 = vpop.eup %4280  ;;  %v3696_v28 = vpack.c.bf16 %v2233_v11, %v2232_v7  ;;  %v2231_v53 = vmul.f32 %v4279_v61, %v4955_v58  ;;  %4306 = vpow2.f32 %v3205_v43  ;;  %v5104_v58 = vadd.f32 %v4866_v6, %v1218_v19  ;;  %v3988_v61 = vpop.f32.mrf.mxu0 }
 0x123   : > { %v4283_v17 = vpop.eup %4282  ;;  %3832 = vst [vmem:[%s4989_s27 + $0x28] sm:$0xff] %v3536_v18   ;;  %v3531_v29 = vpack.c.bf16 %v2167_v48, %v2166_v23  ;;  %4308 = vpow2.f32 %v3139_v52  ;;  %v2172_v51 = vmul.f32 %v4281_v1, %v4958_v59  ;;  %v4052_v18 = vpop.f32.mrf.mxu1 }
 0x124   : > { %v4285_v54 = vpop.eup %4284  ;;  %3864 = vst [vmem:[%s4989_s27 + $0x128] sm:$0xff] %v3696_v28   ;;  %v3691_v36 = vpack.c.bf16 %v2231_v53, %v2230_v35  ;;  %4310 = vpow2.f32 %v3203_v22  ;;  %v2236_v52 = vmul.f32 %v4283_v17, %v4962_v0  ;;  %v978_v53 = vpop.f32.mrf.mxu0 }
 0x125   : > { %v4287_v21 = vpop.eup %4286  ;;  %3831 = vst [vmem:[%s4989_s27 + $0x20] sm:$0xff] %v3531_v29   ;;  %4312 = vpow2.f32 %v3144_v55  ;;  %v3207_v55 = vmul.f32 -1.442695, %v5104_v58 }
 0x126   : > { %v4289_v39 = vpop.eup %4288  ;;  %3863 = vst [vmem:[%s4989_s27 + $0x120] sm:$0xff] %v3691_v36   ;;  %4314 = vpow2.f32 %v3208_v26  ;;  %v2170_v26 = vmul.f32 %v4285_v54, %v4973_v20  ;;  %v2234_v0 = vmul.f32 %v4287_v21, %v4976_v24 }
 0x127   : > { %v4291_v10 = vpop.eup %4290  ;;  %v2173_v43 = vmul.f32 %v4289_v39, %v4981_v30  ;;  %4316 = vpow2.f32 %v3142_v42  ;;  %v1234_v42 = vpop.f32.mrf.mxu1 }
 0x128   : > { %v4293_v49 = vpop.eup %4292  ;;  %v2237_v22 = vmul.f32 %v4291_v10, %v4993_v9  ;;  %4318 = vpow2.f32 %v3206_v47  ;;  %v5132_v47 = vadd.f32 %v5106_v38, %v4866_v6  ;;  %v3991_v10 = vpop.f32.mrf.mxu0 }
 0x129   : > { %v4295_v15 = vpop.eup %4294  ;;  %v3546_v59 = vpack.c.bf16 %v2173_v43, %v2172_v51  ;;  %v2171_v30 = vmul.f32 %v4293_v49, %v5002_v57  ;;  %4320 = vpow2.f32 %v3145_v50  ;;  %v4055_v49 = vpop.f32.mrf.mxu1 }
 0x12a   : > { %v4297_v2 = vpop.eup %4296  ;;  %v3706_v9 = vpack.c.bf16 %v2237_v22, %v2236_v52  ;;  %v2235_v3 = vmul.f32 %v4295_v15, %v5007_v27  ;;  %4322 = vpow2.f32 %v3209_v41  ;;  %v3148_v38 = vmul.f32 -1.442695, %v5132_v47 }
 0x12b   : > { %v4299_v5 = vpop.eup %4298  ;;  %3834 = vst [vmem:[%s4989_s27 + $0x38] sm:$0xff] %v3546_v59   ;;  %v3541_v7 = vpack.c.bf16 %v2171_v30, %v2170_v26  ;;  %v1792_v11 = vadd.f32 1.0, %v4297_v2  ;;  %4324 = vpow2.f32 %v3143_v44  ;;  %v5136_v44 = vadd.f32 %v5110_v40, %v4866_v6 }
 0x12c   : > { %v4301_v20 = vpop.eup %4300  ;;  %3866 = vst [vmem:[%s4989_s27 + $0x138] sm:$0xff] %v3706_v9   ;;  %v3701_v13 = vpack.c.bf16 %v2235_v3, %v2234_v0  ;;  %v1856_v57 = vadd.f32 1.0, %v4299_v5  ;;  %4326 = vpow2.f32 %v3207_v55  ;;  %v5141_v55 = vadd.f32 %v4866_v6, %v5120_v56  ;;  %v991_v56 = vpop.f32.mrf.mxu0 }
 0x12d   : > { %v4303_v23 = vpop.eup %4302  ;;  %3833 = vst [vmem:[%s4989_s27 + $0x30] sm:$0xff] %v3541_v7   ;;  %4328 = vrcp.f32 %v1792_v11  ;;  %v1790_v24 = vadd.f32 1.0, %v4301_v20  ;;  %v5144_v59 = vadd.f32 %v4866_v6, %v1231_v63  ;;  %v5147_v30 = vadd.f32 %v3988_v61, %v4866_v6  ;;  %v1247_v11 = vpop.f32.mrf.mxu1 }
 0x12e   : > { %v4305_v48 = vpop.eup %4304  ;;  %3865 = vst [vmem:[%s4989_s27 + $0x130] sm:$0xff] %v3701_v13   ;;  %4330 = vrcp.f32 %v1856_v57  ;;  %v1854_v27 = vadd.f32 1.0, %v4303_v23  ;;  %v5150_v0 = vadd.f32 %v4052_v18, %v4866_v6  ;;  %v5153_v9 = vadd.f32 %v4866_v6, %v978_v53 }
 0x12f   : > { %v4307_v19 = vpop.eup %4306  ;;  %4332 = vrcp.f32 %v1790_v24  ;;  %v1793_v1 = vadd.f32 1.0, %v4305_v48  ;;  %v5156_v7 = vadd.f32 %v4866_v6, %v1234_v42  ;;  %v5159_v63 = vadd.f32 %v3991_v10, %v4866_v6 }
 0x130   : > { %v4309_v35 = vpop.eup %4308  ;;  %4334 = vrcp.f32 %v1854_v27  ;;  %v1857_v28 = vadd.f32 1.0, %v4307_v19  ;;  %v3212_v57 = vmul.f32 -1.442695, %v5136_v44  ;;  %v5163_v61 = vadd.f32 %v4055_v49, %v4866_v6 }
 0x131   : > { %v4311_v17 = vpop.eup %4310  ;;  %4336 = vrcp.f32 %v1793_v1  ;;  %v1791_v29 = vadd.f32 1.0, %v4309_v35  ;;  %v3146_v24 = vmul.f32 -1.442695, %v5141_v55  ;;  %v3210_v48 = vmul.f32 -1.442695, %v5144_v59  ;;  %v3992_v1 = vpop.f32.mrf.mxu0 }
 0x132   : > { %v4313_v54 = vpop.eup %4312  ;;  %4338 = vrcp.f32 %v1857_v28  ;;  %v1855_v36 = vadd.f32 1.0, %v4311_v17  ;;  %v3149_v27 = vmul.f32 -1.442695, %v5147_v30  ;;  %v3213_v19 = vmul.f32 -1.442695, %v5150_v0 }
 0x133   : > { %v4315_v21 = vpop.eup %4314  ;;  %4340 = vrcp.f32 %v1791_v29  ;;  %v1796_v50 = vadd.f32 1.0, %v4313_v54  ;;  %v3147_v28 = vmul.f32 -1.442695, %v5153_v9  ;;  %v3211_v53 = vmul.f32 -1.442695, %v5156_v7  ;;  %v4056_v29 = vpop.f32.mrf.mxu1 }
 0x134   : > { %v4317_v39 = vpop.eup %4316  ;;  %4342 = vrcp.f32 %v1855_v36  ;;  %v1860_v41 = vadd.f32 1.0, %v4315_v21  ;;  %v3152_v17 = vmul.f32 -1.442695, %v5159_v63  ;;  %v3216_v54 = vmul.f32 -1.442695, %v5163_v61 }
 0x135   : > { %v4319_v51 = vpop.eup %4318  ;;  %4344 = vrcp.f32 %v1796_v50  ;;  %v1794_v43 = vadd.f32 1.0, %v4317_v39  ;;  %v5174_v36 = vadd.f32 %v4866_v6, %v991_v56  ;;  %v5177_v21 = vadd.f32 %v4866_v6, %v1247_v11 }
 0x136   : > { %v4321_v52 = vpop.eup %4320  ;;  %4346 = vrcp.f32 %v1860_v41  ;;  %v1858_v22 = vadd.f32 1.0, %v4319_v51  ;;  %v5182_v10 = vadd.f32 %v3992_v1, %v4866_v6 }
 0x137   : > { %v4323_v15 = vpop.eup %4322  ;;  %4348 = vrcp.f32 %v1794_v43  ;;  %v1797_v26 = vadd.f32 1.0, %v4321_v52  ;;  %v5187_v52 = vadd.f32 %v4056_v29, %v4866_v6 }
 0x138   : > { %v4325_v40 = vpop.eup %4324  ;;  %4350 = vrcp.f32 %v1858_v22  ;;  %v1861_v2 = vadd.f32 1.0, %v4323_v15  ;;  %v994_v22 = vpop.f32.mrf.mxu0 }
 0x139   : > { %v4327_v3 = vpop.eup %4326  ;;  %4352 = vrcp.f32 %v1797_v26  ;;  %v1795_v5 = vadd.f32 1.0, %v4325_v40  ;;  %v1250_v26 = vpop.f32.mrf.mxu1 }
 0x13a   : > { %v4329_v20 = vpop.eup %4328  ;;  %4354 = vrcp.f32 %v1861_v2  ;;  %v1859_v13 = vadd.f32 1.0, %v4327_v3 }
 0x13b   : > { %v4331_v23 = vpop.eup %4330  ;;  %4356 = vrcp.f32 %v1795_v5  ;;  %v2176_v39 = vmul.f32 %v4329_v20, %v5035_v16  ;;  %v5196_v5 = vadd.f32 %v4866_v6, %v994_v22  ;;  %v5203_v20 = vpop.f32.mrf.mxu0 }
 0x13c   : > { %v4333_v18 = vpop.eup %4332  ;;  %4358 = vrcp.f32 %v1859_v13  ;;  %v2240_v43 = vmul.f32 %v4331_v23, %v5039_v8  ;;  %v5207_v23 = vpop.f32.mrf.mxu1 }
 0x13d   : > { %v4335_v35 = vpop.eup %4334  ;;  %4360 = vpow2.f32 %v3148_v38  ;;  %v2174_v16 = vmul.f32 %v4333_v18, %v5044_v14  ;;  %v3150_v14 = vmul.f32 -1.442695, %v5174_v36  ;;  %v3217_v18 = vmul.f32 -1.442695, %v5187_v52 }
 0x13e   : > { %v4337_v42 = vpop.eup %4336  ;;  %4362 = vpow2.f32 %v3212_v57  ;;  %v2238_v8 = vmul.f32 %v4335_v35, %v5047_v33  ;;  %v3214_v33 = vmul.f32 -1.442695, %v5177_v21  ;;  %v3153_v57 = vmul.f32 -1.442695, %v5182_v10 }
 0x13f   : > { %v4339_v50 = vpop.eup %4338  ;;  %v2177_v41 = vmul.f32 %v4337_v42, %v5050_v45  ;;  %4364 = vpow2.f32 %v3146_v24 }
 0x140   : > { %v4341_v51 = vpop.eup %4340  ;;  %v2241_v49 = vmul.f32 %v4339_v50, %v5053_v34  ;;  %4366 = vpow2.f32 %v3210_v48 }
 0x141   : > { %v4343_v38 = vpop.eup %4342  ;;  %v3556_v15 = vpack.c.bf16 %v2177_v41, %v2176_v39  ;;  %v2175_v45 = vmul.f32 %v4341_v51, %v5056_v46  ;;  %4368 = vpow2.f32 %v3149_v27 }
 0x142   : > { %v4345_v40 = vpop.eup %4344  ;;  %v3716_v2 = vpack.c.bf16 %v2241_v49, %v2240_v43  ;;  %v2239_v34 = vmul.f32 %v4343_v38, %v5059_v32  ;;  %4370 = vpow2.f32 %v3213_v19  ;;  %v5201_v32 = vadd.f32 %v4866_v6, %v1250_v26 }
 0x143   : > { %v4347_v56 = vpop.eup %4346  ;;  %3836 = vst [vmem:[%s4989_s27 + $0x48] sm:$0xff] %v3556_v15   ;;  %v3551_v3 = vpack.c.bf16 %v2175_v45, %v2174_v16  ;;  %4372 = vpow2.f32 %v3147_v28  ;;  %v2180_v27 = vmul.f32 %v4345_v40, %v5062_v25  ;;  %v3151_v19 = vmul.f32 -1.442695, %v5196_v5 }
 0x144   : > { %v4349_v46 = vpop.eup %4348  ;;  %3868 = vst [vmem:[%s4989_s27 + $0x148] sm:$0xff] %v3716_v2   ;;  %v3711_v11 = vpack.c.bf16 %v2239_v34, %v2238_v8  ;;  %4374 = vpow2.f32 %v3211_v53  ;;  %v2244_v35 = vmul.f32 %v4347_v56, %v5066_v37  ;;  %v3215_v53 = vmul.f32 -1.442695, %v5201_v32 }
 0x145   : > { %v4351_v13 = vpop.eup %4350  ;;  %3835 = vst [vmem:[%s4989_s27 + $0x40] sm:$0xff] %v3551_v3   ;;  %4376 = vpow2.f32 %v3152_v17  ;;  %v5217_v17 = vpop.f32.mrf.mxu0  ;;  %v2178_v42 = vmul.f32 %v4349_v46, %v5077_v60 }
 0x146   : > { %v4353_v24 = vpop.eup %4352  ;;  %3867 = vst [vmem:[%s4989_s27 + $0x140] sm:$0xff] %v3711_v11   ;;  %4378 = vpow2.f32 %v3216_v54  ;;  %v1263_v54 = vpop.f32.mrf.mxu1  ;;  %v2242_v37 = vmul.f32 %v4351_v13, %v5080_v62  ;;  %v5230_v11 = vld [vmem:[%s5637_s2] ss:$0 sm:$0xff] }
 0x147   : > { %v4355_v48 = vpop.eup %4354  ;;  %v2181_v6 = vmul.f32 %v4353_v24, %v5085_v4  ;;  %4380 = vpow2.f32 %v3150_v14  ;;  %v3996_v22 = vpop.f32.mrf.mxu0 }
 0x148   : > { %v4357_v1 = vpop.eup %4356  ;;  %v2245_v28 = vmul.f32 %v4355_v48, %v5090_v12  ;;  %4382 = vpow2.f32 %v3214_v33  ;;  %v4060_v16 = vpop.f32.mrf.mxu1  ;;  %v5234_v33 = vadd.f32 %v5230_v11, %v5203_v20 }
 0x149   : > { %v4359_v29 = vpop.eup %4358  ;;  %v3566_v25 = vpack.c.bf16 %v2181_v6, %v2180_v27  ;;  %v2179_v4 = vmul.f32 %v4357_v1, %v5099_v31  ;;  %4384 = vpow2.f32 %v3153_v57  ;;  %v1010_v2 = vpop.f32.mrf.mxu0 }
 0x14a   : > { %v4361_v50 = vpop.eup %4360  ;;  %v3726_v12 = vpack.c.bf16 %v2245_v28, %v2244_v35  ;;  %v2243_v39 = vmul.f32 %v4359_v29, %v5104_v58  ;;  %4386 = vpow2.f32 %v3217_v18  ;;  %v1266_v3 = vpop.f32.mrf.mxu1  ;;  %v3156_v20 = vmul.f32 -1.442695, %v5234_v33 }
 0x14b   : > { %v4363_v41 = vpop.eup %4362  ;;  %3838 = vst [vmem:[%s4989_s27 + $0x58] sm:$0xff] %v3566_v25   ;;  %v3561_v51 = vpack.c.bf16 %v2179_v4, %v2178_v42  ;;  %v1800_v43 = vadd.f32 1.0, %v4361_v50  ;;  %4388 = vpow2.f32 %v3151_v19  ;;  %v3999_v48 = vpop.f32.mrf.mxu0  ;;  %v5238_v19 = vadd.f32 %v5230_v11, %v5207_v23 }
 0x14c   : > { %v4365_v60 = vpop.eup %4364  ;;  %3870 = vst [vmem:[%s4989_s27 + $0x158] sm:$0xff] %v3726_v12   ;;  %v3721_v49 = vpack.c.bf16 %v2243_v39, %v2242_v37  ;;  %v1864_v31 = vadd.f32 1.0, %v4363_v41  ;;  %4390 = vpow2.f32 %v3215_v53  ;;  %v4063_v1 = vpop.f32.mrf.mxu1  ;;  %v5243_v53 = vadd.f32 %v5230_v11, %v5217_v17 }
 0x14d   : > { %v4367_v38 = vpop.eup %4366  ;;  %3837 = vst [vmem:[%s4989_s27 + $0x50] sm:$0xff] %v3561_v51   ;;  %4392 = vrcp.f32 %v1800_v43  ;;  %v1798_v62 = vadd.f32 1.0, %v4365_v60  ;;  %v5246_v25 = vadd.f32 %v5230_v11, %v1263_v54  ;;  %v5249_v4 = vadd.f32 %v5230_v11, %v3996_v22  ;;  %v1023_v17 = vpop.f32.mrf.mxu0 }
 0x14e   : > { %v4369_v15 = vpop.eup %4368  ;;  %3869 = vst [vmem:[%s4989_s27 + $0x150] sm:$0xff] %v3721_v49   ;;  %4394 = vrcp.f32 %v1864_v31  ;;  %v1862_v58 = vadd.f32 1.0, %v4367_v38  ;;  %v5252_v37 = vadd.f32 %v5230_v11, %v4060_v16  ;;  %v5255_v12 = vadd.f32 %v5230_v11, %v1010_v2  ;;  %v1279_v43 = vpop.f32.mrf.mxu1 }
 0x14f   : > { %v4371_v45 = vpop.eup %4370  ;;  %4396 = vrcp.f32 %v1798_v62  ;;  %v1801_v26 = vadd.f32 1.0, %v4369_v15  ;;  %v5258_v51 = vadd.f32 %v5230_v11, %v1266_v3  ;;  %v5261_v54 = vadd.f32 %v5230_v11, %v3999_v48 }
 0x150   : > { %v4373_v40 = vpop.eup %4372  ;;  %4398 = vrcp.f32 %v1862_v58  ;;  %v1865_v8 = vadd.f32 1.0, %v4371_v45  ;;  %v3220_v31 = vmul.f32 -1.442695, %v5238_v19  ;;  %v5265_v22 = vadd.f32 %v5230_v11, %v4063_v1 }
 0x151   : > { %v4375_v34 = vpop.eup %4374  ;;  %4400 = vrcp.f32 %v1801_v26  ;;  %v1799_v56 = vadd.f32 1.0, %v4373_v40  ;;  %v3154_v62 = vmul.f32 -1.442695, %v5243_v53  ;;  %v3218_v15 = vmul.f32 -1.442695, %v5246_v25  ;;  %v4000_v26 = vpop.f32.mrf.mxu0 }
 0x152   : > { %v4377_v14 = vpop.eup %4376  ;;  %4402 = vrcp.f32 %v1865_v8  ;;  %v1863_v46 = vadd.f32 1.0, %v4375_v34  ;;  %v3157_v58 = vmul.f32 -1.442695, %v5249_v4  ;;  %v3221_v45 = vmul.f32 -1.442695, %v5252_v37 }
 0x153   : > { %v4379_v13 = vpop.eup %4378  ;;  %4404 = vrcp.f32 %v1799_v56  ;;  %v1804_v57 = vadd.f32 1.0, %v4377_v14  ;;  %v3155_v8 = vmul.f32 -1.442695, %v5255_v12  ;;  %v3219_v2 = vmul.f32 -1.442695, %v5258_v51  ;;  %v4064_v56 = vpop.f32.mrf.mxu1 }
 0x154   : > { %v4381_v24 = vpop.eup %4380  ;;  %4406 = vrcp.f32 %v1863_v46  ;;  %v1868_v18 = vadd.f32 1.0, %v4379_v13  ;;  %v3160_v34 = vmul.f32 -1.442695, %v5261_v54  ;;  %v3224_v14 = vmul.f32 -1.442695, %v5265_v22 }
 0x155   : > { %v4383_v27 = vpop.eup %4382  ;;  %4408 = vrcp.f32 %v1804_v57  ;;  %v1802_v6 = vadd.f32 1.0, %v4381_v24  ;;  %v5276_v46 = vadd.f32 %v5230_v11, %v1023_v17  ;;  %v5279_v13 = vadd.f32 %v5230_v11, %v1279_v43 }
 0x156   : > { %v4385_v35 = vpop.eup %4384  ;;  %4410 = vrcp.f32 %v1868_v18  ;;  %v1866_v28 = vadd.f32 1.0, %v4383_v27  ;;  %v5284_v48 = vadd.f32 %v5230_v11, %v4000_v26 }
 0x157   : > { %v4387_v29 = vpop.eup %4386  ;;  %4412 = vrcp.f32 %v1802_v6  ;;  %v1805_v42 = vadd.f32 1.0, %v4385_v35  ;;  %v5289_v35 = vadd.f32 %v5230_v11, %v4064_v56 }
 0x158   : > { %v4389_v23 = vpop.eup %4388  ;;  %4414 = vrcp.f32 %v1866_v28  ;;  %v1869_v50 = vadd.f32 1.0, %v4387_v29  ;;  %v1026_v28 = vpop.f32.mrf.mxu0 }
 0x159   : > { %v4391_v39 = vpop.eup %4390  ;;  %4416 = vrcp.f32 %v1805_v42  ;;  %v1803_v41 = vadd.f32 1.0, %v4389_v23  ;;  %v1282_v42 = vpop.f32.mrf.mxu1 }
 0x15a   : > { %v4393_v60 = vpop.eup %4392  ;;  %4418 = vrcp.f32 %v1869_v50  ;;  %v1867_v49 = vadd.f32 1.0, %v4391_v39 }
 0x15b   : > { %v4395_v38 = vpop.eup %4394  ;;  %4420 = vrcp.f32 %v1803_v41  ;;  %v2184_v24 = vmul.f32 %v4393_v60, %v5132_v47  ;;  %v5298_v41 = vadd.f32 %v5230_v11, %v1026_v28  ;;  %v5305_v60 = vpop.f32.mrf.mxu0 }
 0x15c   : > { %v4397_v16 = vpop.eup %4396  ;;  %4422 = vrcp.f32 %v1867_v49  ;;  %v2248_v6 = vmul.f32 %v4395_v38, %v5136_v44  ;;  %v5309_v38 = vpop.f32.mrf.mxu1 }
 0x15d   : > { %v4399_v40 = vpop.eup %4398  ;;  %4424 = vpow2.f32 %v3156_v20  ;;  %v2182_v47 = vmul.f32 %v4397_v16, %v5141_v55  ;;  %v3158_v55 = vmul.f32 -1.442695, %v5276_v46  ;;  %v3225_v16 = vmul.f32 -1.442695, %v5289_v35  ;;  %v5319_v56 = vpop.f32.mrf.mxu0 }
 0x15e   : > { %v4401_v3 = vpop.eup %4400  ;;  %4426 = vpow2.f32 %v3220_v31  ;;  %v2246_v44 = vmul.f32 %v4399_v40, %v5144_v59  ;;  %v3222_v59 = vmul.f32 -1.442695, %v5279_v13  ;;  %v3161_v31 = vmul.f32 -1.442695, %v5284_v48 }
 0x15f   : > { %v4403_v57 = vpop.eup %4402  ;;  %v2185_v18 = vmul.f32 %v4401_v3, %v5147_v30  ;;  %4428 = vpow2.f32 %v3154_v62  ;;  %v3159_v26 = vmul.f32 -1.442695, %v5298_v41 }
 0x160   : > { %v4405_v27 = vpop.eup %4404  ;;  %v2249_v1 = vmul.f32 %v4403_v57, %v5150_v0  ;;  %4430 = vpow2.f32 %v3218_v15  ;;  %v1295_v57 = vpop.f32.mrf.mxu1 }
 0x161   : > { %v4407_v20 = vpop.eup %4406  ;;  %v3576_v29 = vpack.c.bf16 %v2185_v18, %v2184_v24  ;;  %v2183_v30 = vmul.f32 %v4405_v27, %v5153_v9  ;;  %4432 = vpow2.f32 %v3157_v58 }
 0x162   : > { %v4409_v23 = vpop.eup %4408  ;;  %v3736_v50 = vpack.c.bf16 %v2249_v1, %v2248_v6  ;;  %v2247_v0 = vmul.f32 %v4407_v20, %v5156_v7  ;;  %4434 = vpow2.f32 %v3221_v45  ;;  %v5303_v7 = vadd.f32 %v5230_v11, %v1282_v42  ;;  %v4004_v20 = vpop.f32.mrf.mxu0 }
 0x163   : > { %v4411_v17 = vpop.eup %4410  ;;  %3840 = vst [vmem:[%s4989_s27 + $0x68] sm:$0xff] %v3576_v29   ;;  %v3571_v39 = vpack.c.bf16 %v2183_v30, %v2182_v47  ;;  %4436 = vpow2.f32 %v3155_v8  ;;  %v2188_v58 = vmul.f32 %v4409_v23, %v5159_v63  ;;  %v4068_v29 = vpop.f32.mrf.mxu1 }
 0x164   : > { %v4413_v9 = vpop.eup %4412  ;;  %3872 = vst [vmem:[%s4989_s27 + $0x168] sm:$0xff] %v3736_v50   ;;  %v3731_v43 = vpack.c.bf16 %v2247_v0, %v2246_v44  ;;  %4438 = vpow2.f32 %v3219_v2  ;;  %v2252_v8 = vmul.f32 %v4411_v17, %v5163_v61  ;;  %v1042_v0 = vpop.f32.mrf.mxu0 }
 0x165   : > { %v4415_v49 = vpop.eup %4414  ;;  %3839 = vst [vmem:[%s4989_s27 + $0x60] sm:$0xff] %v3571_v39   ;;  %4440 = vpow2.f32 %v3160_v34  ;;  %v3223_v34 = vmul.f32 -1.442695, %v5303_v7 }
 0x166   : > { %v4417_v62 = vpop.eup %4416  ;;  %3871 = vst [vmem:[%s4989_s27 + $0x160] sm:$0xff] %v3731_v43   ;;  %4442 = vpow2.f32 %v3224_v14  ;;  %v2186_v14 = vmul.f32 %v4413_v9, %v5174_v36  ;;  %v2250_v61 = vmul.f32 %v4415_v49, %v5177_v21 }
 0x167   : > { %v4419_v15 = vpop.eup %4418  ;;  %v2189_v45 = vmul.f32 %v4417_v62, %v5182_v10  ;;  %4444 = vpow2.f32 %v3158_v55  ;;  %v1298_v55 = vpop.f32.mrf.mxu1 }
 0x168   : > { %v4421_v40 = vpop.eup %4420  ;;  %v2253_v2 = vmul.f32 %v4419_v15, %v5187_v52  ;;  %4446 = vpow2.f32 %v3222_v59  ;;  %v5331_v59 = vadd.f32 %v5230_v11, %v5305_v60  ;;  %v4007_v15 = vpop.f32.mrf.mxu0 }
 0x169   : > { %v4423_v3 = vpop.eup %4422  ;;  %v3586_v63 = vpack.c.bf16 %v2189_v45, %v2188_v58  ;;  %v2187_v10 = vmul.f32 %v4421_v40, %v5196_v5  ;;  %4448 = vpow2.f32 %v3161_v31  ;;  %v4071_v40 = vpop.f32.mrf.mxu1 }
 0x16a   : > { %v4425_v24 = vpop.eup %4424  ;;  %v3746_v52 = vpack.c.bf16 %v2253_v2, %v2252_v8  ;;  %v2251_v18 = vmul.f32 %v4423_v3, %v5201_v32  ;;  %4450 = vpow2.f32 %v3225_v16  ;;  %v3164_v60 = vmul.f32 -1.442695, %v5331_v59 }
 0x16b   : > { %v4427_v27 = vpop.eup %4426  ;;  %3842 = vst [vmem:[%s4989_s27 + $0x78] sm:$0xff] %v3586_v63   ;;  %v3581_v6 = vpack.c.bf16 %v2187_v10, %v2186_v14  ;;  %v1808_v1 = vadd.f32 1.0, %v4425_v24  ;;  %4452 = vpow2.f32 %v3159_v26  ;;  %v5335_v26 = vadd.f32 %v5230_v11, %v5309_v38 }
 0x16c   : > { %v4429_v36 = vpop.eup %4428  ;;  %3874 = vst [vmem:[%s4989_s27 + $0x178] sm:$0xff] %v3746_v52   ;;  %v3741_v28 = vpack.c.bf16 %v2251_v18, %v2250_v61  ;;  %v1872_v5 = vadd.f32 1.0, %v4427_v27  ;;  %4454 = vpow2.f32 %v3223_v34  ;;  %v5340_v34 = vadd.f32 %v5230_v11, %v5319_v56  ;;  %v1055_v56 = vpop.f32.mrf.mxu0 }
 0x16d   : > { %v4431_v47 = vpop.eup %4430  ;;  %3841 = vst [vmem:[%s4989_s27 + $0x70] sm:$0xff] %v3581_v6   ;;  %4456 = vrcp.f32 %v1808_v1  ;;  %v1806_v21 = vadd.f32 1.0, %v4429_v36  ;;  %v5343_v63 = vadd.f32 %v5230_v11, %v1295_v57  ;;  %v5346_v10 = vadd.f32 %v5230_v11, %v4004_v20  ;;  %v1311_v1 = vpop.f32.mrf.mxu1 }
 0x16e   : > { %v4433_v30 = vpop.eup %4432  ;;  %3873 = vst [vmem:[%s4989_s27 + $0x170] sm:$0xff] %v3741_v28   ;;  %4458 = vrcp.f32 %v1872_v5  ;;  %v1870_v32 = vadd.f32 1.0, %v4431_v47  ;;  %v5349_v61 = vadd.f32 %v5230_v11, %v4068_v29  ;;  %v5352_v52 = vadd.f32 %v5230_v11, %v1042_v0 }
 0x16f   : > { %v4435_v42 = vpop.eup %4434  ;;  %4460 = vrcp.f32 %v1806_v21  ;;  %v1809_v23 = vadd.f32 1.0, %v4433_v30  ;;  %v5355_v6 = vadd.f32 %v5230_v11, %v1298_v55  ;;  %v5358_v57 = vadd.f32 %v5230_v11, %v4007_v15 }
 0x170   : > { %v4437_v44 = vpop.eup %4436  ;;  %4462 = vrcp.f32 %v1870_v32  ;;  %v1873_v50 = vadd.f32 1.0, %v4435_v42  ;;  %v3228_v5 = vmul.f32 -1.442695, %v5335_v26  ;;  %v5362_v20 = vadd.f32 %v5230_v11, %v4071_v40 }
 0x171   : > { %v4439_v17 = vpop.eup %4438  ;;  %4464 = vrcp.f32 %v1809_v23  ;;  %v1807_v39 = vadd.f32 1.0, %v4437_v44  ;;  %v3162_v21 = vmul.f32 -1.442695, %v5340_v34  ;;  %v3226_v30 = vmul.f32 -1.442695, %v5343_v63  ;;  %v4008_v23 = vpop.f32.mrf.mxu0 }
 0x172   : > { %v4441_v9 = vpop.eup %4440  ;;  %4466 = vrcp.f32 %v1873_v50  ;;  %v1871_v43 = vadd.f32 1.0, %v4439_v17  ;;  %v3165_v32 = vmul.f32 -1.442695, %v5346_v10  ;;  %v3229_v42 = vmul.f32 -1.442695, %v5349_v61 }
 0x173   : > { %v4443_v49 = vpop.eup %4442  ;;  %4468 = vrcp.f32 %v1807_v39  ;;  %v1812_v31 = vadd.f32 1.0, %v4441_v9  ;;  %v3163_v50 = vmul.f32 -1.442695, %v5352_v52  ;;  %v3227_v0 = vmul.f32 -1.442695, %v5355_v6  ;;  %v4072_v39 = vpop.f32.mrf.mxu1 }
 0x174   : > { %v4445_v62 = vpop.eup %4444  ;;  %4470 = vrcp.f32 %v1871_v43  ;;  %v1876_v16 = vadd.f32 1.0, %v4443_v49  ;;  %v3168_v17 = vmul.f32 -1.442695, %v5358_v57  ;;  %v3232_v9 = vmul.f32 -1.442695, %v5362_v20 }
 0x175   : > { %v4447_v58 = vpop.eup %4446  ;;  %4472 = vrcp.f32 %v1812_v31  ;;  %v1810_v45 = vadd.f32 1.0, %v4445_v62  ;;  %v5373_v43 = vadd.f32 %v5230_v11, %v1055_v56  ;;  %v5376_v49 = vadd.f32 %v5230_v11, %v1311_v1 }
 0x176   : > { %v4449_v8 = vpop.eup %4448  ;;  %4474 = vrcp.f32 %v1876_v16  ;;  %v1874_v2 = vadd.f32 1.0, %v4447_v58  ;;  %v5381_v15 = vadd.f32 %v5230_v11, %v4008_v23 }
 0x177   : > { %v4451_v3 = vpop.eup %4450  ;;  %4476 = vrcp.f32 %v1810_v45  ;;  %v1813_v14 = vadd.f32 1.0, %v4449_v8  ;;  %v5386_v8 = vadd.f32 %v5230_v11, %v4072_v39 }
 0x178   : > { %v4453_v38 = vpop.eup %4452  ;;  %4478 = vrcp.f32 %v1874_v2  ;;  %v1877_v24 = vadd.f32 1.0, %v4451_v3  ;;  %v1058_v2 = vpop.f32.mrf.mxu0 }
 0x179   : > { %v4455_v18 = vpop.eup %4454  ;;  %4480 = vrcp.f32 %v1813_v14  ;;  %v1811_v27 = vadd.f32 1.0, %v4453_v38  ;;  %v1314_v14 = vpop.f32.mrf.mxu1 }
 0x17a   : > { %v4457_v36 = vpop.eup %4456  ;;  %4482 = vrcp.f32 %v1877_v24  ;;  %v1875_v28 = vadd.f32 1.0, %v4455_v18 }
 0x17b   : > { %v4459_v47 = vpop.eup %4458  ;;  %4484 = vrcp.f32 %v1811_v27  ;;  %v2192_v62 = vmul.f32 %v4457_v36, %v5234_v33  ;;  %v5395_v27 = vadd.f32 %v5230_v11, %v1058_v2  ;;  %v5402_v36 = vpop.f32.mrf.mxu0 }
 0x17c   : > { %v4461_v29 = vpop.eup %4460  ;;  %4486 = vrcp.f32 %v1875_v28  ;;  %v2256_v45 = vmul.f32 %v4459_v47, %v5238_v19  ;;  %v5406_v47 = vpop.f32.mrf.mxu1 }
 0x17d   : > { %v4463_v44 = vpop.eup %4462  ;;  %4488 = vpow2.f32 %v3164_v60  ;;  %v2190_v33 = vmul.f32 %v4461_v29, %v5243_v53  ;;  %v3166_v53 = vmul.f32 -1.442695, %v5373_v43  ;;  %v3233_v29 = vmul.f32 -1.442695, %v5386_v8  ;;  %v5416_v39 = vpop.f32.mrf.mxu0 }
 0x17e   : > { %v4465_v55 = vpop.eup %4464  ;;  %4490 = vpow2.f32 %v3228_v5  ;;  %v2254_v19 = vmul.f32 %v4463_v44, %v5246_v25  ;;  %v3230_v25 = vmul.f32 -1.442695, %v5376_v49  ;;  %v3169_v5 = vmul.f32 -1.442695, %v5381_v15 }
 0x17f   : > { %v4467_v31 = vpop.eup %4466  ;;  %v2193_v16 = vmul.f32 %v4465_v55, %v5249_v4  ;;  %4492 = vpow2.f32 %v3162_v21  ;;  %v3167_v23 = vmul.f32 -1.442695, %v5395_v27 }
 0x180   : > { %v4469_v58 = vpop.eup %4468  ;;  %v2257_v40 = vmul.f32 %v4467_v31, %v5252_v37  ;;  %4494 = vpow2.f32 %v3226_v30  ;;  %v1327_v31 = vpop.f32.mrf.mxu1 }
 0x181   : > { %v4471_v60 = vpop.eup %4470  ;;  %v3596_v3 = vpack.c.bf16 %v2193_v16, %v2192_v62  ;;  %v2191_v4 = vmul.f32 %v4469_v58, %v5255_v12  ;;  %4496 = vpow2.f32 %v3165_v32 }
 0x182   : > { %v4473_v38 = vpop.eup %4472  ;;  %v3756_v24 = vpack.c.bf16 %v2257_v40, %v2256_v45  ;;  %v2255_v37 = vmul.f32 %v4471_v60, %v5258_v51  ;;  %4498 = vpow2.f32 %v3229_v42  ;;  %v5400_v51 = vadd.f32 %v5230_v11, %v1314_v14  ;;  %v4012_v60 = vpop.f32.mrf.mxu0 }
 0x183   : > { %v4475_v56 = vpop.eup %4474  ;;  %3844 = vst [vmem:[%s4989_s27 + $0x88] sm:$0xff] %v3596_v3   ;;  %v3591_v18 = vpack.c.bf16 %v2191_v4, %v2190_v33  ;;  %4500 = vpow2.f32 %v3163_v50  ;;  %v2196_v32 = vmul.f32 %v4473_v38, %v5261_v54  ;;  %v4076_v3 = vpop.f32.mrf.mxu1 }
 0x184   : > { %v4477_v12 = vpop.eup %4476  ;;  %3876 = vst [vmem:[%s4989_s27 + $0x188] sm:$0xff] %v3756_v24   ;;  %v3751_v1 = vpack.c.bf16 %v2255_v37, %v2254_v19  ;;  %4502 = vpow2.f32 %v3227_v0  ;;  %v2260_v50 = vmul.f32 %v4475_v56, %v5265_v22  ;;  %v1074_v37 = vpop.f32.mrf.mxu0 }
 0x185   : > { %v4479_v28 = vpop.eup %4478  ;;  %3843 = vst [vmem:[%s4989_s27 + $0x80] sm:$0xff] %v3591_v18   ;;  %4504 = vpow2.f32 %v3168_v17  ;;  %v3231_v17 = vmul.f32 -1.442695, %v5400_v51 }
 0x186   : > { %v4481_v21 = vpop.eup %4480  ;;  %3875 = vst [vmem:[%s4989_s27 + $0x180] sm:$0xff] %v3751_v1   ;;  %4506 = vpow2.f32 %v3232_v9  ;;  %v2194_v9 = vmul.f32 %v4477_v12, %v5276_v46  ;;  %v2258_v22 = vmul.f32 %v4479_v28, %v5279_v13 }
 0x187   : > { %v4483_v30 = vpop.eup %4482  ;;  %v2197_v42 = vmul.f32 %v4481_v21, %v5284_v48  ;;  %4508 = vpow2.f32 %v3166_v53  ;;  %v1330_v53 = vpop.f32.mrf.mxu1 }
 0x188   : > { %v4485_v44 = vpop.eup %4484  ;;  %v2261_v0 = vmul.f32 %v4483_v30, %v5289_v35  ;;  %4510 = vpow2.f32 %v3230_v25  ;;  %v5428_v25 = vadd.f32 %v5230_v11, %v5402_v36  ;;  %v4015_v30 = vpop.f32.mrf.mxu0 }
 0x189   : > { %v4487_v55 = vpop.eup %4486  ;;  %v3606_v54 = vpack.c.bf16 %v2197_v42, %v2196_v32  ;;  %v2195_v48 = vmul.f32 %v4485_v44, %v5298_v41  ;;  %4512 = vpow2.f32 %v3169_v5  ;;  %v4079_v44 = vpop.f32.mrf.mxu1 }
 0x18a   : > { %v4489_v62 = vpop.eup %4488  ;;  %v3766_v35 = vpack.c.bf16 %v2261_v0, %v2260_v50  ;;  %v2259_v16 = vmul.f32 %v4487_v55, %v5303_v7  ;;  %4514 = vpow2.f32 %v3233_v29  ;;  %v3172_v36 = vmul.f32 -1.442695, %v5428_v25 }
 0x18b   : > { %v4491_v58 = vpop.eup %4490  ;;  %3846 = vst [vmem:[%s4989_s27 + $0x98] sm:$0xff] %v3606_v54   ;;  %v3601_v45 = vpack.c.bf16 %v2195_v48, %v2194_v9  ;;  %v1816_v40 = vadd.f32 1.0, %v4489_v62  ;;  %4516 = vpow2.f32 %v3167_v23  ;;  %v5432_v23 = vadd.f32 %v5230_v11, %v5406_v47 }
 0x18c   : > { %v4493_v46 = vpop.eup %4492  ;;  %3878 = vst [vmem:[%s4989_s27 + $0x198] sm:$0xff] %v3766_v35   ;;  %v3761_v2 = vpack.c.bf16 %v2259_v16, %v2258_v22  ;;  %v1880_v41 = vadd.f32 1.0, %v4491_v58  ;;  %4518 = vpow2.f32 %v3231_v17  ;;  %v5437_v17 = vadd.f32 %v5230_v11, %v5416_v39  ;;  %v1087_v39 = vpop.f32.mrf.mxu0 }
 0x18d   : > { %v4495_v33 = vpop.eup %4494  ;;  %3845 = vst [vmem:[%s4989_s27 + $0x90] sm:$0xff] %v3601_v45   ;;  %4520 = vrcp.f32 %v1816_v40  ;;  %v1814_v13 = vadd.f32 1.0, %v4493_v46  ;;  %v5440_v54 = vadd.f32 %v5230_v11, %v1327_v31  ;;  %v5443_v48 = vadd.f32 %v5230_v11, %v4012_v60  ;;  %v1343_v40 = vpop.f32.mrf.mxu1 }
 0x18e   : > { %v4497_v4 = vpop.eup %4496  ;;  %3877 = vst [vmem:[%s4989_s27 + $0x190] sm:$0xff] %v3761_v2   ;;  %4522 = vrcp.f32 %v1880_v41  ;;  %v1878_v7 = vadd.f32 1.0, %v4495_v33  ;;  %v5446_v22 = vadd.f32 %v5230_v11, %v4076_v3  ;;  %v5449_v35 = vadd.f32 %v5230_v11, %v1074_v37 }
 0x18f   : > { %v4499_v14 = vpop.eup %4498  ;;  %4524 = vrcp.f32 %v1814_v13  ;;  %v1817_v38 = vadd.f32 1.0, %v4497_v4  ;;  %v5452_v45 = vadd.f32 %v5230_v11, %v1330_v53  ;;  %v5455_v31 = vadd.f32 %v5230_v11, %v4015_v30 }
 0x190   : > { %v4501_v19 = vpop.eup %4500  ;;  %4526 = vrcp.f32 %v1878_v7  ;;  %v1881_v24 = vadd.f32 1.0, %v4499_v14  ;;  %v3236_v41 = vmul.f32 -1.442695, %v5432_v23  ;;  %v5459_v60 = vadd.f32 %v5230_v11, %v4079_v44 }
 0x191   : > { %v4503_v56 = vpop.eup %4502  ;;  %4528 = vrcp.f32 %v1817_v38  ;;  %v1815_v18 = vadd.f32 1.0, %v4501_v19  ;;  %v3170_v13 = vmul.f32 -1.442695, %v5437_v17  ;;  %v3234_v4 = vmul.f32 -1.442695, %v5440_v54  ;;  %v4016_v38 = vpop.f32.mrf.mxu0 }
 0x192   : > { %v4505_v12 = vpop.eup %4504  ;;  %4530 = vrcp.f32 %v1881_v24  ;;  %v1879_v1 = vadd.f32 1.0, %v4503_v56  ;;  %v3173_v7 = vmul.f32 -1.442695, %v5443_v48  ;;  %v3237_v14 = vmul.f32 -1.442695, %v5446_v22 }
 0x193   : > { %v4507_v28 = vpop.eup %4506  ;;  %4532 = vrcp.f32 %v1815_v18  ;;  %v1820_v5 = vadd.f32 1.0, %v4505_v12  ;;  %v3171_v24 = vmul.f32 -1.442695, %v5449_v35  ;;  %v3235_v37 = vmul.f32 -1.442695, %v5452_v45  ;;  %v4080_v18 = vpop.f32.mrf.mxu1 }
 0x194   : > { %v4509_v21 = vpop.eup %4508  ;;  %4534 = vrcp.f32 %v1879_v1  ;;  %v1884_v29 = vadd.f32 1.0, %v4507_v28  ;;  %v3176_v56 = vmul.f32 -1.442695, %v5455_v31  ;;  %v3240_v12 = vmul.f32 -1.442695, %v5459_v60 }
 0x195   : > { %v4511_v32 = vpop.eup %4510  ;;  %4536 = vrcp.f32 %v1820_v5  ;;  %v1818_v42 = vadd.f32 1.0, %v4509_v21  ;;  %v5470_v1 = vadd.f32 %v5230_v11, %v1087_v39  ;;  %v5473_v28 = vadd.f32 %v5230_v11, %v1343_v40 }
 0x196   : > { %v4513_v50 = vpop.eup %4512  ;;  %4538 = vrcp.f32 %v1884_v29  ;;  %v1882_v0 = vadd.f32 1.0, %v4511_v32  ;;  %v5478_v30 = vadd.f32 %v5230_v11, %v4016_v38 }
 0x197   : > { %v4515_v55 = vpop.eup %4514  ;;  %4540 = vrcp.f32 %v1818_v42  ;;  %v1821_v9 = vadd.f32 1.0, %v4513_v50  ;;  %v5483_v50 = vadd.f32 %v5230_v11, %v4080_v18 }
 0x198   : > { %v4517_v47 = vpop.eup %4516  ;;  %4542 = vrcp.f32 %v1882_v0  ;;  %v1885_v62 = vadd.f32 1.0, %v4515_v55  ;;  %v1090_v0 = vpop.f32.mrf.mxu0 }
 0x199   : > { %v4519_v16 = vpop.eup %4518  ;;  %4544 = vrcp.f32 %v1821_v9  ;;  %v1819_v58 = vadd.f32 1.0, %v4517_v47  ;;  %v1346_v9 = vpop.f32.mrf.mxu1 }
 0x19a   : > { %v4521_v46 = vpop.eup %4520  ;;  %4546 = vrcp.f32 %v1885_v62  ;;  %v1883_v2 = vadd.f32 1.0, %v4519_v16 }
 0x19b   : > { %v4523_v33 = vpop.eup %4522  ;;  %4548 = vrcp.f32 %v1819_v58  ;;  %v2200_v21 = vmul.f32 %v4521_v46, %v5331_v59  ;;  %v5492_v58 = vadd.f32 %v5230_v11, %v1090_v0  ;;  %v5499_v46 = vpop.f32.mrf.mxu0 }
 0x19c   : > { %v4525_v3 = vpop.eup %4524  ;;  %4550 = vrcp.f32 %v1883_v2  ;;  %v2264_v42 = vmul.f32 %v4523_v33, %v5335_v26  ;;  %v5503_v33 = vpop.f32.mrf.mxu1 }
 0x19d   : > { %v4527_v19 = vpop.eup %4526  ;;  %4552 = vpow2.f32 %v3172_v36  ;;  %v2198_v59 = vmul.f32 %v4525_v3, %v5340_v34  ;;  %v3174_v34 = vmul.f32 -1.442695, %v5470_v1  ;;  %v3241_v3 = vmul.f32 -1.442695, %v5483_v50  ;;  %v5513_v18 = vpop.f32.mrf.mxu0 }
 0x19e   : > { %v4529_v53 = vpop.eup %4528  ;;  %4554 = vpow2.f32 %v3236_v41  ;;  %v2262_v26 = vmul.f32 %v4527_v19, %v5343_v63  ;;  %v3238_v63 = vmul.f32 -1.442695, %v5473_v28  ;;  %v3177_v41 = vmul.f32 -1.442695, %v5478_v30 }
 0x19f   : > { %v4531_v5 = vpop.eup %4530  ;;  %v2201_v29 = vmul.f32 %v4529_v53, %v5346_v10  ;;  %4556 = vpow2.f32 %v3170_v13  ;;  %v3175_v38 = vmul.f32 -1.442695, %v5492_v58 }
 0x1a0   : > { %v4533_v32 = vpop.eup %4532  ;;  %v2265_v44 = vmul.f32 %v4531_v5, %v5349_v61  ;;  %4558 = vpow2.f32 %v3234_v4  ;;  %v1359_v5 = vpop.f32.mrf.mxu1 }
 0x1a1   : > { %v4535_v36 = vpop.eup %4534  ;;  %v3616_v55 = vpack.c.bf16 %v2201_v29, %v2200_v21  ;;  %v2199_v10 = vmul.f32 %v4533_v32, %v5352_v52  ;;  %4560 = vpow2.f32 %v3173_v7 }
 0x1a2   : > { %v4537_v47 = vpop.eup %4536  ;;  %v3776_v62 = vpack.c.bf16 %v2265_v44, %v2264_v42  ;;  %v2263_v61 = vmul.f32 %v4535_v36, %v5355_v6  ;;  %4562 = vpow2.f32 %v3237_v14  ;;  %v5497_v6 = vadd.f32 %v5230_v11, %v1346_v9  ;;  %v4020_v36 = vpop.f32.mrf.mxu0 }
 0x1a3   : > { %v4539_v39 = vpop.eup %4538  ;;  %3848 = vst [vmem:[%s4989_s27 + $0xa8] sm:$0xff] %v3616_v55   ;;  %v3611_v16 = vpack.c.bf16 %v2199_v10, %v2198_v59  ;;  %4564 = vpow2.f32 %v3171_v24  ;;  %v2204_v7 = vmul.f32 %v4537_v47, %v5358_v57  ;;  %v4084_v55 = vpop.f32.mrf.mxu1 }
 0x1a4   : > { %v4541_v52 = vpop.eup %4540  ;;  %3880 = vst [vmem:[%s4989_s27 + $0x1a8] sm:$0xff] %v3776_v62   ;;  %v3771_v40 = vpack.c.bf16 %v2263_v61, %v2262_v26  ;;  %4566 = vpow2.f32 %v3235_v37  ;;  %v2268_v24 = vmul.f32 %v4539_v39, %v5362_v20  ;;  %v1106_v61 = vpop.f32.mrf.mxu0 }
 0x1a5   : > { %v4543_v2 = vpop.eup %4542  ;;  %3847 = vst [vmem:[%s4989_s27 + $0xa0] sm:$0xff] %v3611_v16   ;;  %4568 = vpow2.f32 %v3176_v56  ;;  %v3239_v56 = vmul.f32 -1.442695, %v5497_v6 }
 0x1a6   : > { %v4545_v13 = vpop.eup %4544  ;;  %3879 = vst [vmem:[%s4989_s27 + $0x1a0] sm:$0xff] %v3771_v40   ;;  %4570 = vpow2.f32 %v3240_v12  ;;  %v2202_v12 = vmul.f32 %v4541_v52, %v5373_v43  ;;  %v2266_v20 = vmul.f32 %v4543_v2, %v5376_v49 }
 0x1a7   : > { %v4547_v4 = vpop.eup %4546  ;;  %v2205_v14 = vmul.f32 %v4545_v13, %v5381_v15  ;;  %4572 = vpow2.f32 %v3174_v34  ;;  %v1362_v34 = vpop.f32.mrf.mxu1 }
 0x1a8   : > { %v4549_v19 = vpop.eup %4548  ;;  %v2269_v37 = vmul.f32 %v4547_v4, %v5386_v8  ;;  %4574 = vpow2.f32 %v3238_v63  ;;  %v5525_v63 = vadd.f32 %v5230_v11, %v5499_v46  ;;  %v4023_v4 = vpop.f32.mrf.mxu0 }
 0x1a9   : > { %v4551_v53 = vpop.eup %4550  ;;  %v3626_v57 = vpack.c.bf16 %v2205_v14, %v2204_v7  ;;  %v2203_v15 = vmul.f32 %v4549_v19, %v5395_v27  ;;  %4576 = vpow2.f32 %v3177_v41  ;;  %v4087_v19 = vpop.f32.mrf.mxu1 }
 0x1aa   : > { %v4553_v21 = vpop.eup %4552  ;;  %v3786_v8 = vpack.c.bf16 %v2269_v37, %v2268_v24  ;;  %v2267_v29 = vmul.f32 %v4551_v53, %v5400_v51  ;;  %4578 = vpow2.f32 %v3241_v3  ;;  %v3180_v46 = vmul.f32 -1.442695, %v5525_v63 }
 0x1ab   : > { %v4555_v32 = vpop.eup %4554  ;;  %3850 = vst [vmem:[%s4989_s27 + $0xb8] sm:$0xff] %v3626_v57   ;;  %v3621_v42 = vpack.c.bf16 %v2203_v15, %v2202_v12  ;;  %v1824_v44 = vadd.f32 1.0, %v4553_v21  ;;  %4580 = vpow2.f32 %v3175_v38  ;;  %v5529_v38 = vadd.f32 %v5230_v11, %v5503_v33 }
 0x1ac   : > { %v4557_v43 = vpop.eup %4556  ;;  %3882 = vst [vmem:[%s4989_s27 + $0x1b8] sm:$0xff] %v3786_v8   ;;  %v3781_v0 = vpack.c.bf16 %v2267_v29, %v2266_v20  ;;  %v1888_v27 = vadd.f32 1.0, %v4555_v32  ;;  %4582 = vpow2.f32 %v3239_v56  ;;  %v5534_v56 = vadd.f32 %v5230_v11, %v5513_v18  ;;  %v1119_v18 = vpop.f32.mrf.mxu0 }
 0x1ad   : > { %v4559_v59 = vpop.eup %4558  ;;  %3849 = vst [vmem:[%s4989_s27 + $0xb0] sm:$0xff] %v3621_v42   ;;  %4584 = vrcp.f32 %v1824_v44  ;;  %v1822_v49 = vadd.f32 1.0, %v4557_v43  ;;  %v5537_v57 = vadd.f32 %v5230_v11, %v1359_v5  ;;  %v5540_v15 = vadd.f32 %v5230_v11, %v4020_v36  ;;  %v4681_v5 = vld [vmem:[%s5637_s2] ss:$0 sm:$0xff]  ;;  %v1375_v43 = vpop.f32.mrf.mxu1 }
 0x1ae   : > { %v4561_v10 = vpop.eup %4560  ;;  %3881 = vst [vmem:[%s4989_s27 + $0x1b0] sm:$0xff] %v3781_v0   ;;  %4586 = vrcp.f32 %v1888_v27  ;;  %v1886_v51 = vadd.f32 1.0, %v4559_v59  ;;  %v5543_v20 = vadd.f32 %v5230_v11, %v4084_v55  ;;  %v5546_v8 = vadd.f32 %v5230_v11, %v1106_v61 }
 0x1af   : > { %v4563_v9 = vpop.eup %4562  ;;  %4588 = vrcp.f32 %v1822_v49  ;;  %v1825_v47 = vadd.f32 1.0, %v4561_v10  ;;  %v5551_v42 = vadd.f32 %v4681_v5, %v1362_v34  ;;  %v5553_v44 = vadd.f32 %v4681_v5, %v4023_v4 }
 0x1b0   : > { %v4565_v26 = vpop.eup %4564  ;;  %4590 = vrcp.f32 %v1886_v51  ;;  %v1889_v62 = vadd.f32 1.0, %v4563_v9  ;;  %v3244_v36 = vmul.f32 -1.442695, %v5529_v38  ;;  %v5556_v11 = vadd.f32 %v4681_v5, %v4087_v19 }
 0x1b1   : > { %v4567_v39 = vpop.eup %4566  ;;  %4592 = vrcp.f32 %v1825_v47  ;;  %v1823_v16 = vadd.f32 1.0, %v4565_v26  ;;  %v3178_v49 = vmul.f32 -1.442695, %v5534_v56  ;;  %v3242_v10 = vmul.f32 -1.442695, %v5537_v57  ;;  %v4024_v47 = vpop.f32.mrf.mxu0 }
 0x1b2   : > { %v4569_v52 = vpop.eup %4568  ;;  %4594 = vrcp.f32 %v1889_v62  ;;  %v1887_v40 = vadd.f32 1.0, %v4567_v39  ;;  %v3181_v51 = vmul.f32 -1.442695, %v5540_v15  ;;  %v3245_v9 = vmul.f32 -1.442695, %v5543_v20 }
 0x1b3   : > { %v4571_v2 = vpop.eup %4570  ;;  %4596 = vrcp.f32 %v1823_v16  ;;  %v1828_v41 = vadd.f32 1.0, %v4569_v52  ;;  %v3179_v62 = vmul.f32 -1.442695, %v5546_v8  ;;  %v3243_v61 = vmul.f32 -1.442695, %v5551_v42  ;;  %v4088_v16 = vpop.f32.mrf.mxu1 }
 0x1b4   : > { %v4573_v13 = vpop.eup %4572  ;;  %4598 = vrcp.f32 %v1887_v40  ;;  %v1892_v3 = vadd.f32 1.0, %v4571_v2  ;;  %v3184_v39 = vmul.f32 -1.442695, %v5553_v44  ;;  %v3248_v52 = vmul.f32 -1.442695, %v5556_v11 }
 0x1b5   : > { %v4575_v7 = vpop.eup %4574  ;;  %4600 = vrcp.f32 %v1828_v41  ;;  %v1826_v14 = vadd.f32 1.0, %v4573_v13  ;;  %v5566_v40 = vadd.f32 %v4681_v5, %v1119_v18  ;;  %v5568_v2 = vadd.f32 %v4681_v5, %v1375_v43 }
 0x1b6   : > { %v4577_v24 = vpop.eup %4576  ;;  %4602 = vrcp.f32 %v1892_v3  ;;  %v1890_v37 = vadd.f32 1.0, %v4575_v7  ;;  %v5572_v4 = vadd.f32 %v4681_v5, %v4024_v47 }
 0x1b7   : > { %v4579_v53 = vpop.eup %4578  ;;  %4604 = vrcp.f32 %v1826_v14  ;;  %v1829_v12 = vadd.f32 1.0, %v4577_v24  ;;  %v5576_v24 = vadd.f32 %v4681_v5, %v4088_v16 }
 0x1b8   : > { %v4581_v33 = vpop.eup %4580  ;;  %4606 = vrcp.f32 %v1890_v37  ;;  %v1893_v21 = vadd.f32 1.0, %v4579_v53  ;;  %v1122_v37 = vpop.f32.mrf.mxu0 }
 0x1b9   : > { %v4583_v29 = vpop.eup %4582  ;;  %4608 = vrcp.f32 %v1829_v12  ;;  %v1827_v32 = vadd.f32 1.0, %v4581_v33 }
 0x1ba   : > { %v4585_v0 = vpop.eup %4584  ;;  %4610 = vrcp.f32 %v1893_v21  ;;  %v1891_v27 = vadd.f32 1.0, %v4583_v29 }
 0x1bb   : > { %v4587_v59 = vpop.eup %4586  ;;  %4612 = vrcp.f32 %v1827_v32  ;;  %v2208_v13 = vmul.f32 %v4585_v0, %v5428_v25  ;;  %v5584_v32 = vadd.f32 %v4681_v5, %v1122_v37 }
 0x1bc   : > { %v4589_v55 = vpop.eup %4588  ;;  %4614 = vrcp.f32 %v1891_v27  ;;  %v2272_v14 = vmul.f32 %v4587_v59, %v5432_v23  ;;  %v3249_v59 = vmul.f32 -1.442695, %v5576_v24 }
 0x1bd   : > { %v4591_v26 = vpop.eup %4590  ;;  %4616 = vpow2.f32 %v3180_v46  ;;  %v2206_v53 = vmul.f32 %v4589_v55, %v5437_v17  ;;  %v3182_v17 = vmul.f32 -1.442695, %v5566_v40 }
 0x1be   : > { %v4593_v34 = vpop.eup %4592  ;;  %4618 = vpow2.f32 %v3244_v36  ;;  %v2270_v21 = vmul.f32 %v4591_v26, %v5440_v54  ;;  %v3246_v54 = vmul.f32 -1.442695, %v5568_v2 }
 0x1bf   : > { %v4595_v41 = vpop.eup %4594  ;;  %v2209_v3 = vmul.f32 %v4593_v34, %v5443_v48  ;;  %4620 = vpow2.f32 %v3178_v49  ;;  %v1378_v48 = vpop.f32.mrf.mxu1 }
 0x1c0   : > { %v4597_v7 = vpop.eup %4596  ;;  %v2273_v19 = vmul.f32 %v4595_v41, %v5446_v22  ;;  %4622 = vpow2.f32 %v3242_v10  ;;  %v5588_v0 = vadd.f32 %v4681_v5, %v1378_v48 }
 0x1c1   : > { %v4599_v46 = vpop.eup %4598  ;;  %v3636_v12 = vpack.c.bf16 %v2209_v3, %v2208_v13  ;;  %v2207_v25 = vmul.f32 %v4597_v7, %v5449_v35  ;;  %4624 = vpow2.f32 %v3181_v51  ;;  %v3183_v51 = vmul.f32 -1.442695, %v5584_v32 }
 0x1c2   : > { %v4601_v33 = vpop.eup %4600  ;;  %v3796_v23 = vpack.c.bf16 %v2273_v19, %v2272_v14  ;;  %v2271_v22 = vmul.f32 %v4599_v46, %v5452_v45  ;;  %4626 = vpow2.f32 %v3245_v9  ;;  %v3185_v45 = vmul.f32 -1.442695, %v5572_v4 }
 0x1c3   : > { %v4603_v18 = vpop.eup %4602  ;;  %3852 = vst [vmem:[%s4989_s27 + $0xc8] sm:$0xff] %v3636_v12   ;;  %v3631_v29 = vpack.c.bf16 %v2207_v25, %v2206_v53  ;;  %4628 = vpow2.f32 %v3179_v62  ;;  %v2212_v55 = vmul.f32 %v4601_v33, %v5455_v31  ;;  %v3247_v26 = vmul.f32 -1.442695, %v5588_v0 }
 0x1c4   : > { %v4605_v35 = vpop.eup %4604  ;;  %3884 = vst [vmem:[%s4989_s27 + $0x1c8] sm:$0xff] %v3796_v23   ;;  %v3791_v43 = vpack.c.bf16 %v2271_v22, %v2270_v21  ;;  %4630 = vpow2.f32 %v3243_v61  ;;  %v2276_v9 = vmul.f32 %v4603_v18, %v5459_v60 }
 0x1c5   : > { %v4607_v27 = vpop.eup %4606  ;;  %3851 = vst [vmem:[%s4989_s27 + $0xc0] sm:$0xff] %v3631_v29   ;;  %4632 = vpow2.f32 %v3184_v39  ;;  %v2210_v61 = vmul.f32 %v4605_v35, %v5470_v1 }
 0x1c6   : > { %v4609_v36 = vpop.eup %4608  ;;  %3883 = vst [vmem:[%s4989_s27 + $0x1c0] sm:$0xff] %v3791_v43   ;;  %4634 = vpow2.f32 %v3248_v52  ;;  %v2274_v16 = vmul.f32 %v4607_v27, %v5473_v28 }
 0x1c7   : > { %v4611_v49 = vpop.eup %4610  ;;  %v2213_v10 = vmul.f32 %v4609_v36, %v5478_v30  ;;  %4636 = vpow2.f32 %v3182_v17 }
 0x1c8   : > { %v4613_v5 = vpop.eup %4612  ;;  %v2277_v47 = vmul.f32 %v4611_v49, %v5483_v50  ;;  %4638 = vpow2.f32 %v3246_v54 }
 0x1c9   : > { %v4615_v62 = vpop.eup %4614  ;;  %v3646_v39 = vpack.c.bf16 %v2213_v10, %v2212_v55  ;;  %v2211_v31 = vmul.f32 %v4613_v5, %v5492_v58  ;;  %4640 = vpow2.f32 %v3185_v45 }
 0x1ca   : > { %v4617_v30 = vpop.eup %4616  ;;  %v3806_v34 = vpack.c.bf16 %v2277_v47, %v2276_v9  ;;  %v2275_v60 = vmul.f32 %v4615_v62, %v5497_v6  ;;  %4642 = vpow2.f32 %v3249_v59 }
 0x1cb   : > { %v4619_v50 = vpop.eup %4618  ;;  %3854 = vst [vmem:[%s4989_s27 + $0xd8] sm:$0xff] %v3646_v39   ;;  %v3641_v52 = vpack.c.bf16 %v2211_v31, %v2210_v61  ;;  %v1832_v41 = vadd.f32 1.0, %v4617_v30  ;;  %4644 = vpow2.f32 %v3183_v51 }
 0x1cc   : > { %v4621_v13 = vpop.eup %4620  ;;  %3886 = vst [vmem:[%s4989_s27 + $0x1d8] sm:$0xff] %v3806_v34   ;;  %v3801_v1 = vpack.c.bf16 %v2275_v60, %v2274_v16  ;;  %v1896_v3 = vadd.f32 1.0, %v4619_v50  ;;  %4646 = vpow2.f32 %v3247_v26 }
 0x1cd   : > { %v4623_v58 = vpop.eup %4622  ;;  %3853 = vst [vmem:[%s4989_s27 + $0xd0] sm:$0xff] %v3641_v52   ;;  %4648 = vrcp.f32 %v1832_v41  ;;  %v1830_v7 = vadd.f32 1.0, %v4621_v13 }
 0x1ce   : > { %v4625_v28 = vpop.eup %4624  ;;  %3885 = vst [vmem:[%s4989_s27 + $0x1d0] sm:$0xff] %v3801_v1   ;;  %4650 = vrcp.f32 %v1896_v3  ;;  %v1894_v6 = vadd.f32 1.0, %v4623_v58 }
 0x1cf   : > { %v4627_v14 = vpop.eup %4626  ;;  %4652 = vrcp.f32 %v1830_v7  ;;  %v1833_v19 = vadd.f32 1.0, %v4625_v28 }
 0x1d0   : > { %v4629_v37 = vpop.eup %4628  ;;  %4654 = vrcp.f32 %v1894_v6  ;;  %v1897_v46 = vadd.f32 1.0, %v4627_v14 }
 0x1d1   : > { %v4631_v53 = vpop.eup %4630  ;;  %4656 = vrcp.f32 %v1833_v19  ;;  %v1831_v12 = vadd.f32 1.0, %v4629_v37 }
 0x1d2   : > { %v4633_v25 = vpop.eup %4632  ;;  %4658 = vrcp.f32 %v1897_v46  ;;  %v1895_v48 = vadd.f32 1.0, %v4631_v53 }
 0x1d3   : > { %v4635_v33 = vpop.eup %4634  ;;  %4660 = vrcp.f32 %v1831_v12  ;;  %v1836_v21 = vadd.f32 1.0, %v4633_v25 }
 0x1d4   : > { %v4637_v23 = vpop.eup %4636  ;;  %4662 = vrcp.f32 %v1895_v48  ;;  %v1900_v22 = vadd.f32 1.0, %v4635_v33 }
 0x1d5   : > { %v4639_v18 = vpop.eup %4638  ;;  %4664 = vrcp.f32 %v1836_v21  ;;  %v1834_v29 = vadd.f32 1.0, %v4637_v23 }
 0x1d6   : > { %v4641_v17 = vpop.eup %4640  ;;  %4666 = vrcp.f32 %v1900_v22  ;;  %v1898_v35 = vadd.f32 1.0, %v4639_v18 }
 0x1d7   : > { %v4643_v43 = vpop.eup %4642  ;;  %4668 = vrcp.f32 %v1834_v29  ;;  %v1837_v54 = vadd.f32 1.0, %v4641_v17 }
 0x1d8   : > { %v4645_v27 = vpop.eup %4644  ;;  %4670 = vrcp.f32 %v1898_v35  ;;  %v1901_v45 = vadd.f32 1.0, %v4643_v43 }
 0x1d9   : > { %v4647_v36 = vpop.eup %4646  ;;  %4672 = vrcp.f32 %v1837_v54  ;;  %v1835_v59 = vadd.f32 1.0, %v4645_v27 }
 0x1da   : > { %v4649_v49 = vpop.eup %4648  ;;  %4674 = vrcp.f32 %v1901_v45  ;;  %v1899_v55 = vadd.f32 1.0, %v4647_v36 }
 0x1db   : > { %v4651_v10 = vpop.eup %4650  ;;  %4676 = vrcp.f32 %v1835_v59  ;;  %v2216_v26 = vmul.f32 %v4649_v49, %v5525_v63 }
 0x1dc   : > { %v4653_v51 = vpop.eup %4652  ;;  %4678 = vrcp.f32 %v1899_v55  ;;  %v2280_v39 = vmul.f32 %v4651_v10, %v5529_v38 }
 0x1dd   : > { %v4655_v5 = vpop.eup %4654  ;;  %v2214_v16 = vmul.f32 %v4653_v51, %v5534_v56 }
 0x1de   : > { %v4657_v9 = vpop.eup %4656  ;;  %v2278_v52 = vmul.f32 %v4655_v5, %v5537_v57 }
 0x1df   : > { %v4659_v47 = vpop.eup %4658  ;;  %v2217_v62 = vmul.f32 %v4657_v9, %v5540_v15 }
 0x1e0   : > { %v4661_v61 = vpop.eup %4660  ;;  %v2281_v31 = vmul.f32 %v4659_v47, %v5543_v20 }
 0x1e1   : > { %v4663_v30 = vpop.eup %4662  ;;  %v3656_v34 = vpack.c.bf16 %v2217_v62, %v2216_v26  ;;  %v2215_v60 = vmul.f32 %v4661_v61, %v5546_v8 }
 0x1e2   : > { %v4665_v50 = vpop.eup %4664  ;;  %v3816_v63 = vpack.c.bf16 %v2281_v31, %v2280_v39  ;;  %v2279_v15 = vmul.f32 %v4663_v30, %v5551_v42 }
 0x1e3   : > { %v4667_v41 = vpop.eup %4666  ;;  %3856 = vst [vmem:[%s4989_s27 + $0xe8] sm:$0xff] %v3656_v34   ;;  %v3651_v13 = vpack.c.bf16 %v2215_v60, %v2214_v16  ;;  %v2220_v8 = vmul.f32 %v4665_v50, %v5553_v44 }
 0x1e4   : > { %v4669_v38 = vpop.eup %4668  ;;  %3888 = vst [vmem:[%s4989_s27 + $0x1e8] sm:$0xff] %v3816_v63   ;;  %v3811_v20 = vpack.c.bf16 %v2279_v15, %v2278_v52  ;;  %v2284_v58 = vmul.f32 %v4667_v41, %v5556_v11 }
 0x1e5   : > { %v4671_v1 = vpop.eup %4670  ;;  %3855 = vst [vmem:[%s4989_s27 + $0xe0] sm:$0xff] %v3651_v13   ;;  %v2218_v6 = vmul.f32 %v4669_v38, %v5566_v40 }
 0x1e6   : > { %v4673_v56 = vpop.eup %4672  ;;  %3887 = vst [vmem:[%s4989_s27 + $0x1e0] sm:$0xff] %v3811_v20   ;;  %v2282_v37 = vmul.f32 %v4671_v1, %v5568_v2 }
 0x1e7   : > { %v4675_v3 = vpop.eup %4674  ;;  %v2221_v57 = vmul.f32 %v4673_v56, %v5572_v4 }
 0x1e8   : > { %v4677_v42 = vpop.eup %4676  ;;  %v2285_v7 = vmul.f32 %v4675_v3, %v5576_v24 }
 0x1e9   : > { %v4679_v28 = vpop.eup %4678  ;;  %v3666_v14 = vpack.c.bf16 %v2221_v57, %v2220_v8  ;;  %v2219_v19 = vmul.f32 %v4677_v42, %v5584_v32 }
 0x1ea   : > { %v3826_v46 = vpack.c.bf16 %v2285_v7, %v2284_v58  ;;  %v2283_v44 = vmul.f32 %v4679_v28, %v5588_v0 }
 0x1eb   : > { %3858 = vst [vmem:[%s4989_s27 + $0xf8] sm:$0xff] %v3666_v14   ;;  %v3661_v53 = vpack.c.bf16 %v2219_v19, %v2218_v6 }
 0x1ec   : > { %3890 = vst [vmem:[%s4989_s27 + $0x1f8] sm:$0xff] %v3826_v46   ;;  %v3821_v4 = vpack.c.bf16 %v2283_v44, %v2282_v37 }
 0x1ed   : > { %3857 = vst [vmem:[%s4989_s27 + $0xf0] sm:$0xff] %v3661_v53  }
 0x1ee   : > { %3889 = vst [vmem:[%s4989_s27 + $0x1f0] sm:$0xff] %v3821_v4  }
 0x1ef PF: > { %s13_s12 = sadd.s32 1, %s4688_s12  }
 0x1f0   : > { %p10_p4 = scmp.ge.s32.totalorder %s13_s12, 4  }
 0x1f2   :  { %12 = sbr.rel (!%p10_p4) target bundleno = 1 (0x1), region = 62 }

// kernel: model_forward.7
= control target key start
LH: loop header
LB: loop body
LE: loop exit
PB: predicated region body
PF: predicated region fallthrough
CT: control target
= control target key end

     0   :  { %vm379_vm0 = vcmask 1043456   ;;  %vm282_vm1 = vcmask 588800   ;;  %s2915_s1 = inlined_call_operand.vmem [shape: bf16[72,128], index: 1, kind: input, shape index: {}]   ;;  %s2916_s0 = inlined_call_operand.vmem [shape: bf16[512,72], index: 0, kind: input, shape index: {}]   ;;  %s2917_s2 = inlined_call_operand.vmem [shape: f32[1,128], index: 2, kind: input, shape index: {}]   ;;  %s2918_s3 = inlined_call_operand.vmem [shape: bf16[512,128], index: 3, kind: output, shape index: {}]  }
   0x1   :  { %v2020_v0 = vld [vmem:[%s2915_s1 + $0x20] ss:$0 sps:$4 sm:$0xff]   ;;  %v2021_v1 = vld [vmem:[%s2915_s1 + $0x18] sm:$0xff]   ;;  %v2022_v3 = vld [vmem:[%s2915_s1 + $0x10] sm:$0xff]  }
   0x2   :  { %2018 = vmatprep.subr.msk.bf16.mxu0 %vm379_vm0, %v2020_v0  ;;  %2019 = vmatprep.subr.msk.bf16.mxu1 %vm379_vm0, %v2020_v0  ;;  %v381_v2 = vsel %vm379_vm0, %v2020_v0, 0  ;;  %v2025_v4 = vld [vmem:[%s2916_s0] sm:$0xff]   ;;  %v2023_v6 = vld [vmem:[%s2915_s1 + $0x8] sm:$0xff]   ;;  %v2029_v10 = vld [vmem:[%s2916_s0 + $0x10] sm:$0xff]  }
   0x3   :  { %1935 = vmatpush3.bf16.msra.mxu0 %v381_v2  ;;  %2013 = vmatpush3.bf16.msra.mxu1 %v381_v2  ;;  %v2026_v5 = vld [vmem:[%s2916_s0 + $0x80] sm:$0xff]   ;;  %v2027_v8 = vld [vmem:[%s2916_s0 + $0x8] sm:$0xff]   ;;  %v2030_v11 = vld [vmem:[%s2916_s0 + $0x90] sm:$0xff]  }
   0x4   :  { %1936 = vmatprep.subr.bf16.mxu0 %v2021_v1  ;;  %2009 = vmatprep.subr.bf16.mxu1 %v2021_v1  ;;  %v2024_v7 = vld [vmem:[%s2915_s1] sm:$0xff]   ;;  %v2028_v9 = vld [vmem:[%s2916_s0 + $0x88] sm:$0xff]   ;;  %v2031_v12 = vld [vmem:[%s2916_s0 + $0x18] sm:$0xff]  }
   0x5   :  { %1944 = vmatprep.mubr.msk.bf16.mxu0 %vm282_vm1, %v2025_v4  ;;  %1976 = vmatprep.mubr.msk.bf16.mxu1 %vm282_vm1, %v2026_v5  ;;  %v2032_v13 = vld [vmem:[%s2916_s0 + $0x98] sm:$0xff]   ;;  %v2033_v14 = vld [vmem:[%s2916_s0 + $0x20] sm:$0xff]   ;;  %v2035_v16 = vld [vmem:[%s2916_s0 + $0x28] sm:$0xff]  }
   0x6   :  { %v2034_v15 = vld [vmem:[%s2916_s0 + $0xa0] sm:$0xff]   ;;  %v2036_v17 = vld [vmem:[%s2916_s0 + $0xa8] sm:$0xff]   ;;  %v2037_v18 = vld [vmem:[%s2916_s0 + $0x30] sm:$0xff]  }
   0x7   :  { %1937 = vmatpush3.bf16.msra.mxu0 %v2021_v1  ;;  %2014 = vmatpush3.bf16.msra.mxu1 %v2021_v1  ;;  %v2038_v19 = vld [vmem:[%s2916_s0 + $0xb0] sm:$0xff]   ;;  %v2039_v20 = vld [vmem:[%s2916_s0 + $0x38] sm:$0xff]   ;;  %v2041_v22 = vld [vmem:[%s2916_s0 + $0x40] sm:$0xff]  }
   0x8   :  { %1938 = vmatprep.subr.bf16.mxu0 %v2022_v3  ;;  %2010 = vmatprep.subr.bf16.mxu1 %v2022_v3  ;;  %v2040_v21 = vld [vmem:[%s2916_s0 + $0xb8] sm:$0xff]   ;;  %v2042_v23 = vld [vmem:[%s2916_s0 + $0xc0] sm:$0xff]   ;;  %v2043_v24 = vld [vmem:[%s2916_s0 + $0x48] sm:$0xff]  }
   0x9   :  { %v2044_v25 = vld [vmem:[%s2916_s0 + $0xc8] sm:$0xff]   ;;  %v2045_v26 = vld [vmem:[%s2916_s0 + $0x50] sm:$0xff]   ;;  %v2047_v28 = vld [vmem:[%s2916_s0 + $0x58] sm:$0xff]  }
   0xa   :  { %v2046_v27 = vld [vmem:[%s2916_s0 + $0xd0] sm:$0xff]   ;;  %v2048_v29 = vld [vmem:[%s2916_s0 + $0xd8] sm:$0xff]   ;;  %v2049_v30 = vld [vmem:[%s2916_s0 + $0x60] sm:$0xff]  }
   0xb   :  { %1939 = vmatpush3.bf16.msra.mxu0 %v2022_v3  ;;  %2015 = vmatpush3.bf16.msra.mxu1 %v2022_v3  ;;  %v2050_v31 = vld [vmem:[%s2916_s0 + $0xe0] sm:$0xff]   ;;  %v2051_v32 = vld [vmem:[%s2916_s0 + $0x68] sm:$0xff]   ;;  %v2053_v34 = vld [vmem:[%s2916_s0 + $0x70] sm:$0xff]  }
   0xc   :  { %1940 = vmatprep.subr.bf16.mxu0 %v2023_v6  ;;  %2011 = vmatprep.subr.bf16.mxu1 %v2023_v6  ;;  %v2052_v33 = vld [vmem:[%s2916_s0 + $0xe8] sm:$0xff]   ;;  %v2054_v35 = vld [vmem:[%s2916_s0 + $0xf0] sm:$0xff]   ;;  %v2055_v36 = vld [vmem:[%s2916_s0 + $0x78] sm:$0xff]  }
   0xd   :  { %v2056_v37 = vld [vmem:[%s2916_s0 + $0xf8] sm:$0xff]   ;;  %v2479_v38 = vld [vmem:[%s2917_s2] ss:$0 sm:$0xff] }
   0xf   :  { %1941 = vmatpush3.bf16.msra.mxu0 %v2023_v6  ;;  %2016 = vmatpush3.bf16.msra.mxu1 %v2023_v6 }
  0x10   :  { %1942 = vmatprep.subr.bf16.mxu0 %v2024_v7  ;;  %2012 = vmatprep.subr.bf16.mxu1 %v2024_v7 }
  0x13   :  { %1943 = vmatpush3.bf16.msra.mxu0 %v2024_v7  ;;  %2017 = vmatpush3.bf16.msra.mxu1 %v2024_v7 }
  0x16   :  { %1945 = vmatmul.mubr.msk.bf16.vlgmr.msra.gmra.mxu0 %vm282_vm1, %v2027_v8  ;;  %1977 = vmatmul.mubr.msk.bf16.vlgmr.msra.gmra.mxu1 %vm282_vm1, %v2028_v9 }
  0x17   :  { %1948 = vmatprep.mubr.msk.bf16.mxu0 %vm282_vm1, %v2029_v10  ;;  %1980 = vmatprep.mubr.msk.bf16.mxu1 %vm282_vm1, %v2030_v11 }
  0x1e   :  { %1949 = vmatmul.mubr.msk.bf16.gmra.mxu0 %vm282_vm1, %v2031_v12  ;;  %1981 = vmatmul.mubr.msk.bf16.gmra.mxu1 %vm282_vm1, %v2032_v13 }
  0x1f   :  { %1952 = vmatprep.mubr.msk.bf16.mxu0 %vm282_vm1, %v2033_v14  ;;  %1984 = vmatprep.mubr.msk.bf16.mxu1 %vm282_vm1, %v2034_v15 }
  0x26   :  { %1953 = vmatmul.mubr.msk.bf16.gmra.mxu0 %vm282_vm1, %v2035_v16  ;;  %1985 = vmatmul.mubr.msk.bf16.gmra.mxu1 %vm282_vm1, %v2036_v17 }
  0x27   :  { %1956 = vmatprep.mubr.msk.bf16.mxu0 %vm282_vm1, %v2037_v18  ;;  %1988 = vmatprep.mubr.msk.bf16.mxu1 %vm282_vm1, %v2038_v19 }
  0x2e   :  { %1957 = vmatmul.mubr.msk.bf16.gmra.mxu0 %vm282_vm1, %v2039_v20  ;;  %1989 = vmatmul.mubr.msk.bf16.gmra.mxu1 %vm282_vm1, %v2040_v21 }
  0x2f   :  { %1960 = vmatprep.mubr.msk.bf16.mxu0 %vm282_vm1, %v2041_v22  ;;  %1992 = vmatprep.mubr.msk.bf16.mxu1 %vm282_vm1, %v2042_v23 }
  0x36   :  { %1961 = vmatmul.mubr.msk.bf16.gmra.mxu0 %vm282_vm1, %v2043_v24  ;;  %1993 = vmatmul.mubr.msk.bf16.gmra.mxu1 %vm282_vm1, %v2044_v25 }
  0x37   :  { %1964 = vmatprep.mubr.msk.bf16.mxu0 %vm282_vm1, %v2045_v26  ;;  %1996 = vmatprep.mubr.msk.bf16.mxu1 %vm282_vm1, %v2046_v27 }
  0x3e   :  { %1965 = vmatmul.mubr.msk.bf16.gmra.mxu0 %vm282_vm1, %v2047_v28  ;;  %1997 = vmatmul.mubr.msk.bf16.gmra.mxu1 %vm282_vm1, %v2048_v29 }
  0x3f   :  { %1968 = vmatprep.mubr.msk.bf16.mxu0 %vm282_vm1, %v2049_v30  ;;  %2000 = vmatprep.mubr.msk.bf16.mxu1 %vm282_vm1, %v2050_v31 }
  0x46   :  { %1969 = vmatmul.mubr.msk.bf16.gmra.mxu0 %vm282_vm1, %v2051_v32  ;;  %2001 = vmatmul.mubr.msk.bf16.gmra.mxu1 %vm282_vm1, %v2052_v33 }
  0x47   :  { %1972 = vmatprep.mubr.msk.bf16.mxu0 %vm282_vm1, %v2053_v34  ;;  %2004 = vmatprep.mubr.msk.bf16.mxu1 %vm282_vm1, %v2054_v35 }
  0x4e   :  { %1973 = vmatmul.mubr.msk.bf16.gmra.mxu0 %vm282_vm1, %v2055_v36  ;;  %2005 = vmatmul.mubr.msk.bf16.gmra.mxu1 %vm282_vm1, %v2056_v37 }
  0xd6   :  { %v1946_v39 = vpop.f32.mrf.mxu0  ;;  %v1978_v40 = vpop.f32.mrf.mxu1 }
  0xd7   :  { %v2482_v41 = vadd.f32 %v1946_v39, %v2479_v38  ;;  %v2485_v42 = vadd.f32 %v1978_v40, %v2479_v38 }
  0xd8   :  { %v417_v43 = vpop.f32.mrf.mxu0  ;;  %v545_v44 = vpop.f32.mrf.mxu1 }
  0xd9   :  { %v1516_v45 = vmul.f32 -1.442695, %v2482_v41  ;;  %v1548_v46 = vmul.f32 -1.442695, %v2485_v42  ;;  %v2490_v47 = vadd.f32 %v2479_v38, %v417_v43  ;;  %v2493_v48 = vadd.f32 %v2479_v38, %v545_v44 }
  0xda   :  { %v1947_v49 = vpop.f32.mrf.mxu0  ;;  %v1979_v50 = vpop.f32.mrf.mxu1 }
  0xdb   :  { %2057 = vpow2.f32 %v1516_v45  ;;  %v1514_v51 = vmul.f32 -1.442695, %v2490_v47  ;;  %v1546_v52 = vmul.f32 -1.442695, %v2493_v48  ;;  %v2498_v53 = vadd.f32 %v1947_v49, %v2479_v38 }
  0xdc   :  { %2059 = vpow2.f32 %v1548_v46  ;;  %v2501_v54 = vadd.f32 %v1979_v50, %v2479_v38  ;;  %v420_v55 = vpop.f32.mrf.mxu0  ;;  %v548_v56 = vpop.f32.mrf.mxu1 }
  0xdd   :  { %2061 = vpow2.f32 %v1514_v51  ;;  %v1517_v57 = vmul.f32 -1.442695, %v2498_v53  ;;  %v2505_v58 = vadd.f32 %v2479_v38, %v420_v55  ;;  %v2508_v59 = vadd.f32 %v2479_v38, %v548_v56 }
  0xde   :  { %2063 = vpow2.f32 %v1546_v52  ;;  %v1549_v60 = vmul.f32 -1.442695, %v2501_v54  ;;  %v1950_v61 = vpop.f32.mrf.mxu0  ;;  %v1982_v62 = vpop.f32.mrf.mxu1 }
  0xdf   :  { %2065 = vpow2.f32 %v1517_v57  ;;  %v1515_v63 = vmul.f32 -1.442695, %v2505_v58  ;;  %v1547_v0 = vmul.f32 -1.442695, %v2508_v59  ;;  %v2514_v1 = vadd.f32 %v1950_v61, %v2479_v38 }
  0xe0   :  { %2067 = vpow2.f32 %v1549_v60  ;;  %v2517_v2 = vadd.f32 %v1982_v62, %v2479_v38  ;;  %v433_v3 = vpop.f32.mrf.mxu0  ;;  %v561_v4 = vpop.f32.mrf.mxu1 }
  0xe1   :  { %2069 = vpow2.f32 %v1515_v63  ;;  %v1520_v5 = vmul.f32 -1.442695, %v2514_v1  ;;  %v2521_v6 = vadd.f32 %v2479_v38, %v433_v3  ;;  %v2524_v7 = vadd.f32 %v2479_v38, %v561_v4 }
  0xe2   :  { %2071 = vpow2.f32 %v1547_v0  ;;  %v1552_v8 = vmul.f32 -1.442695, %v2517_v2  ;;  %v1951_v9 = vpop.f32.mrf.mxu0  ;;  %v1983_v10 = vpop.f32.mrf.mxu1 }
  0xe3   :  { %2073 = vpow2.f32 %v1520_v5  ;;  %v1518_v11 = vmul.f32 -1.442695, %v2521_v6  ;;  %v1550_v12 = vmul.f32 -1.442695, %v2524_v7  ;;  %v2530_v13 = vadd.f32 %v1951_v9, %v2479_v38 }
  0xe4   :  { %2075 = vpow2.f32 %v1552_v8  ;;  %v2533_v14 = vadd.f32 %v1983_v10, %v2479_v38  ;;  %v436_v15 = vpop.f32.mrf.mxu0  ;;  %v564_v16 = vpop.f32.mrf.mxu1 }
  0xe5   :  { %2077 = vpow2.f32 %v1518_v11  ;;  %v1521_v17 = vmul.f32 -1.442695, %v2530_v13  ;;  %v2537_v18 = vadd.f32 %v2479_v38, %v436_v15  ;;  %v2540_v19 = vadd.f32 %v2479_v38, %v564_v16 }
  0xe6   :  { %2079 = vpow2.f32 %v1550_v12  ;;  %v1553_v20 = vmul.f32 -1.442695, %v2533_v14  ;;  %v1954_v21 = vpop.f32.mrf.mxu0  ;;  %v1986_v22 = vpop.f32.mrf.mxu1 }
  0xe7   :  { %2081 = vpow2.f32 %v1521_v17  ;;  %v1519_v23 = vmul.f32 -1.442695, %v2537_v18  ;;  %v1551_v24 = vmul.f32 -1.442695, %v2540_v19  ;;  %v2546_v55 = vadd.f32 %v1954_v21, %v2479_v38 }
  0xe8   :  { %v2058_v25 = vpop.eup %2057  ;;  %2083 = vpow2.f32 %v1553_v20  ;;  %v449_v26 = vpop.f32.mrf.mxu0  ;;  %v2549_v3 = vadd.f32 %v1986_v22, %v2479_v38 }
  0xe9   :  { %v577_v27 = vpop.f32.mrf.mxu1  ;;  %v2060_v28 = vpop.eup %2059  ;;  %v866_v29 = vadd.f32 1.0, %v2058_v25  ;;  %2085 = vpow2.f32 %v1519_v23  ;;  %v1524_v9 = vmul.f32 -1.442695, %v2546_v55  ;;  %v2553_v10 = vadd.f32 %v2479_v38, %v449_v26 }
  0xea   :  { %v2062_v30 = vpop.eup %2061  ;;  %v898_v31 = vadd.f32 1.0, %v2060_v28  ;;  %2087 = vpow2.f32 %v1551_v24  ;;  %v1955_v32 = vpop.f32.mrf.mxu0  ;;  %v2556_v15 = vadd.f32 %v2479_v38, %v577_v27 }
  0xeb   :  { %v2064_v33 = vpop.eup %2063  ;;  %2089 = vrcp.f32 %v866_v29  ;;  %v864_v34 = vadd.f32 1.0, %v2062_v30  ;;  %v1987_v35 = vpop.f32.mrf.mxu1  ;;  %v2559_v16 = vadd.f32 %v1955_v32, %v2479_v38 }
  0xec   :  { %v2066_v36 = vpop.eup %2065  ;;  %2091 = vrcp.f32 %v898_v31  ;;  %v896_v37 = vadd.f32 1.0, %v2064_v33  ;;  %v452_v45 = vpop.f32.mrf.mxu0  ;;  %v2562_v21 = vadd.f32 %v1987_v35, %v2479_v38  ;;  %v1556_v31 = vmul.f32 -1.442695, %v2549_v3 }
  0xed   :  { %v2068_v39 = vpop.eup %2067  ;;  %2093 = vrcp.f32 %v864_v34  ;;  %v867_v40 = vadd.f32 1.0, %v2066_v36  ;;  %v580_v50 = vpop.f32.mrf.mxu1  ;;  %v2565_v22 = vadd.f32 %v2479_v38, %v452_v45  ;;  %v1522_v34 = vmul.f32 -1.442695, %v2553_v10 }
  0xee   :  { %v2070_v43 = vpop.eup %2069  ;;  %2095 = vrcp.f32 %v896_v37  ;;  %v899_v44 = vadd.f32 1.0, %v2068_v39  ;;  %v1958_v62 = vpop.f32.mrf.mxu0  ;;  %v2568_v26 = vadd.f32 %v2479_v38, %v580_v50  ;;  %v1554_v36 = vmul.f32 -1.442695, %v2556_v15 }
  0xef   :  { %v2072_v46 = vpop.eup %2071  ;;  %2097 = vrcp.f32 %v867_v40  ;;  %v865_v49 = vadd.f32 1.0, %v2070_v43  ;;  %v1990_v4 = vpop.f32.mrf.mxu1  ;;  %v2571_v27 = vadd.f32 %v1958_v62, %v2479_v38  ;;  %v1525_v37 = vmul.f32 -1.442695, %v2559_v16 }
  0xf0   :  { %v2074_v51 = vpop.eup %2073  ;;  %2099 = vrcp.f32 %v899_v44  ;;  %v897_v52 = vadd.f32 1.0, %v2072_v46  ;;  %v465_v23 = vpop.f32.mrf.mxu0  ;;  %v2575_v32 = vadd.f32 %v1990_v4, %v2479_v38  ;;  %v1557_v39 = vmul.f32 -1.442695, %v2562_v21 }
  0xf1   :  { %v2076_v56 = vpop.eup %2075  ;;  %2101 = vrcp.f32 %v865_v49  ;;  %v870_v57 = vadd.f32 1.0, %v2074_v51  ;;  %v593_v28 = vpop.f32.mrf.mxu1  ;;  %v1523_v44 = vmul.f32 -1.442695, %v2565_v22  ;;  %v1555_v45 = vmul.f32 -1.442695, %v2568_v26 }
  0xf2   :  { %v2078_v60 = vpop.eup %2077  ;;  %2103 = vrcp.f32 %v897_v52  ;;  %v902_v61 = vadd.f32 1.0, %v2076_v56  ;;  %v1959_v40 = vpop.f32.mrf.mxu0  ;;  %v1528_v46 = vmul.f32 -1.442695, %v2571_v27  ;;  %v1560_v51 = vmul.f32 -1.442695, %v2575_v32 }
  0xf3   :  { %v2080_v63 = vpop.eup %2079  ;;  %2105 = vrcp.f32 %v870_v57  ;;  %v868_v0 = vadd.f32 1.0, %v2078_v60  ;;  %v1991_v49 = vpop.f32.mrf.mxu1  ;;  %v2586_v52 = vadd.f32 %v2479_v38, %v465_v23  ;;  %v2589_v56 = vadd.f32 %v2479_v38, %v593_v28 }
  0xf4   :  { %v2082_v5 = vpop.eup %2081  ;;  %2107 = vrcp.f32 %v902_v61  ;;  %v900_v8 = vadd.f32 1.0, %v2080_v63  ;;  %v2594_v62 = vadd.f32 %v1959_v40, %v2479_v38 }
  0xf5   :  { %v2084_v11 = vpop.eup %2083  ;;  %2109 = vrcp.f32 %v868_v0  ;;  %v871_v12 = vadd.f32 1.0, %v2082_v5  ;;  %v2599_v5 = vadd.f32 %v1991_v49, %v2479_v38 }
  0xf6   :  { %v2086_v17 = vpop.eup %2085  ;;  %2111 = vrcp.f32 %v900_v8  ;;  %v903_v20 = vadd.f32 1.0, %v2084_v11  ;;  %v468_v8 = vpop.f32.mrf.mxu0 }
  0xf7   :  { %v2088_v24 = vpop.eup %2087  ;;  %2113 = vrcp.f32 %v871_v12  ;;  %v869_v25 = vadd.f32 1.0, %v2086_v17  ;;  %v596_v12 = vpop.f32.mrf.mxu1 }
  0xf8   :  { %v2090_v29 = vpop.eup %2089  ;;  %2115 = vrcp.f32 %v903_v20  ;;  %v901_v30 = vadd.f32 1.0, %v2088_v24  ;;  %v2617_v28 = vadd.f32 %v2479_v38, %v596_v12 }
  0xf9   :  { %v2092_v33 = vpop.eup %2091  ;;  %2117 = vrcp.f32 %v869_v25  ;;  %v1058_v60 = vmul.f32 %v2090_v29, %v2482_v41  ;;  %v2619_v29 = vpop.f32.mrf.mxu0 }
  0xfa   :  { %v2094_v35 = vpop.eup %2093  ;;  %2119 = vrcp.f32 %v901_v30  ;;  %v1090_v0 = vmul.f32 %v2092_v33, %v2485_v42  ;;  %v2625_v33 = vpop.f32.mrf.mxu1 }
  0xfb   :  { %v2096_v43 = vpop.eup %2095  ;;  %2121 = vpow2.f32 %v1524_v9  ;;  %v1056_v11 = vmul.f32 %v2094_v35, %v2490_v47  ;;  %v1526_v47 = vmul.f32 -1.442695, %v2586_v52  ;;  %v1561_v35 = vmul.f32 -1.442695, %v2599_v5  ;;  %v2637_v49 = vpop.f32.mrf.mxu0 }
  0xfc   :  { %v2098_v50 = vpop.eup %2097  ;;  %2123 = vpow2.f32 %v1556_v31  ;;  %v1088_v20 = vmul.f32 %v2096_v43, %v2493_v48  ;;  %v1529_v31 = vmul.f32 -1.442695, %v2594_v62 }
  0xfd   :  { %v2100_v57 = vpop.eup %2099  ;;  %v1059_v61 = vmul.f32 %v2098_v50, %v2498_v53  ;;  %2125 = vpow2.f32 %v1522_v34 }
  0xfe   :  { %v2102_v63 = vpop.eup %2101  ;;  %v1091_v4 = vmul.f32 %v2100_v57, %v2501_v54  ;;  %2127 = vpow2.f32 %v1554_v36 }
  0xff   :  { %v2104_v9 = vpop.eup %2103  ;;  %v1714_v41 = vpack.c.bf16 %v1059_v61, %v1058_v60  ;;  %v1057_v53 = vmul.f32 %v2102_v63, %v2505_v58  ;;  %2129 = vpow2.f32 %v1525_v37  ;;  %v2610_v58 = vadd.f32 %v2479_v38, %v468_v8 }
 0x100   :  { %v2106_v17 = vpop.eup %2105  ;;  %v1794_v23 = vpack.c.bf16 %v1091_v4, %v1090_v0  ;;  %v1089_v42 = vmul.f32 %v2104_v9, %v2508_v59  ;;  %2131 = vpow2.f32 %v1557_v39  ;;  %v1558_v59 = vmul.f32 -1.442695, %v2589_v56 }
 0x101   :  { %v2108_v54 = vpop.eup %2107  ;;  %1866 = vst [vmem:[%s2918_s3 + $0x8] sm:$0xff] %v1714_v41   ;;  %v1709_v24 = vpack.c.bf16 %v1057_v53, %v1056_v11  ;;  %2133 = vpow2.f32 %v1523_v44  ;;  %v1062_v37 = vmul.f32 %v2106_v17, %v2514_v1  ;;  %v1527_v40 = vmul.f32 -1.442695, %v2610_v58 }
 0x102   :  { %v2110_v25 = vpop.eup %2109  ;;  %1882 = vst [vmem:[%s2918_s3 + $0x88] sm:$0xff] %v1794_v23   ;;  %v1789_v48 = vpack.c.bf16 %v1089_v42, %v1088_v20  ;;  %2135 = vpow2.f32 %v1555_v45  ;;  %v1094_v44 = vmul.f32 %v2108_v54, %v2517_v2 }
 0x103   :  { %v2112_v30 = vpop.eup %2111  ;;  %1710 = vst [vmem:[%s2918_s3] sm:$0xff] %v1709_v24   ;;  %2137 = vpow2.f32 %v1528_v46  ;;  %v1559_v46 = vmul.f32 -1.442695, %v2617_v28 }
 0x104   :  { %v2114_v34 = vpop.eup %2113  ;;  %1881 = vst [vmem:[%s2918_s3 + $0x80] sm:$0xff] %v1789_v48   ;;  %2139 = vpow2.f32 %v1560_v51  ;;  %v1060_v51 = vmul.f32 %v2110_v25, %v2521_v6  ;;  %v1092_v61 = vmul.f32 %v2112_v30, %v2524_v7  ;;  %v1963_v7 = vpop.f32.mrf.mxu0 }
 0x105   :  { %v2116_v36 = vpop.eup %2115  ;;  %v1063_v39 = vmul.f32 %v2114_v34, %v2530_v13  ;;  %2141 = vpow2.f32 %v1526_v47  ;;  %v609_v13 = vpop.f32.mrf.mxu1 }
 0x106   :  { %v2118_v43 = vpop.eup %2117  ;;  %v1095_v45 = vmul.f32 %v2116_v36, %v2533_v14  ;;  %2143 = vpow2.f32 %v1558_v59  ;;  %v484_v42 = vpop.f32.mrf.mxu0  ;;  %v2657_v59 = vadd.f32 %v2619_v29, %v2479_v38 }
 0x107   :  { %v2120_v50 = vpop.eup %2119  ;;  %v1724_v57 = vpack.c.bf16 %v1063_v39, %v1062_v37  ;;  %v1061_v1 = vmul.f32 %v2118_v43, %v2537_v18  ;;  %2145 = vpow2.f32 %v1529_v31  ;;  %v1995_v11 = vpop.f32.mrf.mxu1 }
 0x108   :  { %v2122_v60 = vpop.eup %2121  ;;  %v1804_v63 = vpack.c.bf16 %v1095_v45, %v1094_v44  ;;  %v1093_v2 = vmul.f32 %v2120_v50, %v2540_v19  ;;  %2147 = vpow2.f32 %v1561_v35  ;;  %v1966_v36 = vpop.f32.mrf.mxu0  ;;  %v1532_v29 = vmul.f32 -1.442695, %v2657_v59 }
 0x109   :  { %v2124_v14 = vpop.eup %2123  ;;  %1868 = vst [vmem:[%s2918_s3 + $0x18] sm:$0xff] %v1724_v57   ;;  %v1719_v0 = vpack.c.bf16 %v1061_v1, %v1060_v51  ;;  %v874_v4 = vadd.f32 1.0, %v2122_v60  ;;  %2149 = vpow2.f32 %v1527_v40  ;;  %v612_v47 = vpop.f32.mrf.mxu1  ;;  %v2661_v40 = vadd.f32 %v2625_v33, %v2479_v38 }
 0x10a   :  { %v2126_v6 = vpop.eup %2125  ;;  %1884 = vst [vmem:[%s2918_s3 + $0x98] sm:$0xff] %v1804_v63   ;;  %v1799_v18 = vpack.c.bf16 %v1093_v2, %v1092_v61  ;;  %v906_v8 = vadd.f32 1.0, %v2124_v14  ;;  %2151 = vpow2.f32 %v1559_v46  ;;  %v2666_v46 = vadd.f32 %v2479_v38, %v2637_v49  ;;  %v497_v49 = vpop.f32.mrf.mxu0 }
 0x10b   :  { %v2128_v9 = vpop.eup %2127  ;;  %1867 = vst [vmem:[%s2918_s3 + $0x10] sm:$0xff] %v1719_v0   ;;  %2153 = vrcp.f32 %v874_v4  ;;  %v872_v19 = vadd.f32 1.0, %v2126_v6  ;;  %v1998_v43 = vpop.f32.mrf.mxu1  ;;  %v2669_v57 = vadd.f32 %v2479_v38, %v609_v13  ;;  %v2672_v1 = vadd.f32 %v1963_v7, %v2479_v38 }
 0x10c   :  { %v2130_v41 = vpop.eup %2129  ;;  %1883 = vst [vmem:[%s2918_s3 + $0x90] sm:$0xff] %v1799_v18   ;;  %2155 = vrcp.f32 %v906_v8  ;;  %v904_v53 = vadd.f32 1.0, %v2128_v9  ;;  %v2675_v61 = vadd.f32 %v1995_v11, %v2479_v38  ;;  %v2678_v63 = vadd.f32 %v2479_v38, %v484_v42 }
 0x10d   :  { %v2132_v12 = vpop.eup %2131  ;;  %2157 = vrcp.f32 %v872_v19  ;;  %v875_v17 = vadd.f32 1.0, %v2130_v41  ;;  %v2681_v0 = vadd.f32 %v2479_v38, %v612_v47  ;;  %v2684_v13 = vadd.f32 %v1966_v36, %v2479_v38  ;;  %v625_v4 = vpop.f32.mrf.mxu1 }
 0x10e   :  { %v2134_v20 = vpop.eup %2133  ;;  %2159 = vrcp.f32 %v904_v53  ;;  %v907_v23 = vadd.f32 1.0, %v2132_v12  ;;  %v1564_v8 = vmul.f32 -1.442695, %v2661_v40  ;;  %v2688_v7 = vadd.f32 %v1998_v43, %v2479_v38 }
 0x10f   :  { %v2136_v54 = vpop.eup %2135  ;;  %2161 = vrcp.f32 %v875_v17  ;;  %v873_v24 = vadd.f32 1.0, %v2134_v20  ;;  %v1530_v19 = vmul.f32 -1.442695, %v2666_v46  ;;  %v1562_v41 = vmul.f32 -1.442695, %v2669_v57  ;;  %v1967_v17 = vpop.f32.mrf.mxu0 }
 0x110   :  { %v2138_v25 = vpop.eup %2137  ;;  %2163 = vrcp.f32 %v907_v23  ;;  %v905_v48 = vadd.f32 1.0, %v2136_v54  ;;  %v1533_v53 = vmul.f32 -1.442695, %v2672_v1  ;;  %v1565_v12 = vmul.f32 -1.442695, %v2675_v61 }
 0x111   :  { %v2140_v30 = vpop.eup %2139  ;;  %2165 = vrcp.f32 %v873_v24  ;;  %v878_v31 = vadd.f32 1.0, %v2138_v25  ;;  %v1531_v23 = vmul.f32 -1.442695, %v2678_v63  ;;  %v1563_v42 = vmul.f32 -1.442695, %v2681_v0  ;;  %v1999_v24 = vpop.f32.mrf.mxu1 }
 0x112   :  { %v2142_v34 = vpop.eup %2141  ;;  %2167 = vrcp.f32 %v905_v48  ;;  %v910_v35 = vadd.f32 1.0, %v2140_v30  ;;  %v1536_v54 = vmul.f32 -1.442695, %v2684_v13  ;;  %v1568_v25 = vmul.f32 -1.442695, %v2688_v7 }
 0x113   :  { %v2144_v37 = vpop.eup %2143  ;;  %2169 = vrcp.f32 %v878_v31  ;;  %v876_v39 = vadd.f32 1.0, %v2142_v34  ;;  %v2699_v48 = vadd.f32 %v2479_v38, %v497_v49  ;;  %v2702_v30 = vadd.f32 %v2479_v38, %v625_v4 }
 0x114   :  { %v2146_v44 = vpop.eup %2145  ;;  %2171 = vrcp.f32 %v910_v35  ;;  %v908_v45 = vadd.f32 1.0, %v2144_v37  ;;  %v2707_v36 = vadd.f32 %v1967_v17, %v2479_v38 }
 0x115   :  { %v2148_v50 = vpop.eup %2147  ;;  %2173 = vrcp.f32 %v876_v39  ;;  %v879_v51 = vadd.f32 1.0, %v2146_v44  ;;  %v2712_v44 = vadd.f32 %v1999_v24, %v2479_v38 }
 0x116   :  { %v2150_v33 = vpop.eup %2149  ;;  %2175 = vrcp.f32 %v908_v45  ;;  %v911_v60 = vadd.f32 1.0, %v2148_v50  ;;  %v500_v45 = vpop.f32.mrf.mxu0 }
 0x117   :  { %v2152_v2 = vpop.eup %2151  ;;  %2177 = vrcp.f32 %v879_v51  ;;  %v877_v14 = vadd.f32 1.0, %v2150_v33  ;;  %v628_v51 = vpop.f32.mrf.mxu1 }
 0x118   :  { %v2154_v6 = vpop.eup %2153  ;;  %2179 = vrcp.f32 %v911_v60  ;;  %v909_v18 = vadd.f32 1.0, %v2152_v2  ;;  %v2730_v4 = vadd.f32 %v2479_v38, %v628_v51 }
 0x119   :  { %v2156_v9 = vpop.eup %2155  ;;  %2181 = vrcp.f32 %v877_v14  ;;  %v1066_v34 = vmul.f32 %v2154_v6, %v2546_v55  ;;  %v2732_v6 = vpop.f32.mrf.mxu0 }
 0x11a   :  { %v2158_v11 = vpop.eup %2157  ;;  %2183 = vrcp.f32 %v909_v18  ;;  %v1098_v39 = vmul.f32 %v2156_v9, %v2549_v3  ;;  %v2738_v9 = vpop.f32.mrf.mxu1 }
 0x11b   :  { %v2160_v20 = vpop.eup %2159  ;;  %2185 = vpow2.f32 %v1532_v29  ;;  %v1064_v50 = vmul.f32 %v2158_v11, %v2553_v10  ;;  %v1534_v10 = vmul.f32 -1.442695, %v2699_v48  ;;  %v1569_v11 = vmul.f32 -1.442695, %v2712_v44  ;;  %v2750_v24 = vpop.f32.mrf.mxu0 }
 0x11c   :  { %v2162_v47 = vpop.eup %2161  ;;  %2187 = vpow2.f32 %v1564_v8  ;;  %v1096_v60 = vmul.f32 %v2160_v20, %v2556_v15  ;;  %v1537_v8 = vmul.f32 -1.442695, %v2707_v36 }
 0x11d   :  { %v2164_v31 = vpop.eup %2163  ;;  %v1067_v35 = vmul.f32 %v2162_v47, %v2559_v16  ;;  %2189 = vpow2.f32 %v1530_v19 }
 0x11e   :  { %v2166_v37 = vpop.eup %2165  ;;  %v1099_v43 = vmul.f32 %v2164_v31, %v2562_v21  ;;  %2191 = vpow2.f32 %v1562_v41 }
 0x11f   :  { %v2168_v29 = vpop.eup %2167  ;;  %v1734_v55 = vpack.c.bf16 %v1067_v35, %v1066_v34  ;;  %v1065_v16 = vmul.f32 %v2166_v37, %v2565_v22  ;;  %2193 = vpow2.f32 %v1533_v53  ;;  %v2723_v22 = vadd.f32 %v2479_v38, %v500_v45 }
 0x120   :  { %v2170_v33 = vpop.eup %2169  ;;  %v1814_v49 = vpack.c.bf16 %v1099_v43, %v1098_v39  ;;  %v1097_v3 = vmul.f32 %v2168_v29, %v2568_v26  ;;  %2195 = vpow2.f32 %v1565_v12  ;;  %v1566_v26 = vmul.f32 -1.442695, %v2702_v30 }
 0x121   :  { %v2172_v21 = vpop.eup %2171  ;;  %1870 = vst [vmem:[%s2918_s3 + $0x28] sm:$0xff] %v1734_v55   ;;  %v1729_v2 = vpack.c.bf16 %v1065_v16, %v1064_v50  ;;  %2197 = vpow2.f32 %v1531_v23  ;;  %v1070_v53 = vmul.f32 %v2170_v33, %v2571_v27  ;;  %v1535_v17 = vmul.f32 -1.442695, %v2723_v22 }
 0x122   :  { %v2174_v14 = vpop.eup %2173  ;;  %1886 = vst [vmem:[%s2918_s3 + $0xa8] sm:$0xff] %v1814_v49   ;;  %v1809_v15 = vpack.c.bf16 %v1097_v3, %v1096_v60  ;;  %2199 = vpow2.f32 %v1563_v42  ;;  %v1102_v23 = vmul.f32 %v2172_v21, %v2575_v32 }
 0x123   :  { %v2176_v18 = vpop.eup %2175  ;;  %1869 = vst [vmem:[%s2918_s3 + $0x20] sm:$0xff] %v1729_v2   ;;  %2201 = vpow2.f32 %v1536_v54  ;;  %v1567_v54 = vmul.f32 -1.442695, %v2730_v4 }
 0x124   :  { %v2178_v19 = vpop.eup %2177  ;;  %1885 = vst [vmem:[%s2918_s3 + $0xa0] sm:$0xff] %v1809_v15   ;;  %2203 = vpow2.f32 %v1568_v25  ;;  %v1068_v25 = vmul.f32 %v2174_v14, %v2586_v52  ;;  %v1100_v35 = vmul.f32 %v2176_v18, %v2589_v56  ;;  %v1971_v56 = vpop.f32.mrf.mxu0 }
 0x125   :  { %v2180_v41 = vpop.eup %2179  ;;  %v1071_v12 = vmul.f32 %v2178_v19, %v2594_v62  ;;  %2205 = vpow2.f32 %v1534_v10  ;;  %v641_v62 = vpop.f32.mrf.mxu1 }
 0x126   :  { %v2182_v20 = vpop.eup %2181  ;;  %v1103_v42 = vmul.f32 %v2180_v41, %v2599_v5  ;;  %2207 = vpow2.f32 %v1566_v26  ;;  %v516_v3 = vpop.f32.mrf.mxu0  ;;  %v2770_v26 = vadd.f32 %v2732_v6, %v2479_v38 }
 0x127   :  { %v2184_v47 = vpop.eup %2183  ;;  %v1744_v31 = vpack.c.bf16 %v1071_v12, %v1070_v53  ;;  %v1069_v27 = vmul.f32 %v2182_v20, %v2610_v58  ;;  %2209 = vpow2.f32 %v1537_v8  ;;  %v2003_v50 = vpop.f32.mrf.mxu1 }
 0x128   :  { %v2186_v34 = vpop.eup %2185  ;;  %v1824_v37 = vpack.c.bf16 %v1103_v42, %v1102_v23  ;;  %v1101_v32 = vmul.f32 %v2184_v47, %v2617_v28  ;;  %2211 = vpow2.f32 %v1569_v11  ;;  %v1974_v41 = vpop.f32.mrf.mxu0  ;;  %v1540_v6 = vmul.f32 -1.442695, %v2770_v26 }
 0x129   :  { %v2188_v5 = vpop.eup %2187  ;;  %1872 = vst [vmem:[%s2918_s3 + $0x38] sm:$0xff] %v1744_v31   ;;  %v1739_v39 = vpack.c.bf16 %v1069_v27, %v1068_v25  ;;  %v882_v43 = vadd.f32 1.0, %v2186_v34  ;;  %2213 = vpow2.f32 %v1535_v17  ;;  %v644_v10 = vpop.f32.mrf.mxu1  ;;  %v2774_v17 = vadd.f32 %v2738_v9, %v2479_v38 }
 0x12a   :  { %v2190_v52 = vpop.eup %2189  ;;  %1888 = vst [vmem:[%s2918_s3 + $0xb8] sm:$0xff] %v1824_v37   ;;  %v1819_v58 = vpack.c.bf16 %v1101_v32, %v1100_v35  ;;  %v914_v45 = vadd.f32 1.0, %v2188_v5  ;;  %2215 = vpow2.f32 %v1567_v54  ;;  %v2779_v54 = vadd.f32 %v2479_v38, %v2750_v24  ;;  %v529_v24 = vpop.f32.mrf.mxu0 }
 0x12b   :  { %v2192_v29 = vpop.eup %2191  ;;  %1871 = vst [vmem:[%s2918_s3 + $0x30] sm:$0xff] %v1739_v39   ;;  %2217 = vrcp.f32 %v882_v43  ;;  %v880_v28 = vadd.f32 1.0, %v2190_v52  ;;  %v2006_v20 = vpop.f32.mrf.mxu1  ;;  %v2782_v31 = vadd.f32 %v2479_v38, %v641_v62  ;;  %v2785_v27 = vadd.f32 %v1971_v56, %v2479_v38 }
 0x12c   :  { %v2194_v55 = vpop.eup %2193  ;;  %1887 = vst [vmem:[%s2918_s3 + $0xb0] sm:$0xff] %v1819_v58   ;;  %2219 = vrcp.f32 %v914_v45  ;;  %v912_v16 = vadd.f32 1.0, %v2192_v29  ;;  %v2788_v35 = vadd.f32 %v2003_v50, %v2479_v38  ;;  %v2791_v37 = vadd.f32 %v2479_v38, %v516_v3 }
 0x12d   :  { %v2196_v51 = vpop.eup %2195  ;;  %2221 = vrcp.f32 %v880_v28  ;;  %v883_v33 = vadd.f32 1.0, %v2194_v55  ;;  %v2794_v39 = vadd.f32 %v2479_v38, %v644_v10  ;;  %v2797_v62 = vadd.f32 %v1974_v41, %v2479_v38  ;;  %v657_v43 = vpop.f32.mrf.mxu1 }
 0x12e   :  { %v2198_v60 = vpop.eup %2197  ;;  %2223 = vrcp.f32 %v912_v16  ;;  %v915_v49 = vadd.f32 1.0, %v2196_v51  ;;  %v1572_v45 = vmul.f32 -1.442695, %v2774_v17  ;;  %v2801_v56 = vadd.f32 %v2006_v20, %v2479_v38 }
 0x12f   :  { %v2200_v21 = vpop.eup %2199  ;;  %2225 = vrcp.f32 %v883_v33  ;;  %v881_v2 = vadd.f32 1.0, %v2198_v60  ;;  %v1538_v28 = vmul.f32 -1.442695, %v2779_v54  ;;  %v1570_v55 = vmul.f32 -1.442695, %v2782_v31  ;;  %v1975_v33 = vpop.f32.mrf.mxu0 }
 0x130   :  { %v2202_v14 = vpop.eup %2201  ;;  %2227 = vrcp.f32 %v915_v49  ;;  %v913_v15 = vadd.f32 1.0, %v2200_v21  ;;  %v1541_v16 = vmul.f32 -1.442695, %v2785_v27  ;;  %v1573_v51 = vmul.f32 -1.442695, %v2788_v35 }
 0x131   :  { %v2204_v18 = vpop.eup %2203  ;;  %2229 = vrcp.f32 %v881_v2  ;;  %v886_v8 = vadd.f32 1.0, %v2202_v14  ;;  %v1539_v49 = vmul.f32 -1.442695, %v2791_v37  ;;  %v1571_v3 = vmul.f32 -1.442695, %v2794_v39  ;;  %v2007_v2 = vpop.f32.mrf.mxu1 }
 0x132   :  { %v2206_v19 = vpop.eup %2205  ;;  %2231 = vrcp.f32 %v913_v15  ;;  %v918_v11 = vadd.f32 1.0, %v2204_v18  ;;  %v1544_v21 = vmul.f32 -1.442695, %v2797_v62  ;;  %v1576_v14 = vmul.f32 -1.442695, %v2801_v56 }
 0x133   :  { %v2208_v53 = vpop.eup %2207  ;;  %2233 = vrcp.f32 %v886_v8  ;;  %v884_v12 = vadd.f32 1.0, %v2206_v19  ;;  %v2812_v15 = vadd.f32 %v2479_v38, %v529_v24  ;;  %v2815_v18 = vadd.f32 %v2479_v38, %v657_v43 }
 0x134   :  { %v2210_v23 = vpop.eup %2209  ;;  %2235 = vrcp.f32 %v918_v11  ;;  %v916_v42 = vadd.f32 1.0, %v2208_v53  ;;  %v2820_v41 = vadd.f32 %v1975_v33, %v2479_v38 }
 0x135   :  { %v2212_v47 = vpop.eup %2211  ;;  %2237 = vrcp.f32 %v884_v12  ;;  %v887_v25 = vadd.f32 1.0, %v2210_v23  ;;  %v2825_v23 = vadd.f32 %v2007_v2, %v2479_v38 }
 0x136   :  { %v2214_v9 = vpop.eup %2213  ;;  %2239 = vrcp.f32 %v916_v42  ;;  %v919_v34 = vadd.f32 1.0, %v2212_v47  ;;  %v532_v42 = vpop.f32.mrf.mxu0 }
 0x137   :  { %v2216_v32 = vpop.eup %2215  ;;  %2241 = vrcp.f32 %v887_v25  ;;  %v885_v5 = vadd.f32 1.0, %v2214_v9  ;;  %v660_v25 = vpop.f32.mrf.mxu1 }
 0x138   :  { %v2218_v52 = vpop.eup %2217  ;;  %2243 = vrcp.f32 %v919_v34  ;;  %v917_v58 = vadd.f32 1.0, %v2216_v32  ;;  %v2843_v43 = vadd.f32 %v2479_v38, %v660_v25 }
 0x139   :  { %v2220_v29 = vpop.eup %2219  ;;  %2245 = vrcp.f32 %v885_v5  ;;  %v1074_v19 = vmul.f32 %v2218_v52, %v2657_v59 }
 0x13a   :  { %v2222_v50 = vpop.eup %2221  ;;  %2247 = vrcp.f32 %v917_v58  ;;  %v1106_v12 = vmul.f32 %v2220_v29, %v2661_v40  ;;  %v1545_v58 = vmul.f32 -1.442695, %v2820_v41  ;;  %v1577_v29 = vmul.f32 -1.442695, %v2825_v23 }
 0x13b   :  { %v2224_v60 = vpop.eup %2223  ;;  %2249 = vpow2.f32 %v1540_v6  ;;  %v1072_v47 = vmul.f32 %v2222_v50, %v2666_v46  ;;  %v1542_v46 = vmul.f32 -1.442695, %v2812_v15 }
 0x13c   :  { %v2226_v10 = vpop.eup %2225  ;;  %2251 = vpow2.f32 %v1572_v45  ;;  %v1104_v34 = vmul.f32 %v2224_v60, %v2669_v57  ;;  %v1575_v60 = vmul.f32 -1.442695, %v2843_v43 }
 0x13d   :  { %v2228_v8 = vpop.eup %2227  ;;  %v1075_v11 = vmul.f32 %v2226_v10, %v2672_v1  ;;  %2253 = vpow2.f32 %v1538_v28 }
 0x13e   :  { %v2230_v53 = vpop.eup %2229  ;;  %v1107_v20 = vmul.f32 %v2228_v8, %v2675_v61  ;;  %2255 = vpow2.f32 %v1570_v55 }
 0x13f   :  { %v2232_v6 = vpop.eup %2231  ;;  %v1754_v59 = vpack.c.bf16 %v1075_v11, %v1074_v19  ;;  %v1073_v1 = vmul.f32 %v2230_v53, %v2678_v63  ;;  %2257 = vpow2.f32 %v1541_v16  ;;  %v2836_v63 = vadd.f32 %v2479_v38, %v532_v42 }
 0x140   :  { %v2234_v9 = vpop.eup %2233  ;;  %v1834_v24 = vpack.c.bf16 %v1107_v20, %v1106_v12  ;;  %v1105_v40 = vmul.f32 %v2232_v6, %v2681_v0  ;;  %2259 = vpow2.f32 %v1573_v51  ;;  %v1574_v0 = vmul.f32 -1.442695, %v2815_v18 }
 0x141   :  { %v2236_v61 = vpop.eup %2235  ;;  %1874 = vst [vmem:[%s2918_s3 + $0x48] sm:$0xff] %v1754_v59   ;;  %v1749_v32 = vpack.c.bf16 %v1073_v1, %v1072_v47  ;;  %2261 = vpow2.f32 %v1539_v49  ;;  %v1078_v38 = vmul.f32 %v2234_v9, %v2684_v13  ;;  %v1543_v55 = vmul.f32 -1.442695, %v2836_v63 }
 0x142   :  { %v2238_v5 = vpop.eup %2237  ;;  %1890 = vst [vmem:[%s2918_s3 + $0xc8] sm:$0xff] %v1834_v24   ;;  %v1829_v57 = vpack.c.bf16 %v1105_v40, %v1104_v34  ;;  %2263 = vpow2.f32 %v1571_v3  ;;  %v1110_v51 = vmul.f32 %v2236_v61, %v2688_v7 }
 0x143   :  { %v2240_v52 = vpop.eup %2239  ;;  %1873 = vst [vmem:[%s2918_s3 + $0x40] sm:$0xff] %v1749_v32   ;;  %2265 = vpow2.f32 %v1544_v21  ;;  %v1076_v3 = vmul.f32 %v2238_v5, %v2699_v48 }
 0x144   :  { %v2242_v45 = vpop.eup %2241  ;;  %1889 = vst [vmem:[%s2918_s3 + $0xc0] sm:$0xff] %v1829_v57   ;;  %2267 = vpow2.f32 %v1576_v14 }
 0x145   :  { %v2244_v28 = vpop.eup %2243  ;;  %v1079_v50 = vmul.f32 %v2242_v45, %v2707_v36  ;;  %2269 = vpow2.f32 %v1542_v46  ;;  %v1108_v36 = vmul.f32 %v2240_v52, %v2702_v30 }
 0x146   :  { %v2246_v16 = vpop.eup %2245  ;;  %v1111_v33 = vmul.f32 %v2244_v28, %v2712_v44  ;;  %2271 = vpow2.f32 %v1574_v0 }
 0x147   :  { %v2248_v49 = vpop.eup %2247  ;;  %v1764_v21 = vpack.c.bf16 %v1079_v50, %v1078_v38  ;;  %v1077_v2 = vmul.f32 %v2246_v16, %v2723_v22  ;;  %2273 = vpow2.f32 %v1545_v58 }
 0x148   :  { %v2250_v13 = vpop.eup %2249  ;;  %v1844_v10 = vpack.c.bf16 %v1111_v33, %v1110_v51  ;;  %v1109_v14 = vmul.f32 %v2248_v49, %v2730_v4  ;;  %2275 = vpow2.f32 %v1577_v29 }
 0x149   :  { %v2252_v7 = vpop.eup %2251  ;;  %1876 = vst [vmem:[%s2918_s3 + $0x58] sm:$0xff] %v1764_v21   ;;  %v1759_v44 = vpack.c.bf16 %v1077_v2, %v1076_v3  ;;  %v890_v8 = vadd.f32 1.0, %v2250_v13  ;;  %2277 = vpow2.f32 %v1543_v55 }
 0x14a   :  { %v2254_v48 = vpop.eup %2253  ;;  %1892 = vst [vmem:[%s2918_s3 + $0xd8] sm:$0xff] %v1844_v10   ;;  %v1839_v22 = vpack.c.bf16 %v1109_v14, %v1108_v36  ;;  %v922_v19 = vadd.f32 1.0, %v2252_v7  ;;  %2279 = vpow2.f32 %v1575_v60 }
 0x14b   :  { %v2256_v30 = vpop.eup %2255  ;;  %1875 = vst [vmem:[%s2918_s3 + $0x50] sm:$0xff] %v1759_v44   ;;  %2281 = vrcp.f32 %v890_v8  ;;  %v888_v4 = vadd.f32 1.0, %v2254_v48 }
 0x14c   :  { %v2258_v11 = vpop.eup %2257  ;;  %1891 = vst [vmem:[%s2918_s3 + $0xd0] sm:$0xff] %v1839_v22   ;;  %2283 = vrcp.f32 %v922_v19  ;;  %v920_v53 = vadd.f32 1.0, %v2256_v30 }
 0x14d   :  { %v2260_v12 = vpop.eup %2259  ;;  %2285 = vrcp.f32 %v888_v4  ;;  %v891_v20 = vadd.f32 1.0, %v2258_v11 }
 0x14e   :  { %v2262_v42 = vpop.eup %2261  ;;  %2287 = vrcp.f32 %v920_v53  ;;  %v923_v6 = vadd.f32 1.0, %v2260_v12 }
 0x14f   :  { %v2264_v47 = vpop.eup %2263  ;;  %2289 = vrcp.f32 %v891_v20  ;;  %v889_v59 = vadd.f32 1.0, %v2262_v42 }
 0x150   :  { %v2266_v1 = vpop.eup %2265  ;;  %2291 = vrcp.f32 %v923_v6  ;;  %v921_v25 = vadd.f32 1.0, %v2264_v47 }
 0x151   :  { %v2268_v9 = vpop.eup %2267  ;;  %2293 = vrcp.f32 %v889_v59  ;;  %v894_v34 = vadd.f32 1.0, %v2266_v1 }
 0x152   :  { %v2270_v24 = vpop.eup %2269  ;;  %2295 = vrcp.f32 %v921_v25  ;;  %v926_v40 = vadd.f32 1.0, %v2268_v9 }
 0x153   :  { %v2272_v61 = vpop.eup %2271  ;;  %2297 = vrcp.f32 %v894_v34  ;;  %v892_v32 = vadd.f32 1.0, %v2270_v24 }
 0x154   :  { %v2274_v46 = vpop.eup %2273  ;;  %2299 = vrcp.f32 %v926_v40  ;;  %v924_v5 = vadd.f32 1.0, %v2272_v61 }
 0x155   :  { %v2276_v57 = vpop.eup %2275  ;;  %2301 = vrcp.f32 %v892_v32  ;;  %v895_v0 = vadd.f32 1.0, %v2274_v46 }
 0x156   :  { %v2278_v52 = vpop.eup %2277  ;;  %2303 = vrcp.f32 %v924_v5  ;;  %v927_v58 = vadd.f32 1.0, %v2276_v57 }
 0x157   :  { %v2280_v45 = vpop.eup %2279  ;;  %2305 = vrcp.f32 %v895_v0  ;;  %v893_v29 = vadd.f32 1.0, %v2278_v52 }
 0x158   :  { %v2282_v28 = vpop.eup %2281  ;;  %2307 = vrcp.f32 %v927_v58  ;;  %v925_v38 = vadd.f32 1.0, %v2280_v45 }
 0x159   :  { %v2284_v50 = vpop.eup %2283  ;;  %2309 = vrcp.f32 %v893_v29  ;;  %v1082_v60 = vmul.f32 %v2282_v28, %v2770_v26 }
 0x15a   :  { %v2286_v55 = vpop.eup %2285  ;;  %2311 = vrcp.f32 %v925_v38  ;;  %v1114_v21 = vmul.f32 %v2284_v50, %v2774_v17 }
 0x15b   :  { %v2288_v16 = vpop.eup %2287  ;;  %v1080_v36 = vmul.f32 %v2286_v55, %v2779_v54 }
 0x15c   :  { %v2290_v51 = vpop.eup %2289  ;;  %v1112_v44 = vmul.f32 %v2288_v16, %v2782_v31 }
 0x15d   :  { %v2292_v33 = vpop.eup %2291  ;;  %v1083_v49 = vmul.f32 %v2290_v51, %v2785_v27 }
 0x15e   :  { %v2294_v3 = vpop.eup %2293  ;;  %v1115_v2 = vmul.f32 %v2292_v33, %v2788_v35 }
 0x15f   :  { %v2296_v13 = vpop.eup %2295  ;;  %v1774_v10 = vpack.c.bf16 %v1083_v49, %v1082_v60  ;;  %v1081_v14 = vmul.f32 %v2294_v3, %v2791_v37 }
 0x160   :  { %v2298_v7 = vpop.eup %2297  ;;  %v1854_v8 = vpack.c.bf16 %v1115_v2, %v1114_v21  ;;  %v1113_v48 = vmul.f32 %v2296_v13, %v2794_v39 }
 0x161   :  { %v2300_v26 = vpop.eup %2299  ;;  %1878 = vst [vmem:[%s2918_s3 + $0x68] sm:$0xff] %v1774_v10   ;;  %v1769_v17 = vpack.c.bf16 %v1081_v14, %v1080_v36  ;;  %v1086_v39 = vmul.f32 %v2298_v7, %v2797_v62 }
 0x162   :  { %v2302_v27 = vpop.eup %2301  ;;  %1894 = vst [vmem:[%s2918_s3 + $0xe8] sm:$0xff] %v1854_v8   ;;  %v1849_v54 = vpack.c.bf16 %v1113_v48, %v1112_v44  ;;  %v1118_v30 = vmul.f32 %v2300_v26, %v2801_v56 }
 0x163   :  { %v2304_v35 = vpop.eup %2303  ;;  %1877 = vst [vmem:[%s2918_s3 + $0x60] sm:$0xff] %v1769_v17   ;;  %v1084_v53 = vmul.f32 %v2302_v27, %v2812_v15 }
 0x164   :  { %v2306_v31 = vpop.eup %2305  ;;  %1893 = vst [vmem:[%s2918_s3 + $0xe0] sm:$0xff] %v1849_v54   ;;  %v1116_v42 = vmul.f32 %v2304_v35, %v2815_v18 }
 0x165   :  { %v2308_v37 = vpop.eup %2307  ;;  %v1087_v22 = vmul.f32 %v2306_v31, %v2820_v41 }
 0x166   :  { %v2310_v19 = vpop.eup %2309  ;;  %v1119_v4 = vmul.f32 %v2308_v37, %v2825_v23 }
 0x167   :  { %v2312_v11 = vpop.eup %2311  ;;  %v1784_v12 = vpack.c.bf16 %v1087_v22, %v1086_v39  ;;  %v1085_v20 = vmul.f32 %v2310_v19, %v2836_v63 }
 0x168   :  { %v1864_v6 = vpack.c.bf16 %v1119_v4, %v1118_v30  ;;  %v1117_v47 = vmul.f32 %v2312_v11, %v2843_v43 }
 0x169   :  { %1880 = vst [vmem:[%s2918_s3 + $0x78] sm:$0xff] %v1784_v12   ;;  %v1779_v62 = vpack.c.bf16 %v1085_v20, %v1084_v53 }
 0x16a   :  { %1896 = vst [vmem:[%s2918_s3 + $0xf8] sm:$0xff] %v1864_v6   ;;  %v1859_v56 = vpack.c.bf16 %v1117_v47, %v1116_v42 }
 0x16b   :  { %1879 = vst [vmem:[%s2918_s3 + $0x70] sm:$0xff] %v1779_v62  }
 0x16c   :  { %1895 = vst [vmem:[%s2918_s3 + $0xf0] sm:$0xff] %v1859_v56  }

// kernel: model_forward.8
= control target key start
LH: loop header
LB: loop body
LE: loop exit
PB: predicated region body
PF: predicated region fallthrough
CT: control target
= control target key end

     0   :  { %v745_v0 = vmov 0   ;;  %vm182_vm0 = vcmask 130048   ;;  %s958_s1 = inlined_call_operand.vmem [shape: bf16[144,128], index: 1, kind: input, shape index: {}]   ;;  %s959_s0 = inlined_call_operand.vmem [shape: bf16[128,144], index: 0, kind: input, shape index: {}]   ;;  %s960_s2 = inlined_call_operand.vmem [shape: f32[1,128], index: 2, kind: input, shape index: {}]   ;;  %s961_s3 = inlined_call_operand.vmem [shape: bf16[128,128], index: 3, kind: output, shape index: {}]  }
   0x1   :  { %207 = vmatprep.subr.bf16.mxu0 %v745_v0  ;;  %629 = vmatprep.subr.bf16.mxu1 %v745_v0  ;;  %v648_v1 = vld [vmem:[%s958_s1 + $0x38] sm:$0xff]   ;;  %v649_v2 = vld [vmem:[%s958_s1 + $0x30] sm:$0xff]   ;;  %v650_v3 = vld [vmem:[%s958_s1 + $0x28] sm:$0xff]  }
   0x2   :  { %208 = vmatpush1.bf16.msra.mxu0 %v648_v1  ;;  %638 = vmatpush1.bf16.msra.mxu1 %v648_v1  ;;  %v651_v4 = vld [vmem:[%s958_s1 + $0x20] sm:$0xff]   ;;  %v652_v7 = vld [vmem:[%s958_s1 + $0x18] sm:$0xff]   ;;  %v653_v8 = vld [vmem:[%s958_s1 + $0x10] sm:$0xff]  }
   0x3   :  { %209 = vmatprep.subr.bf16.mxu0 %v745_v0  ;;  %630 = vmatprep.subr.bf16.mxu1 %v745_v0  ;;  %v659_v5 = vld [vmem:[%s959_s0 + $0x4] ss:$8 sps:$4 sm:$0xff]   ;;  %v657_v12 = vld [vmem:[%s959_s0] ss:$8 sps:$4 sm:$0xff]   ;;  %v663_v14 = vld [vmem:[%s959_s0 + $0x14] ss:$8 sps:$4 sm:$0xff]  }
   0x4   :  { %v662_v6 = vld [vmem:[%s959_s0 + $0x44] ss:$8 sps:$4 sm:$0xff]   ;;  %526 = vmatprep.mubr.msk.bf16.mxu0 %vm182_vm0, %v659_v5  ;;  %v660_v13 = vld [vmem:[%s959_s0 + $0x40] ss:$8 sps:$4 sm:$0xff]   ;;  %v665_v15 = vld [vmem:[%s959_s0 + $0x54] ss:$8 sps:$4 sm:$0xff]  }
   0x5   :  { %530 = vmatprep.mubr.msk.bf16.mxu1 %vm182_vm0, %v662_v6  ;;  %v654_v9 = vld [vmem:[%s958_s1 + $0x8] sm:$0xff]   ;;  %v655_v10 = vld [vmem:[%s958_s1] sm:$0xff]   ;;  %v667_v16 = vld [vmem:[%s959_s0 + $0x10] ss:$8 sps:$4 sm:$0xff]  }
   0x6   :  { %210 = vmatpush1.bf16.msra.mxu0 %v649_v2  ;;  %639 = vmatpush1.bf16.msra.mxu1 %v649_v2  ;;  %v656_v11 = vld [vmem:[%s958_s1 + $0x40] sm:$0xff]   ;;  %v668_v17 = vld [vmem:[%s959_s0 + $0x50] ss:$8 sps:$4 sm:$0xff]   ;;  %v675_v22 = vld [vmem:[%s959_s0 + $0x34] ss:$8 sps:$4 sm:$0xff]  }
   0x7   :  { %211 = vmatprep.subr.bf16.mxu0 %v745_v0  ;;  %631 = vmatprep.subr.bf16.mxu1 %v745_v0  ;;  %v669_v18 = vld [vmem:[%s959_s0 + $0x24] ss:$8 sps:$4 sm:$0xff]   ;;  %v673_v20 = vld [vmem:[%s959_s0 + $0x20] ss:$8 sps:$4 sm:$0xff]   ;;  %v677_v23 = vld [vmem:[%s959_s0 + $0x74] ss:$8 sps:$4 sm:$0xff]  }
   0x8   :  { %v671_v19 = vld [vmem:[%s959_s0 + $0x64] ss:$8 sps:$4 sm:$0xff]   ;;  %v674_v21 = vld [vmem:[%s959_s0 + $0x60] ss:$8 sps:$4 sm:$0xff]   ;;  %v679_v24 = vld [vmem:[%s959_s0 + $0x30] ss:$8 sps:$4 sm:$0xff]  }
   0x9   :  { %v680_v25 = vld [vmem:[%s959_s0 + $0x70] ss:$8 sps:$4 sm:$0xff]   ;;  %v852_v26 = vld [vmem:[%s960_s2] ss:$0 sm:$0xff] }
   0xa   :  { %212 = vmatpush1.bf16.msra.mxu0 %v650_v3  ;;  %640 = vmatpush1.bf16.msra.mxu1 %v650_v3 }
   0xb   :  { %213 = vmatprep.subr.bf16.mxu0 %v745_v0  ;;  %632 = vmatprep.subr.bf16.mxu1 %v745_v0 }
   0xe   :  { %214 = vmatpush1.bf16.msra.mxu0 %v651_v4  ;;  %641 = vmatpush1.bf16.msra.mxu1 %v651_v4 }
   0xf   :  { %215 = vmatprep.subr.bf16.mxu0 %v745_v0  ;;  %633 = vmatprep.subr.bf16.mxu1 %v745_v0 }
  0x12   :  { %216 = vmatpush1.bf16.msra.mxu0 %v652_v7  ;;  %642 = vmatpush1.bf16.msra.mxu1 %v652_v7 }
  0x13   :  { %217 = vmatprep.subr.bf16.mxu0 %v745_v0  ;;  %634 = vmatprep.subr.bf16.mxu1 %v745_v0 }
  0x16   :  { %218 = vmatpush1.bf16.msra.mxu0 %v653_v8  ;;  %643 = vmatpush1.bf16.msra.mxu1 %v653_v8 }
  0x17   :  { %219 = vmatprep.subr.bf16.mxu0 %v745_v0  ;;  %635 = vmatprep.subr.bf16.mxu1 %v745_v0 }
  0x1a   :  { %220 = vmatpush1.bf16.msra.mxu0 %v654_v9  ;;  %644 = vmatpush1.bf16.msra.mxu1 %v654_v9 }
  0x1b   :  { %221 = vmatprep.subr.bf16.mxu0 %v745_v0  ;;  %636 = vmatprep.subr.bf16.mxu1 %v745_v0 }
  0x1e   :  { %222 = vmatpush1.bf16.msra.mxu0 %v655_v10  ;;  %645 = vmatpush1.bf16.msra.mxu1 %v655_v10 }
  0x1f   :  { %237 = vmatprep.subr.bf16.mxu0 %v745_v0  ;;  %637 = vmatprep.subr.bf16.mxu1 %v745_v0 }
  0x22   :  { %238 = vmatpush2.bf16.msra.mxu0 %v656_v11  ;;  %646 = vmatpush2.bf16.msra.mxu1 %v656_v11 }
  0x25   :  { %240 = vmatmul.mubr.bf16.vlgmr.msra.gmra.mxu0 %v657_v12  ;;  %272 = vmatmul.mubr.bf16.vlgmr.msra.gmra.mxu1 %v660_v13 }
  0x26   :  { %527 = vmatprep.mubr.msk.bf16.mxu0 %vm182_vm0, %v663_v14  ;;  %531 = vmatprep.mubr.msk.bf16.mxu1 %vm182_vm0, %v665_v15 }
  0x2d   :  { %248 = vmatmul.mubr.bf16.gmra.mxu0 %v667_v16  ;;  %280 = vmatmul.mubr.bf16.gmra.mxu1 %v668_v17 }
  0x2e   :  { %528 = vmatprep.mubr.msk.bf16.mxu0 %vm182_vm0, %v669_v18  ;;  %532 = vmatprep.mubr.msk.bf16.mxu1 %vm182_vm0, %v671_v19 }
  0x35   :  { %256 = vmatmul.mubr.bf16.gmra.mxu0 %v673_v20  ;;  %288 = vmatmul.mubr.bf16.gmra.mxu1 %v674_v21 }
  0x36   :  { %529 = vmatprep.mubr.msk.bf16.mxu0 %vm182_vm0, %v675_v22  ;;  %533 = vmatprep.mubr.msk.bf16.mxu1 %vm182_vm0, %v677_v23 }
  0x3d   :  { %264 = vmatmul.mubr.bf16.gmra.mxu0 %v679_v24  ;;  %296 = vmatmul.mubr.bf16.gmra.mxu1 %v680_v25 }
  0xe5   :  { %v241_v27 = vpop.f32.mrf.mxu0  ;;  %v273_v28 = vpop.f32.mrf.mxu1 }
  0xe6   :  { %v855_v29 = vadd.f32 %v852_v26, %v241_v27  ;;  %v858_v30 = vadd.f32 %v852_v26, %v273_v28 }
  0xe7   :  { %v243_v31 = vpop.f32.mrf.mxu0  ;;  %v275_v32 = vpop.f32.mrf.mxu1 }
  0xe8   :  { %v534_v33 = vmul.f32 -1.442695, %v855_v29  ;;  %v542_v34 = vmul.f32 -1.442695, %v858_v30 }
  0xe9   :  { %v244_v35 = vpop.f32.mrf.mxu0  ;;  %v276_v36 = vpop.f32.mrf.mxu1 }
  0xea   :  { %681 = vpow2.f32 %v534_v33  ;;  %v863_v37 = vadd.f32 %v852_v26, %v244_v35  ;;  %v866_v38 = vadd.f32 %v852_v26, %v276_v36 }
  0xeb   :  { %683 = vpow2.f32 %v542_v34  ;;  %v246_v39 = vpop.f32.mrf.mxu0  ;;  %v278_v40 = vpop.f32.mrf.mxu1 }
  0xec   :  { %v535_v41 = vmul.f32 -1.442695, %v863_v37  ;;  %v543_v42 = vmul.f32 -1.442695, %v866_v38 }
  0xed   :  { %v249_v43 = vpop.f32.mrf.mxu0  ;;  %v281_v44 = vpop.f32.mrf.mxu1 }
  0xee   :  { %685 = vpow2.f32 %v535_v41  ;;  %v871_v45 = vadd.f32 %v852_v26, %v249_v43  ;;  %v874_v46 = vadd.f32 %v852_v26, %v281_v44 }
  0xef   :  { %687 = vpow2.f32 %v543_v42  ;;  %v251_v47 = vpop.f32.mrf.mxu0  ;;  %v283_v48 = vpop.f32.mrf.mxu1 }
  0xf0   :  { %v536_v49 = vmul.f32 -1.442695, %v871_v45  ;;  %v544_v50 = vmul.f32 -1.442695, %v874_v46 }
  0xf1   :  { %v252_v51 = vpop.f32.mrf.mxu0  ;;  %v284_v52 = vpop.f32.mrf.mxu1 }
  0xf2   :  { %689 = vpow2.f32 %v536_v49  ;;  %v879_v53 = vadd.f32 %v852_v26, %v252_v51  ;;  %v882_v54 = vadd.f32 %v852_v26, %v284_v52 }
  0xf3   :  { %691 = vpow2.f32 %v544_v50  ;;  %v254_v55 = vpop.f32.mrf.mxu0  ;;  %v286_v56 = vpop.f32.mrf.mxu1 }
  0xf4   :  { %v537_v57 = vmul.f32 -1.442695, %v879_v53  ;;  %v545_v58 = vmul.f32 -1.442695, %v882_v54 }
  0xf5   :  { %v257_v59 = vpop.f32.mrf.mxu0  ;;  %v289_v60 = vpop.f32.mrf.mxu1 }
  0xf6   :  { %693 = vpow2.f32 %v537_v57  ;;  %v887_v61 = vadd.f32 %v852_v26, %v257_v59  ;;  %v890_v62 = vadd.f32 %v852_v26, %v289_v60 }
  0xf7   :  { %v682_v63 = vpop.eup %681  ;;  %695 = vpow2.f32 %v545_v58  ;;  %v259_v0 = vpop.f32.mrf.mxu0 }
  0xf8   :  { %v291_v1 = vpop.f32.mrf.mxu1  ;;  %v684_v2 = vpop.eup %683  ;;  %v352_v3 = vadd.f32 1.0, %v682_v63  ;;  %v538_v4 = vmul.f32 -1.442695, %v887_v61  ;;  %v546_v6 = vmul.f32 -1.442695, %v890_v62 }
  0xf9   :  { %v360_v5 = vadd.f32 1.0, %v684_v2  ;;  %v260_v7 = vpop.f32.mrf.mxu0 }
  0xfa   :  { %v292_v8 = vpop.f32.mrf.mxu1  ;;  %697 = vrcp.f32 %v352_v3  ;;  %v895_v9 = vadd.f32 %v852_v26, %v260_v7 }
  0xfb   :  { %v898_v10 = vadd.f32 %v852_v26, %v292_v8  ;;  %v686_v11 = vpop.eup %685  ;;  %699 = vrcp.f32 %v360_v5  ;;  %v262_v12 = vpop.f32.mrf.mxu0 }
  0xfc   :  { %v294_v13 = vpop.f32.mrf.mxu1  ;;  %v688_v14 = vpop.eup %687  ;;  %v353_v15 = vadd.f32 1.0, %v686_v11  ;;  %701 = vpow2.f32 %v538_v4  ;;  %v539_v16 = vmul.f32 -1.442695, %v895_v9 }
  0xfd   :  { %v361_v17 = vadd.f32 1.0, %v688_v14  ;;  %703 = vpow2.f32 %v546_v6  ;;  %v547_v18 = vmul.f32 -1.442695, %v898_v10  ;;  %v265_v19 = vpop.f32.mrf.mxu0 }
  0xfe   :  { %v297_v20 = vpop.f32.mrf.mxu1  ;;  %705 = vrcp.f32 %v353_v15  ;;  %v903_v21 = vadd.f32 %v852_v26, %v265_v19 }
  0xff   :  { %v906_v22 = vadd.f32 %v852_v26, %v297_v20  ;;  %v690_v23 = vpop.eup %689  ;;  %707 = vrcp.f32 %v361_v17  ;;  %v267_v24 = vpop.f32.mrf.mxu0 }
 0x100   :  { %v299_v25 = vpop.f32.mrf.mxu1  ;;  %v692_v27 = vpop.eup %691  ;;  %v354_v28 = vadd.f32 1.0, %v690_v23  ;;  %709 = vpow2.f32 %v539_v16  ;;  %v540_v31 = vmul.f32 -1.442695, %v903_v21 }
 0x101   :  { %v362_v32 = vadd.f32 1.0, %v692_v27  ;;  %711 = vpow2.f32 %v547_v18  ;;  %v548_v33 = vmul.f32 -1.442695, %v906_v22  ;;  %v268_v34 = vpop.f32.mrf.mxu0 }
 0x102   :  { %v300_v35 = vpop.f32.mrf.mxu1  ;;  %713 = vrcp.f32 %v354_v28  ;;  %v911_v36 = vadd.f32 %v852_v26, %v268_v34 }
 0x103   :  { %v914_v39 = vadd.f32 %v852_v26, %v300_v35  ;;  %v694_v40 = vpop.eup %693  ;;  %715 = vrcp.f32 %v362_v32  ;;  %v270_v41 = vpop.f32.mrf.mxu0 }
 0x104   :  { %v302_v42 = vpop.f32.mrf.mxu1  ;;  %v696_v43 = vpop.eup %695  ;;  %v355_v44 = vadd.f32 1.0, %v694_v40  ;;  %717 = vpow2.f32 %v540_v31  ;;  %v541_v47 = vmul.f32 -1.442695, %v911_v36 }
 0x105   :  { %v363_v48 = vadd.f32 1.0, %v696_v43  ;;  %719 = vpow2.f32 %v548_v33  ;;  %v549_v49 = vmul.f32 -1.442695, %v914_v39 }
 0x106   :  { %721 = vrcp.f32 %v355_v44 }
 0x107   :  { %v698_v50 = vpop.eup %697  ;;  %723 = vrcp.f32 %v363_v48 }
 0x108   :  { %v700_v51 = vpop.eup %699  ;;  %725 = vpow2.f32 %v541_v47  ;;  %v400_v59 = vmul.f32 %v698_v50, %v855_v29 }
 0x109   :  { %v702_v26 = vpop.eup %701  ;;  %727 = vpow2.f32 %v549_v49  ;;  %v408_v0 = vmul.f32 %v700_v51, %v858_v30 }
 0x10a   :  { %v704_v52 = vpop.eup %703  ;;  %v356_v55 = vadd.f32 1.0, %v702_v26 }
 0x10b   :  { %v706_v56 = vpop.eup %705  ;;  %v364_v57 = vadd.f32 1.0, %v704_v52 }
 0x10c   :  { %v708_v58 = vpop.eup %707  ;;  %v401_v60 = vmul.f32 %v706_v56, %v863_v37  ;;  %729 = vrcp.f32 %v356_v55 }
 0x10d   :  { %v710_v63 = vpop.eup %709  ;;  %v409_v1 = vmul.f32 %v708_v58, %v866_v38  ;;  %731 = vrcp.f32 %v364_v57 }
 0x10e   :  { %v712_v2 = vpop.eup %711  ;;  %v585_v3 = vpack.c.bf16 %v401_v60, %v400_v59  ;;  %v357_v4 = vadd.f32 1.0, %v710_v63 }
 0x10f   :  { %v714_v5 = vpop.eup %713  ;;  %v605_v6 = vpack.c.bf16 %v409_v1, %v408_v0  ;;  %v365_v7 = vadd.f32 1.0, %v712_v2 }
 0x110   :  { %v716_v8 = vpop.eup %715  ;;  %586 = vst [vmem:[%s961_s3] sm:$0xff] %v585_v3   ;;  %733 = vrcp.f32 %v357_v4  ;;  %v402_v13 = vmul.f32 %v714_v5, %v871_v45 }
 0x111   :  { %v718_v29 = vpop.eup %717  ;;  %625 = vst [vmem:[%s961_s3 + $0x20] sm:$0xff] %v605_v6   ;;  %735 = vrcp.f32 %v365_v7  ;;  %v410_v16 = vmul.f32 %v716_v8, %v874_v46 }
 0x112   :  { %v720_v30 = vpop.eup %719  ;;  %v358_v37 = vadd.f32 1.0, %v718_v29 }
 0x113   :  { %v722_v38 = vpop.eup %721  ;;  %v366_v11 = vadd.f32 1.0, %v720_v30 }
 0x114   :  { %v724_v12 = vpop.eup %723  ;;  %v403_v14 = vmul.f32 %v722_v38, %v879_v53  ;;  %737 = vrcp.f32 %v358_v37 }
 0x115   :  { %v726_v15 = vpop.eup %725  ;;  %v411_v17 = vmul.f32 %v724_v12, %v882_v54  ;;  %739 = vrcp.f32 %v366_v11 }
 0x116   :  { %v728_v18 = vpop.eup %727  ;;  %v590_v19 = vpack.c.bf16 %v403_v14, %v402_v13  ;;  %v359_v20 = vadd.f32 1.0, %v726_v15 }
 0x117   :  { %v610_v23 = vpack.c.bf16 %v411_v17, %v410_v16  ;;  %v367_v24 = vadd.f32 1.0, %v728_v18 }
 0x118   :  { %622 = vst [vmem:[%s961_s3 + $0x8] sm:$0xff] %v590_v19   ;;  %741 = vrcp.f32 %v359_v20 }
 0x119   :  { %626 = vst [vmem:[%s961_s3 + $0x28] sm:$0xff] %v610_v23   ;;  %743 = vrcp.f32 %v367_v24  ;;  %v730_v45 = vpop.eup %729 }
 0x11a   :  { %v732_v46 = vpop.eup %731  ;;  %v404_v25 = vmul.f32 %v730_v45, %v887_v61 }
 0x11b   :  { %v412_v28 = vmul.f32 %v732_v46, %v890_v62 }
 0x11d   :  { %v734_v53 = vpop.eup %733 }
 0x11e   :  { %v736_v54 = vpop.eup %735  ;;  %v405_v27 = vmul.f32 %v734_v53, %v895_v9 }
 0x11f   :  { %v413_v31 = vmul.f32 %v736_v54, %v898_v10 }
 0x120   :  { %v595_v32 = vpack.c.bf16 %v405_v27, %v404_v25 }
 0x121   :  { %v615_v33 = vpack.c.bf16 %v413_v31, %v412_v28  ;;  %v738_v34 = vpop.eup %737 }
 0x122   :  { %623 = vst [vmem:[%s961_s3 + $0x10] sm:$0xff] %v595_v32   ;;  %v740_v35 = vpop.eup %739  ;;  %v406_v9 = vmul.f32 %v738_v34, %v903_v21 }
 0x123   :  { %627 = vst [vmem:[%s961_s3 + $0x30] sm:$0xff] %v615_v33   ;;  %v414_v10 = vmul.f32 %v740_v35, %v906_v22 }
 0x125   :  { %v742_v40 = vpop.eup %741 }
 0x126   :  { %v744_v61 = vpop.eup %743  ;;  %v407_v62 = vmul.f32 %v742_v40, %v911_v36 }
 0x127   :  { %v415_v41 = vmul.f32 %v744_v61, %v914_v39 }
 0x128   :  { %v600_v42 = vpack.c.bf16 %v407_v62, %v406_v9 }
 0x129   :  { %v620_v43 = vpack.c.bf16 %v415_v41, %v414_v10 }
 0x12a   :  { %624 = vst [vmem:[%s961_s3 + $0x18] sm:$0xff] %v600_v42  }
 0x12b   :  { %628 = vst [vmem:[%s961_s3 + $0x38] sm:$0xff] %v620_v43  }

// kernel: model_forward.9
= control target key start
LH: loop header
LB: loop body
LE: loop exit
PB: predicated region body
PF: predicated region fallthrough
CT: control target
= control target key end

     0   :  { %v313_v0 = vmov 0   ;;  %vm116_vm0 = vcmask 130048   ;;  %s382_s1 = inlined_call_operand.vmem [shape: bf16[144,128], index: 1, kind: input, shape index: {}]   ;;  %s383_s0 = inlined_call_operand.vmem [shape: bf16[32,144], index: 0, kind: input, shape index: {}]   ;;  %s384_s2 = inlined_call_operand.vmem [shape: f32[1,128], index: 2, kind: input, shape index: {}]   ;;  %s385_s3 = inlined_call_operand.vmem [shape: bf16[32,128], index: 3, kind: output, shape index: {}]  }
   0x1   :  { %123 = vmatprep.subr.bf16.mxu0 %v313_v0  ;;  %263 = vmatprep.subr.bf16.mxu1 %v313_v0  ;;  %v282_v1 = vld [vmem:[%s382_s1 + $0x38] sm:$0xff]   ;;  %v283_v2 = vld [vmem:[%s382_s1 + $0x30] sm:$0xff]   ;;  %v284_v3 = vld [vmem:[%s382_s1 + $0x28] sm:$0xff]  }
   0x2   :  { %124 = vmatpush1.bf16.msra.mxu0 %v282_v1  ;;  %272 = vmatpush1.bf16.msra.mxu1 %v282_v1  ;;  %v285_v4 = vld [vmem:[%s382_s1 + $0x20] sm:$0xff]   ;;  %v296_v6 = vld [vmem:[%s383_s0 + $0x14] ss:$8 sps:$4 sm:$0xff]   ;;  %v288_v9 = vld [vmem:[%s382_s1 + $0x8] sm:$0xff]  }
   0x3   :  { %125 = vmatprep.subr.bf16.mxu0 %v313_v0  ;;  %264 = vmatprep.subr.bf16.mxu1 %v313_v0  ;;  %v293_v5 = vld [vmem:[%s383_s0 + $0x4] ss:$8 sps:$4 sm:$0xff]   ;;  %v286_v7 = vld [vmem:[%s382_s1 + $0x18] sm:$0xff]   ;;  %v287_v8 = vld [vmem:[%s382_s1 + $0x10] sm:$0xff]  }
   0x4   :  { %238 = vmatprep.mubr.msk.bf16.mxu0 %vm116_vm0, %v293_v5  ;;  %239 = vmatprep.mubr.msk.bf16.mxu1 %vm116_vm0, %v296_v6  ;;  %v289_v10 = vld [vmem:[%s382_s1] sm:$0xff]   ;;  %v294_v13 = vld [vmem:[%s383_s0 + $0x10] ss:$8 sps:$4 sm:$0xff]  }
   0x5   :  { %v290_v11 = vld [vmem:[%s382_s1 + $0x40] sm:$0xff]  }
   0x6   :  { %126 = vmatpush1.bf16.msra.mxu0 %v283_v2  ;;  %273 = vmatpush1.bf16.msra.mxu1 %v283_v2  ;;  %v291_v12 = vld [vmem:[%s383_s0] ss:$8 sps:$4 sm:$0xff]  }
   0x7   :  { %127 = vmatprep.subr.bf16.mxu0 %v313_v0  ;;  %265 = vmatprep.subr.bf16.mxu1 %v313_v0  ;;  %v224_v14 = vld [vmem:[%s384_s2] ss:$0 sm:$0xff] }
   0xa   :  { %128 = vmatpush1.bf16.msra.mxu0 %v284_v3  ;;  %274 = vmatpush1.bf16.msra.mxu1 %v284_v3 }
   0xb   :  { %129 = vmatprep.subr.bf16.mxu0 %v313_v0  ;;  %266 = vmatprep.subr.bf16.mxu1 %v313_v0 }
   0xe   :  { %130 = vmatpush1.bf16.msra.mxu0 %v285_v4  ;;  %275 = vmatpush1.bf16.msra.mxu1 %v285_v4 }
   0xf   :  { %131 = vmatprep.subr.bf16.mxu0 %v313_v0  ;;  %267 = vmatprep.subr.bf16.mxu1 %v313_v0 }
  0x12   :  { %132 = vmatpush1.bf16.msra.mxu0 %v286_v7  ;;  %276 = vmatpush1.bf16.msra.mxu1 %v286_v7 }
  0x13   :  { %133 = vmatprep.subr.bf16.mxu0 %v313_v0  ;;  %268 = vmatprep.subr.bf16.mxu1 %v313_v0 }
  0x16   :  { %134 = vmatpush1.bf16.msra.mxu0 %v287_v8  ;;  %277 = vmatpush1.bf16.msra.mxu1 %v287_v8 }
  0x17   :  { %135 = vmatprep.subr.bf16.mxu0 %v313_v0  ;;  %269 = vmatprep.subr.bf16.mxu1 %v313_v0 }
  0x1a   :  { %136 = vmatpush1.bf16.msra.mxu0 %v288_v9  ;;  %278 = vmatpush1.bf16.msra.mxu1 %v288_v9 }
  0x1b   :  { %137 = vmatprep.subr.bf16.mxu0 %v313_v0  ;;  %270 = vmatprep.subr.bf16.mxu1 %v313_v0 }
  0x1e   :  { %138 = vmatpush1.bf16.msra.mxu0 %v289_v10  ;;  %279 = vmatpush1.bf16.msra.mxu1 %v289_v10 }
  0x1f   :  { %153 = vmatprep.subr.bf16.mxu0 %v313_v0  ;;  %271 = vmatprep.subr.bf16.mxu1 %v313_v0 }
  0x22   :  { %154 = vmatpush2.bf16.msra.mxu0 %v290_v11  ;;  %280 = vmatpush2.bf16.msra.mxu1 %v290_v11 }
  0x25   :  { %156 = vmatmul.mubr.bf16.vlgmr.msra.gmra.mxu0 %v291_v12  ;;  %164 = vmatmul.mubr.bf16.vlgmr.msra.gmra.mxu1 %v294_v13 }
  0xe5   :  { %v157_v15 = vpop.f32.mrf.mxu0  ;;  %v165_v16 = vpop.f32.mrf.mxu1 }
  0xe6   :  { %v158_v17 = vadd.f32 %v224_v14, %v157_v15  ;;  %v166_v18 = vadd.f32 %v224_v14, %v165_v16 }
  0xe7   :  { %v159_v19 = vpop.f32.mrf.mxu0  ;;  %v167_v20 = vpop.f32.mrf.mxu1 }
  0xe8   :  { %v240_v21 = vmul.f32 -1.442695, %v158_v17  ;;  %v242_v22 = vmul.f32 -1.442695, %v166_v18 }
  0xe9   :  { %v160_v23 = vpop.f32.mrf.mxu0  ;;  %v168_v24 = vpop.f32.mrf.mxu1 }
  0xea   :  { %297 = vpow2.f32 %v240_v21  ;;  %v161_v25 = vadd.f32 %v224_v14, %v160_v23  ;;  %v169_v26 = vadd.f32 %v224_v14, %v168_v24 }
  0xeb   :  { %299 = vpow2.f32 %v242_v22  ;;  %v162_v27 = vpop.f32.mrf.mxu0  ;;  %v170_v28 = vpop.f32.mrf.mxu1 }
  0xec   :  { %v241_v29 = vmul.f32 -1.442695, %v161_v25  ;;  %v243_v30 = vmul.f32 -1.442695, %v169_v26 }
  0xee   :  { %301 = vpow2.f32 %v241_v29 }
  0xef   :  { %303 = vpow2.f32 %v243_v30 }
  0xf7   :  { %v298_v31 = vpop.eup %297 }
  0xf8   :  { %v300_v32 = vpop.eup %299  ;;  %v184_v33 = vadd.f32 1.0, %v298_v31 }
  0xf9   :  { %v186_v34 = vadd.f32 1.0, %v300_v32 }
  0xfa   :  { %305 = vrcp.f32 %v184_v33 }
  0xfb   :  { %v302_v35 = vpop.eup %301  ;;  %307 = vrcp.f32 %v186_v34 }
  0xfc   :  { %v304_v36 = vpop.eup %303  ;;  %v185_v37 = vadd.f32 1.0, %v302_v35 }
  0xfd   :  { %v187_v38 = vadd.f32 1.0, %v304_v36 }
  0xfe   :  { %309 = vrcp.f32 %v185_v37 }
  0xff   :  { %311 = vrcp.f32 %v187_v38 }
 0x107   :  { %v306_v39 = vpop.eup %305 }
 0x108   :  { %v308_v40 = vpop.eup %307  ;;  %v196_v43 = vmul.f32 %v306_v39, %v158_v17 }
 0x109   :  { %v198_v45 = vmul.f32 %v308_v40, %v166_v18 }
 0x10b   :  { %v310_v41 = vpop.eup %309 }
 0x10c   :  { %v312_v42 = vpop.eup %311  ;;  %v197_v44 = vmul.f32 %v310_v41, %v161_v25 }
 0x10d   :  { %v199_v46 = vmul.f32 %v312_v42, %v169_v26 }
 0x10e   :  { %v255_v47 = vpack.c.bf16 %v197_v44, %v196_v43 }
 0x10f   :  { %v260_v48 = vpack.c.bf16 %v199_v46, %v198_v45 }
 0x110   :  { %256 = vst [vmem:[%s385_s3] sm:$0xff] %v255_v47  }
 0x111   :  { %262 = vst [vmem:[%s385_s3 + $0x8] sm:$0xff] %v260_v48  }

// kernel: model_forward.10
= control target key start
LH: loop header
LB: loop body
LE: loop exit
PB: predicated region body
PF: predicated region fallthrough
CT: control target
= control target key end

     0   :  { %v359_v1 = vmov 0.0   ;;  %vm360_vm0 = vmmov 0   ;;  %vm178_vm1 = vcmask 261120   ;;  %s447_s1 = inlined_call_operand.vmem [shape: bf16[288,128], index: 1, kind: input, shape index: {}]   ;;  %s448_s0 = inlined_call_operand.vmem [shape: bf16[8,288], index: 0, kind: input, shape index: {}]   ;;  %s449_s2 = inlined_call_operand.vmem [shape: f32[1,128], index: 2, kind: input, shape index: {}]   ;;  %s450_s3 = inlined_call_operand.vmem [shape: bf16[8,128], index: 3, kind: output, shape index: {}]  }
   0x1   :  { %v334_v0 = vld [vmem:[%s447_s1 + $0x78] sm:$0xff]   ;;  %324 = vmatprep.subr.bf16.mxu1 %v359_v1  ;;  %328 = vmatprep.mubr.msk.bf16.mxu1 %vm360_vm0, %v359_v1  ;;  %v336_v3 = vld [vmem:[%s447_s1 + $0x70] sm:$0xff]   ;;  %v338_v5 = vld [vmem:[%s447_s1 + $0x68] sm:$0xff]  }
   0x2   :  { %v335_v2 = vld [vmem:[%s447_s1 + $0x38] sm:$0xff]   ;;  %299 = vmatprep.subr.bf16.mxu0 %v334_v0  ;;  %v337_v4 = vld [vmem:[%s447_s1 + $0x30] sm:$0xff]   ;;  %v339_v6 = vld [vmem:[%s447_s1 + $0x28] sm:$0xff]  }
   0x3   :  { %300 = vmatpush3.bf16.msra.mxu0 %v335_v2  ;;  %v340_v7 = vld [vmem:[%s447_s1 + $0x60] sm:$0xff]   ;;  %v342_v9 = vld [vmem:[%s447_s1 + $0x58] sm:$0xff]   ;;  %v348_v10 = vld [vmem:[%s447_s1 + $0x88] sm:$0xff]  }
   0x4   :  { %301 = vmatprep.subr.bf16.mxu0 %v336_v3  ;;  %v341_v8 = vld [vmem:[%s447_s1 + $0x20] sm:$0xff]   ;;  %v343_v11 = vld [vmem:[%s447_s1 + $0x18] sm:$0xff]   ;;  %v344_v12 = vld [vmem:[%s447_s1 + $0x50] sm:$0xff]   ;;  %325 = vmatpush3.bf16.msra.mxu1 %v348_v10 }
   0x5   :  { %326 = vmatprep.subr.bf16.mxu1 %v359_v1  ;;  %v351_v13 = vld [vmem:[%s447_s1 + $0x80] sm:$0xff]   ;;  %v345_v15 = vld [vmem:[%s447_s1 + $0x10] sm:$0xff]   ;;  %v354_v17 = vld [vmem:[%s448_s0 + $0x8] ss:$0 sps:$4 sm:$0xff]  }
   0x6   :  { %v15_v14 = vld [vmem:[%s448_s0] sm:$0xff]  ;;  %v346_v18 = vld [vmem:[%s447_s1 + $0x48] sm:$0xff]  }
   0x7   :  { %302 = vmatpush3.bf16.msra.mxu0 %v337_v4  ;;  %v277_v16 = vcombine.high %v15_v14, %v15_v14  ;;  %v347_v19 = vld [vmem:[%s447_s1 + $0x8] sm:$0xff]   ;;  %v349_v20 = vld [vmem:[%s447_s1 + $0x40] sm:$0xff]   ;;  %v276_v22 = vcombine.low %v15_v14, %v15_v14 }
   0x8   :  { %303 = vmatprep.subr.bf16.mxu0 %v338_v5  ;;  %327 = vmatpush3.bf16.msra.mxu1 %v351_v13  ;;  %v350_v21 = vld [vmem:[%s447_s1] sm:$0xff]  }
   0x9   :  { %214 = vmatprep.mubr.bf16.mxu0 %v277_v16  ;;  %v275_v28 = vld [vmem:[%s449_s2] ss:$0 sm:$0xff] }
   0xb   :  { %304 = vmatpush3.bf16.msra.mxu0 %v339_v6  ;;  %329 = vmatmul.mubr.msk.bf16.vlgmr.msra.gmra.mxu1 %vm178_vm1, %v354_v17 }
   0xc   :  { %305 = vmatprep.subr.bf16.mxu0 %v340_v7 }
   0xf   :  { %306 = vmatpush3.bf16.msra.mxu0 %v341_v8 }
  0x10   :  { %307 = vmatprep.subr.bf16.mxu0 %v342_v9 }
  0x13   :  { %308 = vmatpush3.bf16.msra.mxu0 %v343_v11 }
  0x14   :  { %309 = vmatprep.subr.bf16.mxu0 %v344_v12 }
  0x17   :  { %310 = vmatpush3.bf16.msra.mxu0 %v345_v15 }
  0x18   :  { %311 = vmatprep.subr.bf16.mxu0 %v346_v18 }
  0x1b   :  { %312 = vmatpush3.bf16.msra.mxu0 %v347_v19 }
  0x1c   :  { %313 = vmatprep.subr.bf16.mxu0 %v349_v20 }
  0x1f   :  { %314 = vmatpush3.bf16.msra.mxu0 %v350_v21 }
  0x22   :  { %215 = vmatmul.mubr.bf16.vlgmr.msra.gmra.mxu0 %v276_v22 }
  0xcb   :  { %v256_v23 = vpop.f32.mrf.mxu1 }
  0xcd   :  { %v330_v24 = vpop.f32.mrf.mxu1 }
  0xcf   :  { %v259_v25 = vpop.f32.mrf.mxu1 }
  0xd1   :  { %v331_v26 = vpop.f32.mrf.mxu1 }
  0xe2   :  { %v315_v27 = vpop.f32.mrf.mxu0 }
  0xe4   :  { %v316_v29 = vpop.f32.mrf.mxu0 }
  0xe5   :  { %v317_v30 = vadd.f32 %v316_v29, %v315_v27 }
  0xe6   :  { %v318_v31 = vpop.f32.mrf.mxu0 }
  0xe7   :  { %v217_v32 = vadd.f32 %v317_v30, %v275_v28 }
  0xe8   :  { %v319_v33 = vpop.f32.mrf.mxu0 }
  0xe9   :  { %v257_v34 = vadd.f32 %v256_v23, %v217_v32 }
  0xeb   :  { %v298_v35 = vmul.f32 -1.442695, %v257_v34 }
  0xed   :  { %355 = vpow2.f32 %v298_v35 }
  0xfa   :  { %v356_v36 = vpop.eup %355 }
  0xfb   :  { %v265_v37 = vadd.f32 1.0, %v356_v36 }
  0xfd   :  { %357 = vrcp.f32 %v265_v37 }
 0x10a   :  { %v358_v38 = vpop.eup %357 }
 0x10b   :  { %v268_v39 = vmul.f32 %v358_v38, %v257_v34 }
 0x10d   :  { %v269_v40 = vpack.c.bf16 %v268_v39, %v268_v39 }
 0x10f   :  { %270 = vst [vmem:[%s450_s3] sm:$0xf] %v269_v40 }

// kernel: model_forward.11
= control target key start
LH: loop header
LB: loop body
LE: loop exit
PB: predicated region body
PF: predicated region fallthrough
CT: control target
= control target key end

     0   :  { %s1559_s0 = inlined_call_operand.vmem [shape: s32[3], index: 0, kind: input, shape index: {}]   ;;  %s1560_s1 = inlined_call_operand.vmem [shape: bf16[384,32], index: 1, kind: input, shape index: {}]   ;;  %s1561_s2 = inlined_call_operand.vmem [shape: bf16[3,32,128], index: 2, kind: input, shape index: {}]   ;;  %s1562_s3 = inlined_call_operand.vmem [shape: f32[3,1,128], index: 3, kind: input, shape index: {}]   ;;  %s1563_s4 = inlined_call_operand.vmem [shape: f32[3,1,128], index: 4, kind: input, shape index: {}]   ;;  %s1564_s5 = inlined_call_operand.vmem [shape: f32[3,1,128], index: 5, kind: input, shape index: {}]   ;;  %s1565_s6 = inlined_call_operand.vmem [shape: f32[384,128], index: 6, kind: input, shape index: {}]   ;;  %s1566_s7 = inlined_call_operand.vmem [shape: bf16[384,128], index: 7, kind: output, shape index: {0}]   ;;  %s1567_s8 = inlined_call_operand.vmem [shape: f32[384,128], index: 8, kind: output, shape index: {1}]  }
   0x1   :  { %s14_s29 = sshll.u32 %s1559_s0, 4  ;;  %s15_s29 = int_to_ptr.vmem [resolvable:$true] %s14_s29 }
   0x2   :  { %s1311_s30 = scalar_lea.vmem %s15_s29, 16  ;;  %p1316_p1 = scmp.lt.s32.totalorder %s15_s29, %s15_s29 }
   0x3   :  { %p1312_p0 = scmp.ne.s32.totalorder %s15_s29, %s1311_s30  ;;  %p1317_p2 = scmp.lt.s32.totalorder %s1311_s30, %s1311_s30 }
   0x5   :  { %p1318_p3 = por %p1317_p2, %p1316_p1 }
   0x7   :  { %p1319_p4 = pnand %p1318_p3, %p1312_p0 }
   0x9   :  { %1322 = shalt.err (!%p1319_p4)  }
   0xa   :  { %s1333_s9 = smov [#allocation3]  }
   0xb   :  { %17 = dma.vmem_to_smem %s15_s29, 16, %s1333_s9, [#allocation2] }
   0xc   :  { %1327 = dma.done.wait [#allocation2], 16 }
   0xd   :  { %1328 = vsyncadd [#allocation2], 4294967280 }
   0xe   :  { %19 = sfence }
   0xf   :  { %s1382_s10 = smov 0  }
  0x10 LB: > { %s1388_s0 = sadd.s32 4294967295, %s1331_s10   ;;  %p1064_p5 = scmp.ge.s32.totalorder %s1331_s10, 1  ;;  %s1331_s10 = sphi %s1382_s10, %s25_s10  }
  0x11   : > { %p309_p6 = scmp.lt.s32.totalorder %s1331_s10, 4 }
  0x13   : > { %p310_p7 = pnand %p1064_p5, %p309_p6 }
  0x14   : > { %s375_s11 = sld [smem:[#allocation3 + %s1388_s0]] (!%p310_p7)  ;;  %s1065_s12 = sshll.u32 (!%p310_p7), %s1388_s0, 4 }
  0x15   : > { %313 = sbr.rel (%p310_p7) target bundleno = 294 (0x126), region = 44  ;;  %p370_p8 = scmp.lt.s32.totalorder (!%p310_p7), %s1065_s12, 47 }
  0x16   : > { %s382_s21 = sld [smem:[#allocation3 + %s1388_s0]] (!%p310_p7) }
  0x17   : > { %s1444_s28 = sld [smem:[#allocation3 + %s1388_s0]] (!%p310_p7) }
  0x18   : > { %s1448_s29 = sld [smem:[#allocation3 + %s1388_s0]] (!%p310_p7) }
  0x1a   : > { %s1569_s12 = smov (!%p370_p8, %s1065_s12), 47  ;;  %p376_p9 = scmp.lt.s32.totalorder %s375_s11, 2  ;;  %vm495_vm0 = vcmask 261120  }
  0x1b   : > { %s1066_s13 = sshll.u32 %s1569_s12, 2  ;;  %s1070_s15 = sshll.u32 %s1569_s12, 3 }
  0x1c   : > { %s373_s16 = scalar_lea.vmem %s1560_s1, %s1066_s13  ;;  %s1571_s11 = smov (!%p376_p9, %s375_s11), 2 }
  0x1d   : > { %v1239_v0 = vld [vmem:[%s373_s16] sm:$0xff]   ;;  %s1130_s17 = sshll.u32 %s1571_s11, 4  ;;  %v1241_v4 = vld [vmem:[%s373_s16 + $0x8] sm:$0xff]   ;;  %v1243_v6 = vld [vmem:[%s373_s16 + $0x10] sm:$0xff]   ;;  %p383_p10 = scmp.lt.s32.totalorder %s382_s21, 2 }
  0x1e   : > { %v1240_v1 = vld [vmem:[%s373_s16 + $0x20] sm:$0xff]   ;;  %1208 = vmatprep.mubr.msk.bf16.mxu0 %vm495_vm0, %v1239_v0  ;;  %s380_s20 = scalar_lea.vmem %s1561_s2, %s1130_s17  ;;  %v1242_v5 = vld [vmem:[%s373_s16 + $0x28] sm:$0xff]   ;;  %v1244_v7 = vld [vmem:[%s373_s16 + $0x30] sm:$0xff]   ;;  %s1429_s27 = scalar_lea.vmem %s1566_s7, %s1066_s13 }
  0x1f   : > { %1216 = vmatprep.mubr.msk.bf16.mxu1 %vm495_vm0, %v1240_v1  ;;  %v1237_v2 = vld [vmem:[%s380_s20 + $0x8] sm:$0xff]   ;;  %v1238_v3 = vld [vmem:[%s380_s20] sm:$0xff]   ;;  %v1245_v8 = vld [vmem:[%s373_s16 + $0x18] sm:$0xff]   ;;  %s1573_s21 = smov (!%p383_p10, %s382_s21), 2  ;;  %p388_p11 = scmp.lt.s32.totalorder %s1444_s28, 2 }
  0x20   : > { %1204 = vmatprep.subr.bf16.mxu0 %v1237_v2  ;;  %1224 = vmatprep.subr.bf16.mxu1 %v1237_v2  ;;  %v1246_v9 = vld [vmem:[%s373_s16 + $0x38] sm:$0xff]   ;;  %s385_s24 = scalar_lea.vmem %s1562_s3, %s1573_s21  ;;  %p393_p12 = scmp.lt.s32.totalorder %s1448_s29, 2 }
  0x21   : > { %1205 = vmatpush3.bf16.msra.mxu0 %v1237_v2  ;;  %1226 = vmatpush3.bf16.msra.mxu1 %v1237_v2  ;;  %v1417_v10 = vld [vmem:[%s385_s24] ss:$0 sm:$0xff]  ;;  %s1575_s28 = smov (!%p388_p11, %s1444_s28), 2  ;;  %s1483_s18 = scalar_lea.vmem %s1565_s6, %s1070_s15 }
  0x22   : > { %1206 = vmatprep.subr.bf16.mxu0 %v1238_v3  ;;  %1225 = vmatprep.subr.bf16.mxu1 %v1238_v3  ;;  %s1577_s29 = smov (!%p393_p12, %s1448_s29), 2  ;;  %s390_s0 = scalar_lea.vmem %s1563_s4, %s1575_s28 }
  0x23   : > { %s395_s14 = scalar_lea.vmem %s1564_s5, %s1577_s29  ;;  %s1499_s21 = scalar_lea.vmem %s1567_s8, %s1070_s15 }
  0x25   : > { %1207 = vmatpush3.bf16.msra.mxu0 %v1238_v3  ;;  %1227 = vmatpush3.bf16.msra.mxu1 %v1238_v3 }
  0x28   : > { %1209 = vmatmul.mubr.msk.bf16.vlgmr.msra.gmra.mxu0 %vm495_vm0, %v1241_v4  ;;  %1217 = vmatmul.mubr.msk.bf16.vlgmr.msra.gmra.mxu1 %vm495_vm0, %v1242_v5 }
  0x29   : > { %1212 = vmatprep.mubr.msk.bf16.mxu0 %vm495_vm0, %v1243_v6  ;;  %1220 = vmatprep.mubr.msk.bf16.mxu1 %vm495_vm0, %v1244_v7 }
  0x30   : > { %1213 = vmatmul.mubr.msk.bf16.gmra.mxu0 %vm495_vm0, %v1245_v8  ;;  %1221 = vmatmul.mubr.msk.bf16.gmra.mxu1 %vm495_vm0, %v1246_v9 }
  0xe8   : > { %v1210_v11 = vpop.f32.mrf.mxu0  ;;  %v1218_v12 = vpop.f32.mrf.mxu1 }
  0xe9   : > { %v563_v13 = vadd.f32 %v1210_v11, %v1417_v10  ;;  %v595_v14 = vadd.f32 %v1218_v12, %v1417_v10 }
  0xea   : > { %v554_v15 = vpop.f32.mrf.mxu0  ;;  %v586_v16 = vpop.f32.mrf.mxu1 }
  0xeb   : > { %v1112_v17 = vmul.f32 -1.442695, %v563_v13  ;;  %v1120_v18 = vmul.f32 -1.442695, %v595_v14  ;;  %v555_v19 = vadd.f32 %v1417_v10, %v554_v15  ;;  %v587_v20 = vadd.f32 %v1417_v10, %v586_v16 }
  0xec   : > { %v1211_v21 = vpop.f32.mrf.mxu0  ;;  %v1219_v22 = vpop.f32.mrf.mxu1 }
  0xed   : > { %1247 = vpow2.f32 %v1112_v17  ;;  %v1110_v23 = vmul.f32 -1.442695, %v555_v19  ;;  %v1118_v24 = vmul.f32 -1.442695, %v587_v20  ;;  %v566_v25 = vadd.f32 %v1211_v21, %v1417_v10 }
  0xee   : > { %1249 = vpow2.f32 %v1120_v18  ;;  %v598_v26 = vadd.f32 %v1219_v22, %v1417_v10  ;;  %v557_v27 = vpop.f32.mrf.mxu0  ;;  %v589_v28 = vpop.f32.mrf.mxu1 }
  0xef   : > { %1251 = vpow2.f32 %v1110_v23  ;;  %v1155_v29 = vpack.c.bf16 %v566_v25, %v563_v13  ;;  %v1113_v30 = vmul.f32 -1.442695, %v566_v25  ;;  %v558_v31 = vadd.f32 %v1417_v10, %v557_v27 }
  0xf0   : > { %1253 = vpow2.f32 %v1118_v24  ;;  %v1175_v32 = vpack.c.bf16 %v598_v26, %v595_v14  ;;  %v1121_v33 = vmul.f32 -1.442695, %v598_v26  ;;  %v590_v34 = vadd.f32 %v1417_v10, %v589_v28  ;;  %v1214_v35 = vpop.f32.mrf.mxu0  ;;  %v1222_v36 = vpop.f32.mrf.mxu1 }
  0xf1   : > { %1187 = vst [vmem:[%s1429_s27 + $0x8] sm:$0xff] %v1155_v29   ;;  %1255 = vpow2.f32 %v1113_v30  ;;  %v1150_v37 = vpack.c.bf16 %v558_v31, %v555_v19  ;;  %v1111_v38 = vmul.f32 -1.442695, %v558_v31  ;;  %v579_v39 = vadd.f32 %v1214_v35, %v1417_v10  ;;  %v1474_v35 = vld [vmem:[%s390_s0] ss:$0 sm:$0xff] }
  0xf2   : > { %1191 = vst [vmem:[%s1429_s27 + $0x28] sm:$0xff] %v1175_v32   ;;  %1257 = vpow2.f32 %v1121_v33  ;;  %v1170_v40 = vpack.c.bf16 %v590_v34, %v587_v20  ;;  %v1119_v41 = vmul.f32 -1.442695, %v590_v34  ;;  %v611_v42 = vadd.f32 %v1222_v36, %v1417_v10  ;;  %v570_v43 = vpop.f32.mrf.mxu0  ;;  %v602_v44 = vpop.f32.mrf.mxu1  ;;  %v1476_v36 = vld [vmem:[%s395_s14] ss:$0 sm:$0xff] }
  0xf3   : > { %1151 = vst [vmem:[%s1429_s27] sm:$0xff] %v1150_v37   ;;  %1259 = vpow2.f32 %v1111_v38  ;;  %v1116_v45 = vmul.f32 -1.442695, %v579_v39  ;;  %v571_v46 = vadd.f32 %v1417_v10, %v570_v43  ;;  %v603_v47 = vadd.f32 %v1417_v10, %v602_v44 }
  0xf4   : > { %1190 = vst [vmem:[%s1429_s27 + $0x20] sm:$0xff] %v1170_v40   ;;  %1261 = vpow2.f32 %v1119_v41  ;;  %v1124_v48 = vmul.f32 -1.442695, %v611_v42  ;;  %v1215_v49 = vpop.f32.mrf.mxu0  ;;  %v1223_v50 = vpop.f32.mrf.mxu1 }
  0xf5   : > { %1263 = vpow2.f32 %v1116_v45  ;;  %v1114_v51 = vmul.f32 -1.442695, %v571_v46  ;;  %v1122_v52 = vmul.f32 -1.442695, %v603_v47  ;;  %v582_v53 = vadd.f32 %v1215_v49, %v1417_v10 }
  0xf6   : > { %1265 = vpow2.f32 %v1124_v48  ;;  %v614_v54 = vadd.f32 %v1223_v50, %v1417_v10  ;;  %v573_v55 = vpop.f32.mrf.mxu0  ;;  %v605_v56 = vpop.f32.mrf.mxu1 }
  0xf7   : > { %1267 = vpow2.f32 %v1114_v51  ;;  %v1165_v57 = vpack.c.bf16 %v582_v53, %v579_v39  ;;  %v1117_v58 = vmul.f32 -1.442695, %v582_v53  ;;  %v574_v59 = vadd.f32 %v1417_v10, %v573_v55 }
  0xf8   : > { %1269 = vpow2.f32 %v1122_v52  ;;  %v1185_v60 = vpack.c.bf16 %v614_v54, %v611_v42  ;;  %v1125_v61 = vmul.f32 -1.442695, %v614_v54  ;;  %v606_v62 = vadd.f32 %v1417_v10, %v605_v56  ;;  %v881_v54 = vld [vmem:[%s1483_s18 + $0x50] sm:$0xff] }
  0xf9   : > { %1189 = vst [vmem:[%s1429_s27 + $0x18] sm:$0xff] %v1165_v57   ;;  %1271 = vpow2.f32 %v1117_v58  ;;  %v1160_v63 = vpack.c.bf16 %v574_v59, %v571_v46  ;;  %v1115_v0 = vmul.f32 -1.442695, %v574_v59 }
  0xfa   : > { %v1248_v1 = vpop.eup %1247  ;;  %1193 = vst [vmem:[%s1429_s27 + $0x38] sm:$0xff] %v1185_v60   ;;  %1273 = vpow2.f32 %v1125_v61  ;;  %v1180_v2 = vpack.c.bf16 %v606_v62, %v603_v47  ;;  %v1123_v3 = vmul.f32 -1.442695, %v606_v62  ;;  %v873_v47 = vld [vmem:[%s1483_s18 + $0x10] sm:$0xff]  ;;  %v871_v60 = vld [vmem:[%s1483_s18] sm:$0xff] }
  0xfb   : > { %v1250_v4 = vpop.eup %1249  ;;  %v747_v5 = vadd.f32 1.0, %v1248_v1  ;;  %1188 = vst [vmem:[%s1429_s27 + $0x10] sm:$0xff] %v1160_v63   ;;  %1275 = vpow2.f32 %v1115_v0 }
  0xfc   : > { %v1252_v6 = vpop.eup %1251  ;;  %v755_v7 = vadd.f32 1.0, %v1250_v4  ;;  %1192 = vst [vmem:[%s1429_s27 + $0x30] sm:$0xff] %v1180_v2   ;;  %1277 = vpow2.f32 %v1123_v3  ;;  %v879_v3 = vld [vmem:[%s1483_s18 + $0x40] sm:$0xff] }
  0xfd   : > { %v1254_v8 = vpop.eup %1253  ;;  %1279 = vrcp.f32 %v747_v5  ;;  %v745_v9 = vadd.f32 1.0, %v1252_v6 }
  0xfe   : > { %v1256_v10 = vpop.eup %1255  ;;  %1281 = vrcp.f32 %v755_v7  ;;  %v753_v11 = vadd.f32 1.0, %v1254_v8 }
  0xff   : > { %v1258_v12 = vpop.eup %1257  ;;  %1283 = vrcp.f32 %v745_v9  ;;  %v748_v13 = vadd.f32 1.0, %v1256_v10  ;;  %v874_v9 = vld [vmem:[%s1483_s18 + $0x18] sm:$0xff] }
 0x100   : > { %v1260_v14 = vpop.eup %1259  ;;  %1285 = vrcp.f32 %v753_v11  ;;  %v756_v15 = vadd.f32 1.0, %v1258_v12 }
 0x101   : > { %v1262_v16 = vpop.eup %1261  ;;  %1287 = vrcp.f32 %v748_v13  ;;  %v746_v17 = vadd.f32 1.0, %v1260_v14 }
 0x102   : > { %v1264_v18 = vpop.eup %1263  ;;  %1289 = vrcp.f32 %v756_v15  ;;  %v754_v19 = vadd.f32 1.0, %v1262_v16  ;;  %v882_v15 = vld [vmem:[%s1483_s18 + $0x58] sm:$0xff] }
 0x103   : > { %v1266_v20 = vpop.eup %1265  ;;  %1291 = vrcp.f32 %v746_v17  ;;  %v751_v21 = vadd.f32 1.0, %v1264_v18 }
 0x104   : > { %v1268_v22 = vpop.eup %1267  ;;  %1293 = vrcp.f32 %v754_v19  ;;  %v759_v23 = vadd.f32 1.0, %v1266_v20 }
 0x105   : > { %v1270_v24 = vpop.eup %1269  ;;  %1295 = vrcp.f32 %v751_v21  ;;  %v749_v25 = vadd.f32 1.0, %v1268_v22 }
 0x106   : > { %v1272_v26 = vpop.eup %1271  ;;  %1297 = vrcp.f32 %v759_v23  ;;  %v757_v27 = vadd.f32 1.0, %v1270_v24 }
 0x107   : > { %v1274_v28 = vpop.eup %1273  ;;  %1299 = vrcp.f32 %v749_v25  ;;  %v752_v29 = vadd.f32 1.0, %v1272_v26  ;;  %v872_v25 = vld [vmem:[%s1483_s18 + $0x8] sm:$0xff] }
 0x108   : > { %v1276_v30 = vpop.eup %1275  ;;  %1301 = vrcp.f32 %v757_v27  ;;  %v760_v31 = vadd.f32 1.0, %v1274_v28 }
 0x109   : > { %v1278_v32 = vpop.eup %1277  ;;  %1303 = vrcp.f32 %v752_v29  ;;  %v750_v33 = vadd.f32 1.0, %v1276_v30 }
 0x10a   : > { %v1280_v34 = vpop.eup %1279  ;;  %1305 = vrcp.f32 %v760_v31  ;;  %v758_v37 = vadd.f32 1.0, %v1278_v32  ;;  %v880_v32 = vld [vmem:[%s1483_s18 + $0x48] sm:$0xff] }
 0x10b   : > { %v1282_v38 = vpop.eup %1281  ;;  %v819_v39 = vmul.f32 %v1280_v34, %v1280_v34  ;;  %1307 = vrcp.f32 %v750_v33  ;;  %v802_v43 = vmul.f32 %v1280_v34, %v1474_v35 }
 0x10c   : > { %v1284_v40 = vpop.eup %1283  ;;  %v827_v41 = vmul.f32 %v1282_v38, %v1282_v38  ;;  %1309 = vrcp.f32 %v758_v37  ;;  %v810_v48 = vmul.f32 %v1282_v38, %v1474_v35 }
 0x10d   : > { %v1286_v42 = vpop.eup %1285  ;;  %v841_v44 = vmul.f32 %v1476_v36, %v819_v39  ;;  %v817_v45 = vmul.f32 %v1284_v40, %v1284_v40  ;;  %v800_v50 = vmul.f32 %v1284_v40, %v1474_v35 }
 0x10e   : > { %v1288_v46 = vpop.eup %1287  ;;  %v849_v49 = vmul.f32 %v1476_v36, %v827_v41  ;;  %v825_v51 = vmul.f32 %v1286_v42, %v1286_v42  ;;  %v808_v56 = vmul.f32 %v1286_v42, %v1474_v35 }
 0x10f   : > { %v1290_v52 = vpop.eup %1289  ;;  %v857_v53 = vadd.f32 %v841_v44, %v802_v43  ;;  %v839_v55 = vmul.f32 %v1476_v36, %v817_v45  ;;  %v820_v57 = vmul.f32 %v1288_v46, %v1288_v46  ;;  %v803_v62 = vmul.f32 %v1288_v46, %v1474_v35  ;;  %v877_v43 = vld [vmem:[%s1483_s18 + $0x30] sm:$0xff] }
 0x110   : > { %v1292_v58 = vpop.eup %1291  ;;  %v865_v59 = vadd.f32 %v849_v49, %v810_v48  ;;  %v847_v61 = vmul.f32 %v1476_v36, %v825_v51  ;;  %v828_v63 = vmul.f32 %v1290_v52, %v1290_v52  ;;  %v811_v5 = vmul.f32 %v1290_v52, %v1474_v35 }
 0x111   : > { %v1294_v0 = vpop.eup %1293  ;;  %v889_v1 = vadd.f32 %v873_v47, %v857_v53  ;;  %v855_v2 = vadd.f32 %v839_v55, %v800_v50  ;;  %v842_v4 = vmul.f32 %v1476_v36, %v820_v57  ;;  %v818_v11 = vmul.f32 %v1292_v58, %v1292_v58  ;;  %v885_v50 = vld [vmem:[%s1483_s18 + $0x70] sm:$0xff]  ;;  %v875_v55 = vld [vmem:[%s1483_s18 + $0x20] sm:$0xff] }
 0x112   : > { %v1296_v6 = vpop.eup %1295  ;;  %v897_v7 = vadd.f32 %v881_v54, %v865_v59  ;;  %v863_v8 = vadd.f32 %v847_v61, %v808_v56  ;;  %v850_v10 = vmul.f32 %v1476_v36, %v828_v63  ;;  %v801_v16 = vmul.f32 %v1292_v58, %v1474_v35  ;;  %v883_v61 = vld [vmem:[%s1483_s18 + $0x60] sm:$0xff] }
 0x113   : > { %v1298_v12 = vpop.eup %1297  ;;  %905 = vst [vmem:[%s1499_s21 + $0x10] sm:$0xff] %v889_v1  ;;  %v887_v13 = vadd.f32 %v871_v60, %v855_v2  ;;  %v858_v14 = vadd.f32 %v842_v4, %v803_v62  ;;  %v826_v17 = vmul.f32 %v1294_v0, %v1294_v0  ;;  %v840_v21 = vmul.f32 %v1476_v36, %v818_v11  ;;  %v878_v2 = vld [vmem:[%s1483_s18 + $0x38] sm:$0xff] }
 0x114   : > { %v1300_v18 = vpop.eup %1299  ;;  %913 = vst [vmem:[%s1499_s21 + $0x50] sm:$0xff] %v897_v7  ;;  %v895_v19 = vadd.f32 %v879_v3, %v863_v8  ;;  %v866_v20 = vadd.f32 %v850_v10, %v811_v5  ;;  %v809_v22 = vmul.f32 %v1294_v0, %v1474_v35  ;;  %v806_v27 = vmul.f32 %v1296_v6, %v1474_v35  ;;  %v886_v7 = vld [vmem:[%s1483_s18 + $0x78] sm:$0xff] }
 0x115   : > { %v1302_v23 = vpop.eup %1301  ;;  %903 = vst [vmem:[%s1499_s21] sm:$0xff] %v887_v13  ;;  %v890_v24 = vadd.f32 %v874_v9, %v858_v14  ;;  %v848_v26 = vmul.f32 %v1476_v36, %v826_v17  ;;  %v823_v28 = vmul.f32 %v1296_v6, %v1296_v6  ;;  %v856_v31 = vadd.f32 %v840_v21, %v801_v16  ;;  %v876_v14 = vld [vmem:[%s1483_s18 + $0x28] sm:$0xff] }
 0x116   : > { %v1304_v29 = vpop.eup %1303  ;;  %911 = vst [vmem:[%s1499_s21 + $0x40] sm:$0xff] %v895_v19  ;;  %v898_v30 = vadd.f32 %v882_v15, %v866_v20  ;;  %v814_v33 = vmul.f32 %v1298_v12, %v1474_v35  ;;  %v831_v34 = vmul.f32 %v1298_v12, %v1298_v12  ;;  %v804_v40 = vmul.f32 %v1300_v18, %v1474_v35  ;;  %v884_v19 = vld [vmem:[%s1483_s18 + $0x68] sm:$0xff] }
 0x117   : > { %v1306_v37 = vpop.eup %1305  ;;  %906 = vst [vmem:[%s1499_s21 + $0x18] sm:$0xff] %v890_v24  ;;  %v864_v38 = vadd.f32 %v848_v26, %v809_v22  ;;  %v845_v39 = vmul.f32 %v1476_v36, %v823_v28  ;;  %v821_v41 = vmul.f32 %v1300_v18, %v1300_v18  ;;  %v888_v42 = vadd.f32 %v872_v25, %v856_v31 }
 0x118   : > { %914 = vst [vmem:[%s1499_s21 + $0x58] sm:$0xff] %v898_v30  ;;  %v853_v44 = vmul.f32 %v1476_v36, %v831_v34  ;;  %v812_v45 = vmul.f32 %v1302_v23, %v1474_v35  ;;  %v829_v46 = vmul.f32 %v1302_v23, %v1302_v23  ;;  %v1308_v47 = vpop.eup %1307  ;;  %v824_v52 = vmul.f32 %v1304_v29, %v1304_v29 }
 0x119   : > { %v896_v48 = vadd.f32 %v880_v32, %v864_v38  ;;  %v861_v49 = vadd.f32 %v845_v39, %v806_v27  ;;  %v843_v51 = vmul.f32 %v1476_v36, %v821_v41  ;;  %v1310_v53 = vpop.eup %1309  ;;  %904 = vst [vmem:[%s1499_s21 + $0x8] sm:$0xff] %v888_v42  ;;  %v807_v57 = vmul.f32 %v1304_v29, %v1474_v35 }
 0x11a   : > { %v869_v54 = vadd.f32 %v853_v44, %v814_v33  ;;  %v851_v56 = vmul.f32 %v1476_v36, %v829_v46  ;;  %v832_v58 = vmul.f32 %v1306_v37, %v1306_v37  ;;  %v846_v62 = vmul.f32 %v1476_v36, %v824_v52 }
 0x11b   : > { %912 = vst [vmem:[%s1499_s21 + $0x48] sm:$0xff] %v896_v48  ;;  %v893_v59 = vadd.f32 %v877_v43, %v861_v49  ;;  %v859_v60 = vadd.f32 %v843_v51, %v804_v40  ;;  %v815_v63 = vmul.f32 %v1306_v37, %v1474_v35  ;;  %v822_v4 = vmul.f32 %v1308_v47, %v1308_v47 }
 0x11c   : > { %v901_v0 = vadd.f32 %v885_v50, %v869_v54  ;;  %v867_v1 = vadd.f32 %v851_v56, %v812_v45  ;;  %v854_v3 = vmul.f32 %v1476_v36, %v832_v58  ;;  %v862_v6 = vadd.f32 %v846_v62, %v807_v57 }
 0x11d   : > { %909 = vst [vmem:[%s1499_s21 + $0x30] sm:$0xff] %v893_v59  ;;  %v891_v5 = vadd.f32 %v875_v55, %v859_v60  ;;  %v830_v8 = vmul.f32 %v1310_v53, %v1310_v53  ;;  %v805_v11 = vmul.f32 %v1308_v47, %v1474_v35  ;;  %v844_v12 = vmul.f32 %v1476_v36, %v822_v4 }
 0x11e   : > { %917 = vst [vmem:[%s1499_s21 + $0x70] sm:$0xff] %v901_v0  ;;  %v899_v9 = vadd.f32 %v883_v61, %v867_v1  ;;  %v870_v10 = vadd.f32 %v854_v3, %v815_v63  ;;  %v894_v13 = vadd.f32 %v878_v2, %v862_v6  ;;  %v813_v15 = vmul.f32 %v1310_v53, %v1474_v35 }
 0x11f   : > { %907 = vst [vmem:[%s1499_s21 + $0x20] sm:$0xff] %v891_v5  ;;  %v852_v16 = vmul.f32 %v1476_v36, %v830_v8  ;;  %v860_v18 = vadd.f32 %v844_v12, %v805_v11 }
 0x120   : > { %915 = vst [vmem:[%s1499_s21 + $0x60] sm:$0xff] %v899_v9  ;;  %v902_v17 = vadd.f32 %v886_v7, %v870_v10  ;;  %910 = vst [vmem:[%s1499_s21 + $0x38] sm:$0xff] %v894_v13 }
 0x121   : > { %v868_v20 = vadd.f32 %v852_v16, %v813_v15  ;;  %v892_v21 = vadd.f32 %v876_v14, %v860_v18 }
 0x122   : > { %918 = vst [vmem:[%s1499_s21 + $0x78] sm:$0xff] %v902_v17 }
 0x123   : > { %v900_v22 = vadd.f32 %v884_v19, %v868_v20  ;;  %908 = vst [vmem:[%s1499_s21 + $0x28] sm:$0xff] %v892_v21 }
 0x125   : > { %916 = vst [vmem:[%s1499_s21 + $0x68] sm:$0xff] %v900_v22 }
 0x126 PF: > { %s25_s10 = sadd.s32 1, %s1331_s10  }
 0x127   : > { %p22_p13 = scmp.ge.s32.totalorder %s25_s10, 5  }
 0x129   :  { %24 = sbr.rel (!%p22_p13) target bundleno = 16 (0x10), region = 101 }

</bundles_post_ra>
